<compile_context>
chip_gen: v6e
topology: v6e:2x2x1
jax: 0.10.0
libtpu: 0.0.40
codegen_flags: <defaults>
</compile_context>

<pallas_src>
import functools
import math

import jax
import jax.numpy as jnp
from jax import lax
from jax.experimental import pallas as pl
from jax.experimental.pallas import tpu as pltpu

_NEG_INF = -1e9
_LANE = 128
_SUBLANE = 8

_WEIGHT_NAMES = ("in_w", "in_b", "qkv_w", "qkv_b", "wo", "bo",
                 "ln1_g", "ln1_b", "f1_w", "f1_b", "f2_w", "f2_b",
                 "ln2_g", "ln2_b", "out_w", "out_b")


def _layer_norm(x, gamma, beta, eps=1e-5):
    mu = jnp.mean(x, axis=-1, keepdims=True)
    d = x - mu
    var = jnp.mean(d * d, axis=-1, keepdims=True)
    return d * lax.rsqrt(var + eps) * gamma + beta


# ------------------------------ fused kernel -------------------------------- #

def _encoder_kernel(x_ref, bias_ref,
                    in_w_ref, in_b_ref,
                    qkv_w_ref, qkv_b_ref, wo_ref, bo_ref,
                    ln1_g_ref, ln1_b_ref,
                    f1_w_ref, f1_b_ref, f2_w_ref, f2_b_ref,
                    ln2_g_ref, ln2_b_ref,
                    out_w_ref, out_b_ref,
                    o_ref, *, heads, num_layers):
    """Entire Graphormer encoder for one (possibly merged) graph block."""
    # TODO(synk): training-mode dropout (RNG) omitted — eval-mode identity.
    x = x_ref[...]
    bias = bias_ref[...]

    # in_proj
    h = jnp.dot(x, in_w_ref[...], preferred_element_type=jnp.float32) + in_b_ref[...]
    _, hid = h.shape
    dh = hid // heads

    for l in range(num_layers):                       # static -> unrolled
        # ---- multi-head self-attention (fused, per-head-contiguous QKV) ----
        qkv = (jnp.dot(h, qkv_w_ref[l], preferred_element_type=jnp.float32)
               + qkv_b_ref[l])
        ctx_parts = []
        for hh in range(heads):                       # static -> unrolled
            blk = qkv[:, hh * 3 * dh:(hh + 1) * 3 * dh]   # contiguous 3*dh lanes
            q_h = blk[:, 0 * dh:1 * dh]                   # scale already folded in
            k_h = blk[:, 1 * dh:2 * dh]
            v_h = blk[:, 2 * dh:3 * dh]
            # Contract last axes directly (MXU), no explicit transpose.
            s = lax.dot_general(q_h, k_h, (((1,), (1,)), ((), ())),
                                preferred_element_type=jnp.float32) + bias
            s = s - jnp.max(s, axis=-1, keepdims=True)
            p = jnp.exp(s)
            p = p * pl.reciprocal(jnp.sum(p, axis=-1, keepdims=True))
            ctx_parts.append(jnp.dot(p, v_h, preferred_element_type=jnp.float32))
        ctx = jnp.concatenate(ctx_parts, axis=-1)     # (n, hid), within-vreg lanes
        attn = (jnp.dot(ctx, wo_ref[l], preferred_element_type=jnp.float32)
                + bo_ref[l])                          # single Wo matmul per layer

        # ---- Add & LayerNorm 1 ----
        h = _layer_norm(attn + h, ln1_g_ref[l], ln1_b_ref[l])

        # ---- FFN (relu) ----
        ff = (jnp.dot(h, f1_w_ref[l], preferred_element_type=jnp.float32)
              + f1_b_ref[l])
        ff = jnp.maximum(ff, 0.0)
        ff = (jnp.dot(ff, f2_w_ref[l], preferred_element_type=jnp.float32)
              + f2_b_ref[l])

        # ---- Add & LayerNorm 2 ----
        h = _layer_norm(ff + h, ln2_g_ref[l], ln2_b_ref[l])

    # out_proj (lane-padded to 128 -> dense store; sliced back in the wrapper)
    o_ref[...] = (jnp.dot(h, out_w_ref[...], preferred_element_type=jnp.float32)
                  + out_b_ref[...]).astype(o_ref.dtype)


# ------------------------------ block specs ---------------------------------- #

def _batched_spec(shape):
    # leading dim = graph index (squeezed inside the kernel), rest = full block
    nrest = len(shape) - 1
    return pl.BlockSpec((pl.Squeezed(),) + tuple(shape[1:]),
                        lambda g, _n=nrest: (g,) + (0,) * _n)


# grid-invariant weights: whole array resident in VMEM, no double buffering
_WEIGHT_SPEC = pl.BlockSpec(memory_space=pltpu.MemorySpace.VMEM)


def graphormer_encoder(packed, x_b, bias_b, heads):
    g, n_pad, _ = x_b.shape
    out_pad = packed["out_w"].shape[1]
    num_layers = packed["qkv_w"].shape[0]
    weights = [packed[nm] for nm in _WEIGHT_NAMES]

    return pl.pallas_call(
        functools.partial(_encoder_kernel, heads=heads, num_layers=num_layers),
        out_shape=jax.ShapeDtypeStruct((g, n_pad, out_pad), jnp.float32),
        grid=(g,),
        in_specs=([_batched_spec(x_b.shape), _batched_spec(bias_b.shape)]
                  + [_WEIGHT_SPEC] * len(weights)),
        out_specs=_batched_spec((g, n_pad, out_pad)),
        compiler_params=pltpu.CompilerParams(
            dimension_semantics=("parallel",)),
    )(x_b, bias_b, *weights)


# ---------------------------- parameter setup -------------------------------- #

def init_params(key, in_size, hid_size, out_size, num_layers):
    """Canonical (reference-layout) parameters: QKV columns = [Wq | Wk | Wv]."""
    keys = iter(jax.random.split(key, 4 + 8 * num_layers))

    def w_init(fi, fo):
        return jax.random.normal(next(keys), (fi, fo), jnp.float32) / math.sqrt(fi)

    def b_init(fo):
        return jax.random.normal(next(keys), (1, fo), jnp.float32) * 0.02

    params = {"in_w": w_init(in_size, hid_size), "in_b": b_init(hid_size)}
    stacks = {k: [] for k in ("qkv_w", "qkv_b", "wo", "bo",
                              "f1_w", "f1_b", "f2_w", "f2_b")}
    for _ in range(num_layers):
        stacks["qkv_w"].append(w_init(hid_size, 3 * hid_size))
        stacks["qkv_b"].append(b_init(3 * hid_size))
        stacks["wo"].append(w_init(hid_size, hid_size))
        stacks["bo"].append(b_init(hid_size))
        stacks["f1_w"].append(w_init(hid_size, hid_size))
        stacks["f1_b"].append(b_init(hid_size))
        stacks["f2_w"].append(w_init(hid_size, hid_size))
        stacks["f2_b"].append(b_init(hid_size))
    params.update({k: jnp.stack(v) for k, v in stacks.items()})
    params["ln1_g"] = jnp.ones((num_layers, 1, hid_size), jnp.float32)
    params["ln1_b"] = jnp.zeros((num_layers, 1, hid_size), jnp.float32)
    params["ln2_g"] = jnp.ones((num_layers, 1, hid_size), jnp.float32)
    params["ln2_b"] = jnp.zeros((num_layers, 1, hid_size), jnp.float32)
    params["out_w"] = w_init(hid_size, out_size)
    params["out_b"] = b_init(out_size)
    return params


def pack_params(params, heads):
    """Kernel layout: scale folded into Q, per-head-contiguous QKV, padded out."""
    hid = params["in_w"].shape[1]
    dh = hid // heads
    out_size = params["out_w"].shape[1]
    out_pad = ((out_size + _LANE - 1) // _LANE) * _LANE
    scale = 1.0 / math.sqrt(dh)

    def fold_and_regroup(a):
        lead = a.shape[:-1]
        q = (a[..., :hid] * scale).reshape(lead + (heads, dh))
        k = a[..., hid:2 * hid].reshape(lead + (heads, dh))
        v = a[..., 2 * hid:].reshape(lead + (heads, dh))
        return jnp.concatenate([q, k, v], axis=-1).reshape(lead + (3 * hid,))

    packed = dict(params)
    packed["qkv_w"] = fold_and_regroup(params["qkv_w"])
    packed["qkv_b"] = fold_and_regroup(params["qkv_b"])
    packed["out_w"] = (jnp.zeros((hid, out_pad), jnp.float32)
                       .at[:, :out_size].set(params["out_w"]))
    packed["out_b"] = (jnp.zeros((1, out_pad), jnp.float32)
                       .at[:, :out_size].set(params["out_b"]))
    return packed


# ------------------------------ model forward -------------------------------- #

def _pad_single(feat, bias, n_pad):
    n = feat.shape[0]
    feat_p = jnp.zeros((n_pad, feat.shape[1]), jnp.float32).at[:n, :].set(feat)
    bias_p = jnp.full((n_pad, n_pad), _NEG_INF, jnp.float32).at[:n, :n].set(bias)
    return feat_p, bias_p


@functools.partial(jax.jit, static_argnames=("heads", "out_size", "per_graph_grid"))
def alignment_model_forward(packed, api_feat, api_bias, skill_feat, skill_bias,
                            heads, out_size, per_graph_grid=False):
    n_api, n_skill = api_feat.shape[0], skill_feat.shape[0]
    if per_graph_grid:
        # v7x path: one graph per TensorCore via a parallel grid axis.
        n_pad = -(-max(n_api, n_skill) // _SUBLANE) * _SUBLANE
        api_x, api_b = _pad_single(api_feat, api_bias, n_pad)
        sk_x, sk_b = _pad_single(skill_feat, skill_bias, n_pad)
        out = graphormer_encoder(packed,
                                 jnp.stack([api_x, sk_x]),
                                 jnp.stack([api_b, sk_b]), heads)
        return out[0, :n_api, :out_size], out[1, :n_skill, :out_size]

    # v5e/v6e path (single TensorCore): merge both graphs into ONE kernel call
    # (block-diagonal -1e9 bias keeps the graphs from attending to each other).
    n_tot = n_api + n_skill
    n_pad = -(-n_tot // _SUBLANE) * _SUBLANE
    in_size = api_feat.shape[1]
    x_m = jnp.zeros((n_pad, in_size), jnp.float32)
    x_m = x_m.at[:n_api, :].set(api_feat).at[n_api:n_tot, :].set(skill_feat)
    bias_m = jnp.full((n_pad, n_pad), _NEG_INF, jnp.float32)
    bias_m = bias_m.at[:n_api, :n_api].set(api_bias)
    bias_m = bias_m.at[n_api:n_tot, n_api:n_tot].set(skill_bias)
    out = graphormer_encoder(packed, x_m[None], bias_m[None], heads)
    return out[0, :n_api, :out_size], out[0, n_api:n_tot, :out_size]


def _has_two_tensorcores():
    # v7x has 2 TensorCores per chip; v5e/v6e have 1.
    try:
        kind = jax.devices()[0].device_kind.lower()
    except Exception:
        return False
    return "v7" in kind or "7x" in kind


# ----------------------- pure-JAX reference (sanity) ------------------------- #

def _reference_encoder(params, x, bias, heads):
    hid = params["in_w"].shape[1]
    dh = hid // heads
    scale = 1.0 / math.sqrt(dh)
    h = x @ params["in_w"] + params["in_b"]
    for l in range(params["qkv_w"].shape[0]):
        qkv = h @ params["qkv_w"][l] + params["qkv_b"][l]
        q, k, v = qkv[:, :hid], qkv[:, hid:2 * hid], qkv[:, 2 * hid:]
        outs = []
        for hh in range(heads):
            sl = slice(hh * dh, (hh + 1) * dh)
            s = q[:, sl] @ k[:, sl].T * scale + bias
            outs.append(jax.nn.softmax(s, axis=-1) @ v[:, sl])
        attn = jnp.concatenate(outs, axis=-1) @ params["wo"][l] + params["bo"][l]
        h = _layer_norm(attn + h, params["ln1_g"][l], params["ln1_b"][l])
        ff = jax.nn.relu(h @ params["f1_w"][l] + params["f1_b"][l])
        ff = ff @ params["f2_w"][l] + params["f2_b"][l]
        h = _layer_norm(ff + h, params["ln2_g"][l], params["ln2_b"][l])
    return h @ params["out_w"] + params["out_b"]


# ---------------------------------- main -------------------------------------- #

if __name__ == "__main__":
    in_size, hid_size, out_size = 16, 32, 16
    heads, num_layers = 4, 2
    n_api, n_skill = 16, 8

    key = jax.random.PRNGKey(0)
    k_params, k_api_x, k_api_b, k_sk_x, k_sk_b = jax.random.split(key, 5)

    params = init_params(k_params, in_size, hid_size, out_size, num_layers)
    packed = pack_params(params, heads)

    api_feat = jax.random.normal(k_api_x, (n_api, in_size), jnp.float32)
    api_bias = jax.random.normal(k_api_b, (n_api, n_api), jnp.float32) * 0.1
    skill_feat = jax.random.normal(k_sk_x, (n_skill, in_size), jnp.float32)
    skill_bias = jax.random.normal(k_sk_b, (n_skill, n_skill), jnp.float32) * 0.1

    ref_api = _reference_encoder(params, api_feat, api_bias, heads)
    ref_sk = _reference_encoder(params, skill_feat, skill_bias, heads)

    default_path = _has_two_tensorcores()
    results = {}
    for per_graph_grid in (False, True):   # verify both codegen paths
        api_emb, skill_emb = alignment_model_forward(
            packed, api_feat, api_bias, skill_feat, skill_bias,
            heads=heads, out_size=out_size, per_graph_grid=per_graph_grid)
        jax.block_until_ready((api_emb, skill_emb))

        assert api_emb.shape == (n_api, out_size)
        assert skill_emb.shape == (n_skill, out_size)
        assert bool(jnp.all(jnp.isfinite(api_emb)))
        assert bool(jnp.all(jnp.isfinite(skill_emb)))

        err = max(float(jnp.max(jnp.abs(api_emb - ref_api))),
                  float(jnp.max(jnp.abs(skill_emb - ref_sk))))
        assert err < 2e-3, (
            f"kernel vs reference max abs err = {err} (per_graph_grid={per_graph_grid})")
        results[per_graph_grid] = (api_emb, skill_emb)

    api_emb, skill_emb = results[default_path]   # chip-appropriate result
    print("KERNEL_OK")
</pallas_src>

<mosaic_0001>
module attributes {stable_mosaic.version = 11 : i64} {
  func.func @_encoder_kernel(%arg0: i32, %arg1: memref<1x24x16xf32, #tpu.memory_space<vmem>>, %arg2: memref<1x24x24xf32, #tpu.memory_space<vmem>>, %arg3: memref<16x32xf32, #tpu.memory_space<vmem>>, %arg4: memref<1x32xf32, #tpu.memory_space<vmem>>, %arg5: memref<2x32x96xf32, #tpu.memory_space<vmem>>, %arg6: memref<2x1x96xf32, #tpu.memory_space<vmem>>, %arg7: memref<2x32x32xf32, #tpu.memory_space<vmem>>, %arg8: memref<2x1x32xf32, #tpu.memory_space<vmem>>, %arg9: memref<2x1x32xf32, #tpu.memory_space<vmem>>, %arg10: memref<2x1x32xf32, #tpu.memory_space<vmem>>, %arg11: memref<2x32x32xf32, #tpu.memory_space<vmem>>, %arg12: memref<2x1x32xf32, #tpu.memory_space<vmem>>, %arg13: memref<2x32x32xf32, #tpu.memory_space<vmem>>, %arg14: memref<2x1x32xf32, #tpu.memory_space<vmem>>, %arg15: memref<2x1x32xf32, #tpu.memory_space<vmem>>, %arg16: memref<2x1x32xf32, #tpu.memory_space<vmem>>, %arg17: memref<32x128xf32, #tpu.memory_space<vmem>>, %arg18: memref<1x128xf32, #tpu.memory_space<vmem>>, %arg19: memref<1x24x128xf32, #tpu.memory_space<vmem>>) attributes {dimension_semantics = [#tpu.dimension_semantics<parallel>], iteration_bounds = array<i64: 1>, scalar_prefetch = 0 : i64, scratch_operands = 0 : i64, tpu.core_type = #tpu.core_type<tc>, window_params = [{transform_indices = @transform_0, window_bounds = array<i64: 1, 24, 16>}, {transform_indices = @transform_1, window_bounds = array<i64: 1, 24, 24>}, {pipeline_mode = #tpu.pipeline_mode<synchronous>, transform_indices = @transform_2, window_bounds = array<i64: 16, 32>}, {pipeline_mode = #tpu.pipeline_mode<synchronous>, transform_indices = @transform_3, window_bounds = array<i64: 1, 32>}, {pipeline_mode = #tpu.pipeline_mode<synchronous>, transform_indices = @transform_4, window_bounds = array<i64: 2, 32, 96>}, {pipeline_mode = #tpu.pipeline_mode<synchronous>, transform_indices = @transform_5, window_bounds = array<i64: 2, 1, 96>}, {pipeline_mode = #tpu.pipeline_mode<synchronous>, transform_indices = @transform_6, window_bounds = array<i64: 2, 32, 32>}, {pipeline_mode = #tpu.pipeline_mode<synchronous>, transform_indices = @transform_7, window_bounds = array<i64: 2, 1, 32>}, {pipeline_mode = #tpu.pipeline_mode<synchronous>, transform_indices = @transform_8, window_bounds = array<i64: 2, 1, 32>}, {pipeline_mode = #tpu.pipeline_mode<synchronous>, transform_indices = @transform_9, window_bounds = array<i64: 2, 1, 32>}, {pipeline_mode = #tpu.pipeline_mode<synchronous>, transform_indices = @transform_10, window_bounds = array<i64: 2, 32, 32>}, {pipeline_mode = #tpu.pipeline_mode<synchronous>, transform_indices = @transform_11, window_bounds = array<i64: 2, 1, 32>}, {pipeline_mode = #tpu.pipeline_mode<synchronous>, transform_indices = @transform_12, window_bounds = array<i64: 2, 32, 32>}, {pipeline_mode = #tpu.pipeline_mode<synchronous>, transform_indices = @transform_13, window_bounds = array<i64: 2, 1, 32>}, {pipeline_mode = #tpu.pipeline_mode<synchronous>, transform_indices = @transform_14, window_bounds = array<i64: 2, 1, 32>}, {pipeline_mode = #tpu.pipeline_mode<synchronous>, transform_indices = @transform_15, window_bounds = array<i64: 2, 1, 32>}, {pipeline_mode = #tpu.pipeline_mode<synchronous>, transform_indices = @transform_16, window_bounds = array<i64: 32, 128>}, {pipeline_mode = #tpu.pipeline_mode<synchronous>, transform_indices = @transform_17, window_bounds = array<i64: 1, 128>}, {transform_indices = @transform_18, window_bounds = array<i64: 1, 24, 128>}]} {
    %c0 = arith.constant 0 : index
    %c0_0 = arith.constant 0 : index
    %c0_1 = arith.constant 0 : index
    %0 = vector.load %arg1[%c0, %c0_0, %c0_1] : memref<1x24x16xf32, #tpu.memory_space<vmem>>, vector<1x24x16xf32>
    %1 = vector.shape_cast %0 : vector<1x24x16xf32> to vector<24x16xf32>
    %c0_2 = arith.constant 0 : index
    %c0_3 = arith.constant 0 : index
    %c0_4 = arith.constant 0 : index
    %2 = vector.load %arg2[%c0_2, %c0_3, %c0_4] : memref<1x24x24xf32, #tpu.memory_space<vmem>>, vector<1x24x24xf32>
    %3 = vector.shape_cast %2 : vector<1x24x24xf32> to vector<24x24xf32>
    %c0_5 = arith.constant 0 : index
    %c0_6 = arith.constant 0 : index
    %4 = vector.load %arg3[%c0_5, %c0_6] : memref<16x32xf32, #tpu.memory_space<vmem>>, vector<16x32xf32>
    %cst = arith.constant dense<0.000000e+00> : vector<24x32xf32>
    %5 = tpu.matmul %1, %4, %cst {dimension_numbers = #tpu.dot_dimension_numbers<[1], [0], [0], [1], [0, 0, 1, 1], [], []>} : vector<24x16xf32>, vector<16x32xf32>, vector<24x32xf32> -> vector<24x32xf32>
    %c0_7 = arith.constant 0 : index
    %c0_8 = arith.constant 0 : index
    %6 = vector.load %arg4[%c0_7, %c0_8] : memref<1x32xf32, #tpu.memory_space<vmem>>, vector<1x32xf32>
    %7 = vector.broadcast %6 : vector<1x32xf32> to vector<24x32xf32>
    %8 = arith.addf %5, %7 : vector<24x32xf32>
    %c0_9 = arith.constant 0 : index
    %c0_10 = arith.constant 0 : index
    %c0_11 = arith.constant 0 : index
    %9 = vector.load %arg5[%c0_9, %c0_10, %c0_11] : memref<2x32x96xf32, #tpu.memory_space<vmem>>, vector<1x32x96xf32>
    %10 = vector.shape_cast %9 : vector<1x32x96xf32> to vector<32x96xf32>
    %cst_12 = arith.constant dense<0.000000e+00> : vector<24x96xf32>
    %11 = tpu.matmul %8, %10, %cst_12 {dimension_numbers = #tpu.dot_dimension_numbers<[1], [0], [0], [1], [0, 0, 1, 1], [], []>} : vector<24x32xf32>, vector<32x96xf32>, vector<24x96xf32> -> vector<24x96xf32>
    %c0_13 = arith.constant 0 : index
    %c0_14 = arith.constant 0 : index
    %c0_15 = arith.constant 0 : index
    %12 = vector.load %arg6[%c0_13, %c0_14, %c0_15] : memref<2x1x96xf32, #tpu.memory_space<vmem>>, vector<1x1x96xf32>
    %13 = vector.shape_cast %12 : vector<1x1x96xf32> to vector<1x96xf32>
    %14 = vector.broadcast %13 : vector<1x96xf32> to vector<24x96xf32>
    %15 = arith.addf %11, %14 : vector<24x96xf32>
    %16 = vector.extract_strided_slice %15 {offsets = [0, 0], sizes = [24, 24], strides = [1, 1]} : vector<24x96xf32> to vector<24x24xf32>
    %17 = vector.extract_strided_slice %16 {offsets = [0, 0], sizes = [24, 8], strides = [1, 1]} : vector<24x24xf32> to vector<24x8xf32>
    %18 = vector.extract_strided_slice %16 {offsets = [0, 8], sizes = [24, 8], strides = [1, 1]} : vector<24x24xf32> to vector<24x8xf32>
    %19 = vector.extract_strided_slice %16 {offsets = [0, 16], sizes = [24, 8], strides = [1, 1]} : vector<24x24xf32> to vector<24x8xf32>
    %cst_16 = arith.constant dense<0.000000e+00> : vector<24x24xf32>
    %20 = tpu.matmul %17, %18, %cst_16 {dimension_numbers = #tpu.dot_dimension_numbers<[1], [1], [0], [0], [0, 0, 1, 0], [], []>} : vector<24x8xf32>, vector<24x8xf32>, vector<24x24xf32> -> vector<24x24xf32>
    %21 = arith.addf %20, %3 : vector<24x24xf32>
    %cst_17 = arith.constant dense<0xFF800000> : vector<24xf32>
    %22 = vector.multi_reduction <maximumf>, %21, %cst_17 [1] : vector<24x24xf32> to vector<24xf32>
    %23 = vector.shape_cast %22 : vector<24xf32> to vector<24x1xf32>
    %24 = vector.broadcast %23 : vector<24x1xf32> to vector<24x24xf32>
    %25 = arith.subf %21, %24 : vector<24x24xf32>
    %26 = math.exp %25 : vector<24x24xf32>
    %cst_18 = arith.constant dense<0.000000e+00> : vector<24xf32>
    %27 = vector.multi_reduction <add>, %26, %cst_18 [1] : vector<24x24xf32> to vector<24xf32>
    %28 = vector.shape_cast %27 : vector<24xf32> to vector<24x1xf32>
    %29 = tpu.reciprocal %28 : vector<24x1xf32> -> vector<24x1xf32>
    %30 = vector.broadcast %29 : vector<24x1xf32> to vector<24x24xf32>
    %31 = arith.mulf %26, %30 : vector<24x24xf32>
    %cst_19 = arith.constant dense<0.000000e+00> : vector<24x8xf32>
    %32 = tpu.matmul %31, %19, %cst_19 {dimension_numbers = #tpu.dot_dimension_numbers<[1], [0], [0], [1], [0, 0, 1, 1], [], []>} : vector<24x24xf32>, vector<24x8xf32>, vector<24x8xf32> -> vector<24x8xf32>
    %33 = vector.extract_strided_slice %15 {offsets = [0, 24], sizes = [24, 24], strides = [1, 1]} : vector<24x96xf32> to vector<24x24xf32>
    %34 = vector.extract_strided_slice %33 {offsets = [0, 0], sizes = [24, 8], strides = [1, 1]} : vector<24x24xf32> to vector<24x8xf32>
    %35 = vector.extract_strided_slice %33 {offsets = [0, 8], sizes = [24, 8], strides = [1, 1]} : vector<24x24xf32> to vector<24x8xf32>
    %36 = vector.extract_strided_slice %33 {offsets = [0, 16], sizes = [24, 8], strides = [1, 1]} : vector<24x24xf32> to vector<24x8xf32>
    %cst_20 = arith.constant dense<0.000000e+00> : vector<24x24xf32>
    %37 = tpu.matmul %34, %35, %cst_20 {dimension_numbers = #tpu.dot_dimension_numbers<[1], [1], [0], [0], [0, 0, 1, 0], [], []>} : vector<24x8xf32>, vector<24x8xf32>, vector<24x24xf32> -> vector<24x24xf32>
    %38 = arith.addf %37, %3 : vector<24x24xf32>
    %cst_21 = arith.constant dense<0xFF800000> : vector<24xf32>
    %39 = vector.multi_reduction <maximumf>, %38, %cst_21 [1] : vector<24x24xf32> to vector<24xf32>
    %40 = vector.shape_cast %39 : vector<24xf32> to vector<24x1xf32>
    %41 = vector.broadcast %40 : vector<24x1xf32> to vector<24x24xf32>
    %42 = arith.subf %38, %41 : vector<24x24xf32>
    %43 = math.exp %42 : vector<24x24xf32>
    %cst_22 = arith.constant dense<0.000000e+00> : vector<24xf32>
    %44 = vector.multi_reduction <add>, %43, %cst_22 [1] : vector<24x24xf32> to vector<24xf32>
    %45 = vector.shape_cast %44 : vector<24xf32> to vector<24x1xf32>
    %46 = tpu.reciprocal %45 : vector<24x1xf32> -> vector<24x1xf32>
    %47 = vector.broadcast %46 : vector<24x1xf32> to vector<24x24xf32>
    %48 = arith.mulf %43, %47 : vector<24x24xf32>
    %cst_23 = arith.constant dense<0.000000e+00> : vector<24x8xf32>
    %49 = tpu.matmul %48, %36, %cst_23 {dimension_numbers = #tpu.dot_dimension_numbers<[1], [0], [0], [1], [0, 0, 1, 1], [], []>} : vector<24x24xf32>, vector<24x8xf32>, vector<24x8xf32> -> vector<24x8xf32>
    %50 = vector.extract_strided_slice %15 {offsets = [0, 48], sizes = [24, 24], strides = [1, 1]} : vector<24x96xf32> to vector<24x24xf32>
    %51 = vector.extract_strided_slice %50 {offsets = [0, 0], sizes = [24, 8], strides = [1, 1]} : vector<24x24xf32> to vector<24x8xf32>
    %52 = vector.extract_strided_slice %50 {offsets = [0, 8], sizes = [24, 8], strides = [1, 1]} : vector<24x24xf32> to vector<24x8xf32>
    %53 = vector.extract_strided_slice %50 {offsets = [0, 16], sizes = [24, 8], strides = [1, 1]} : vector<24x24xf32> to vector<24x8xf32>
    %cst_24 = arith.constant dense<0.000000e+00> : vector<24x24xf32>
    %54 = tpu.matmul %51, %52, %cst_24 {dimension_numbers = #tpu.dot_dimension_numbers<[1], [1], [0], [0], [0, 0, 1, 0], [], []>} : vector<24x8xf32>, vector<24x8xf32>, vector<24x24xf32> -> vector<24x24xf32>
    %55 = arith.addf %54, %3 : vector<24x24xf32>
    %cst_25 = arith.constant dense<0xFF800000> : vector<24xf32>
    %56 = vector.multi_reduction <maximumf>, %55, %cst_25 [1] : vector<24x24xf32> to vector<24xf32>
    %57 = vector.shape_cast %56 : vector<24xf32> to vector<24x1xf32>
    %58 = vector.broadcast %57 : vector<24x1xf32> to vector<24x24xf32>
    %59 = arith.subf %55, %58 : vector<24x24xf32>
    %60 = math.exp %59 : vector<24x24xf32>
    %cst_26 = arith.constant dense<0.000000e+00> : vector<24xf32>
    %61 = vector.multi_reduction <add>, %60, %cst_26 [1] : vector<24x24xf32> to vector<24xf32>
    %62 = vector.shape_cast %61 : vector<24xf32> to vector<24x1xf32>
    %63 = tpu.reciprocal %62 : vector<24x1xf32> -> vector<24x1xf32>
    %64 = vector.broadcast %63 : vector<24x1xf32> to vector<24x24xf32>
    %65 = arith.mulf %60, %64 : vector<24x24xf32>
    %cst_27 = arith.constant dense<0.000000e+00> : vector<24x8xf32>
    %66 = tpu.matmul %65, %53, %cst_27 {dimension_numbers = #tpu.dot_dimension_numbers<[1], [0], [0], [1], [0, 0, 1, 1], [], []>} : vector<24x24xf32>, vector<24x8xf32>, vector<24x8xf32> -> vector<24x8xf32>
    %67 = vector.extract_strided_slice %15 {offsets = [0, 72], sizes = [24, 24], strides = [1, 1]} : vector<24x96xf32> to vector<24x24xf32>
    %68 = vector.extract_strided_slice %67 {offsets = [0, 0], sizes = [24, 8], strides = [1, 1]} : vector<24x24xf32> to vector<24x8xf32>
    %69 = vector.extract_strided_slice %67 {offsets = [0, 8], sizes = [24, 8], strides = [1, 1]} : vector<24x24xf32> to vector<24x8xf32>
    %70 = vector.extract_strided_slice %67 {offsets = [0, 16], sizes = [24, 8], strides = [1, 1]} : vector<24x24xf32> to vector<24x8xf32>
    %cst_28 = arith.constant dense<0.000000e+00> : vector<24x24xf32>
    %71 = tpu.matmul %68, %69, %cst_28 {dimension_numbers = #tpu.dot_dimension_numbers<[1], [1], [0], [0], [0, 0, 1, 0], [], []>} : vector<24x8xf32>, vector<24x8xf32>, vector<24x24xf32> -> vector<24x24xf32>
    %72 = arith.addf %71, %3 : vector<24x24xf32>
    %cst_29 = arith.constant dense<0xFF800000> : vector<24xf32>
    %73 = vector.multi_reduction <maximumf>, %72, %cst_29 [1] : vector<24x24xf32> to vector<24xf32>
    %74 = vector.shape_cast %73 : vector<24xf32> to vector<24x1xf32>
    %75 = vector.broadcast %74 : vector<24x1xf32> to vector<24x24xf32>
    %76 = arith.subf %72, %75 : vector<24x24xf32>
    %77 = math.exp %76 : vector<24x24xf32>
    %cst_30 = arith.constant dense<0.000000e+00> : vector<24xf32>
    %78 = vector.multi_reduction <add>, %77, %cst_30 [1] : vector<24x24xf32> to vector<24xf32>
    %79 = vector.shape_cast %78 : vector<24xf32> to vector<24x1xf32>
    %80 = tpu.reciprocal %79 : vector<24x1xf32> -> vector<24x1xf32>
    %81 = vector.broadcast %80 : vector<24x1xf32> to vector<24x24xf32>
    %82 = arith.mulf %77, %81 : vector<24x24xf32>
    %cst_31 = arith.constant dense<0.000000e+00> : vector<24x8xf32>
    %83 = tpu.matmul %82, %70, %cst_31 {dimension_numbers = #tpu.dot_dimension_numbers<[1], [0], [0], [1], [0, 0, 1, 1], [], []>} : vector<24x24xf32>, vector<24x8xf32>, vector<24x8xf32> -> vector<24x8xf32>
    %84 = tpu.concatenate %32, %49, %66, %83 in 1 : vector<24x8xf32>, vector<24x8xf32>, vector<24x8xf32>, vector<24x8xf32> -> vector<24x32xf32>
    %c0_32 = arith.constant 0 : index
    %c0_33 = arith.constant 0 : index
    %c0_34 = arith.constant 0 : index
    %85 = vector.load %arg7[%c0_32, %c0_33, %c0_34] : memref<2x32x32xf32, #tpu.memory_space<vmem>>, vector<1x32x32xf32>
    %86 = vector.shape_cast %85 : vector<1x32x32xf32> to vector<32x32xf32>
    %cst_35 = arith.constant dense<0.000000e+00> : vector<24x32xf32>
    %87 = tpu.matmul %84, %86, %cst_35 {dimension_numbers = #tpu.dot_dimension_numbers<[1], [0], [0], [1], [0, 0, 1, 1], [], []>} : vector<24x32xf32>, vector<32x32xf32>, vector<24x32xf32> -> vector<24x32xf32>
    %c0_36 = arith.constant 0 : index
    %c0_37 = arith.constant 0 : index
    %c0_38 = arith.constant 0 : index
    %88 = vector.load %arg8[%c0_36, %c0_37, %c0_38] : memref<2x1x32xf32, #tpu.memory_space<vmem>>, vector<1x1x32xf32>
    %89 = vector.shape_cast %88 : vector<1x1x32xf32> to vector<1x32xf32>
    %90 = vector.broadcast %89 : vector<1x32xf32> to vector<24x32xf32>
    %91 = arith.addf %87, %90 : vector<24x32xf32>
    %92 = arith.addf %91, %8 : vector<24x32xf32>
    %c0_39 = arith.constant 0 : index
    %c0_40 = arith.constant 0 : index
    %c0_41 = arith.constant 0 : index
    %93 = vector.load %arg9[%c0_39, %c0_40, %c0_41] : memref<2x1x32xf32, #tpu.memory_space<vmem>>, vector<1x1x32xf32>
    %94 = vector.shape_cast %93 : vector<1x1x32xf32> to vector<1x32xf32>
    %c0_42 = arith.constant 0 : index
    %c0_43 = arith.constant 0 : index
    %c0_44 = arith.constant 0 : index
    %95 = vector.load %arg10[%c0_42, %c0_43, %c0_44] : memref<2x1x32xf32, #tpu.memory_space<vmem>>, vector<1x1x32xf32>
    %96 = vector.shape_cast %95 : vector<1x1x32xf32> to vector<1x32xf32>
    %cst_45 = arith.constant dense<0.000000e+00> : vector<24xf32>
    %97 = vector.multi_reduction <add>, %92, %cst_45 [1] : vector<24x32xf32> to vector<24xf32>
    %98 = vector.shape_cast %97 : vector<24xf32> to vector<24x1xf32>
    %cst_46 = arith.constant 3.200000e+01 : f32
    %99 = vector.broadcast %cst_46 : f32 to vector<24x1xf32>
    %100 = arith.divf %98, %99 : vector<24x1xf32>
    %101 = vector.broadcast %100 : vector<24x1xf32> to vector<24x32xf32>
    %102 = arith.subf %92, %101 : vector<24x32xf32>
    %103 = arith.mulf %102, %102 : vector<24x32xf32>
    %cst_47 = arith.constant dense<0.000000e+00> : vector<24xf32>
    %104 = vector.multi_reduction <add>, %103, %cst_47 [1] : vector<24x32xf32> to vector<24xf32>
    %105 = vector.shape_cast %104 : vector<24xf32> to vector<24x1xf32>
    %cst_48 = arith.constant 3.200000e+01 : f32
    %106 = vector.broadcast %cst_48 : f32 to vector<24x1xf32>
    %107 = arith.divf %105, %106 : vector<24x1xf32>
    %cst_49 = arith.constant 9.99999974E-6 : f32
    %108 = vector.broadcast %cst_49 : f32 to vector<24x1xf32>
    %109 = arith.addf %107, %108 : vector<24x1xf32>
    %110 = math.rsqrt %109 : vector<24x1xf32>
    %111 = vector.broadcast %110 : vector<24x1xf32> to vector<24x32xf32>
    %112 = arith.mulf %102, %111 : vector<24x32xf32>
    %113 = vector.broadcast %94 : vector<1x32xf32> to vector<24x32xf32>
    %114 = arith.mulf %112, %113 : vector<24x32xf32>
    %115 = vector.broadcast %96 : vector<1x32xf32> to vector<24x32xf32>
    %116 = arith.addf %114, %115 : vector<24x32xf32>
    %c0_50 = arith.constant 0 : index
    %c0_51 = arith.constant 0 : index
    %c0_52 = arith.constant 0 : index
    %117 = vector.load %arg11[%c0_50, %c0_51, %c0_52] : memref<2x32x32xf32, #tpu.memory_space<vmem>>, vector<1x32x32xf32>
    %118 = vector.shape_cast %117 : vector<1x32x32xf32> to vector<32x32xf32>
    %cst_53 = arith.constant dense<0.000000e+00> : vector<24x32xf32>
    %119 = tpu.matmul %116, %118, %cst_53 {dimension_numbers = #tpu.dot_dimension_numbers<[1], [0], [0], [1], [0, 0, 1, 1], [], []>} : vector<24x32xf32>, vector<32x32xf32>, vector<24x32xf32> -> vector<24x32xf32>
    %c0_54 = arith.constant 0 : index
    %c0_55 = arith.constant 0 : index
    %c0_56 = arith.constant 0 : index
    %120 = vector.load %arg12[%c0_54, %c0_55, %c0_56] : memref<2x1x32xf32, #tpu.memory_space<vmem>>, vector<1x1x32xf32>
    %121 = vector.shape_cast %120 : vector<1x1x32xf32> to vector<1x32xf32>
    %122 = vector.broadcast %121 : vector<1x32xf32> to vector<24x32xf32>
    %123 = arith.addf %119, %122 : vector<24x32xf32>
    %cst_57 = arith.constant 0.000000e+00 : f32
    %124 = vector.broadcast %cst_57 : f32 to vector<24x32xf32>
    %125 = arith.maximumf %123, %124 : vector<24x32xf32>
    %c0_58 = arith.constant 0 : index
    %c0_59 = arith.constant 0 : index
    %c0_60 = arith.constant 0 : index
    %126 = vector.load %arg13[%c0_58, %c0_59, %c0_60] : memref<2x32x32xf32, #tpu.memory_space<vmem>>, vector<1x32x32xf32>
    %127 = vector.shape_cast %126 : vector<1x32x32xf32> to vector<32x32xf32>
    %cst_61 = arith.constant dense<0.000000e+00> : vector<24x32xf32>
    %128 = tpu.matmul %125, %127, %cst_61 {dimension_numbers = #tpu.dot_dimension_numbers<[1], [0], [0], [1], [0, 0, 1, 1], [], []>} : vector<24x32xf32>, vector<32x32xf32>, vector<24x32xf32> -> vector<24x32xf32>
    %c0_62 = arith.constant 0 : index
    %c0_63 = arith.constant 0 : index
    %c0_64 = arith.constant 0 : index
    %129 = vector.load %arg14[%c0_62, %c0_63, %c0_64] : memref<2x1x32xf32, #tpu.memory_space<vmem>>, vector<1x1x32xf32>
    %130 = vector.shape_cast %129 : vector<1x1x32xf32> to vector<1x32xf32>
    %131 = vector.broadcast %130 : vector<1x32xf32> to vector<24x32xf32>
    %132 = arith.addf %128, %131 : vector<24x32xf32>
    %133 = arith.addf %132, %116 : vector<24x32xf32>
    %c0_65 = arith.constant 0 : index
    %c0_66 = arith.constant 0 : index
    %c0_67 = arith.constant 0 : index
    %134 = vector.load %arg15[%c0_65, %c0_66, %c0_67] : memref<2x1x32xf32, #tpu.memory_space<vmem>>, vector<1x1x32xf32>
    %135 = vector.shape_cast %134 : vector<1x1x32xf32> to vector<1x32xf32>
    %c0_68 = arith.constant 0 : index
    %c0_69 = arith.constant 0 : index
    %c0_70 = arith.constant 0 : index
    %136 = vector.load %arg16[%c0_68, %c0_69, %c0_70] : memref<2x1x32xf32, #tpu.memory_space<vmem>>, vector<1x1x32xf32>
    %137 = vector.shape_cast %136 : vector<1x1x32xf32> to vector<1x32xf32>
    %cst_71 = arith.constant dense<0.000000e+00> : vector<24xf32>
    %138 = vector.multi_reduction <add>, %133, %cst_71 [1] : vector<24x32xf32> to vector<24xf32>
    %139 = vector.shape_cast %138 : vector<24xf32> to vector<24x1xf32>
    %cst_72 = arith.constant 3.200000e+01 : f32
    %140 = vector.broadcast %cst_72 : f32 to vector<24x1xf32>
    %141 = arith.divf %139, %140 : vector<24x1xf32>
    %142 = vector.broadcast %141 : vector<24x1xf32> to vector<24x32xf32>
    %143 = arith.subf %133, %142 : vector<24x32xf32>
    %144 = arith.mulf %143, %143 : vector<24x32xf32>
    %cst_73 = arith.constant dense<0.000000e+00> : vector<24xf32>
    %145 = vector.multi_reduction <add>, %144, %cst_73 [1] : vector<24x32xf32> to vector<24xf32>
    %146 = vector.shape_cast %145 : vector<24xf32> to vector<24x1xf32>
    %cst_74 = arith.constant 3.200000e+01 : f32
    %147 = vector.broadcast %cst_74 : f32 to vector<24x1xf32>
    %148 = arith.divf %146, %147 : vector<24x1xf32>
    %cst_75 = arith.constant 9.99999974E-6 : f32
    %149 = vector.broadcast %cst_75 : f32 to vector<24x1xf32>
    %150 = arith.addf %148, %149 : vector<24x1xf32>
    %151 = math.rsqrt %150 : vector<24x1xf32>
    %152 = vector.broadcast %151 : vector<24x1xf32> to vector<24x32xf32>
    %153 = arith.mulf %143, %152 : vector<24x32xf32>
    %154 = vector.broadcast %135 : vector<1x32xf32> to vector<24x32xf32>
    %155 = arith.mulf %153, %154 : vector<24x32xf32>
    %156 = vector.broadcast %137 : vector<1x32xf32> to vector<24x32xf32>
    %157 = arith.addf %155, %156 : vector<24x32xf32>
    %c1 = arith.constant 1 : index
    %c0_76 = arith.constant 0 : index
    %c0_77 = arith.constant 0 : index
    %158 = vector.load %arg5[%c1, %c0_76, %c0_77] : memref<2x32x96xf32, #tpu.memory_space<vmem>>, vector<1x32x96xf32>
    %159 = vector.shape_cast %158 : vector<1x32x96xf32> to vector<32x96xf32>
    %cst_78 = arith.constant dense<0.000000e+00> : vector<24x96xf32>
    %160 = tpu.matmul %157, %159, %cst_78 {dimension_numbers = #tpu.dot_dimension_numbers<[1], [0], [0], [1], [0, 0, 1, 1], [], []>} : vector<24x32xf32>, vector<32x96xf32>, vector<24x96xf32> -> vector<24x96xf32>
    %c1_79 = arith.constant 1 : index
    %c0_80 = arith.constant 0 : index
    %c0_81 = arith.constant 0 : index
    %161 = vector.load %arg6[%c1_79, %c0_80, %c0_81] : memref<2x1x96xf32, #tpu.memory_space<vmem>>, vector<1x1x96xf32>
    %162 = vector.shape_cast %161 : vector<1x1x96xf32> to vector<1x96xf32>
    %163 = vector.broadcast %162 : vector<1x96xf32> to vector<24x96xf32>
    %164 = arith.addf %160, %163 : vector<24x96xf32>
    %165 = vector.extract_strided_slice %164 {offsets = [0, 0], sizes = [24, 24], strides = [1, 1]} : vector<24x96xf32> to vector<24x24xf32>
    %166 = vector.extract_strided_slice %165 {offsets = [0, 0], sizes = [24, 8], strides = [1, 1]} : vector<24x24xf32> to vector<24x8xf32>
    %167 = vector.extract_strided_slice %165 {offsets = [0, 8], sizes = [24, 8], strides = [1, 1]} : vector<24x24xf32> to vector<24x8xf32>
    %168 = vector.extract_strided_slice %165 {offsets = [0, 16], sizes = [24, 8], strides = [1, 1]} : vector<24x24xf32> to vector<24x8xf32>
    %cst_82 = arith.constant dense<0.000000e+00> : vector<24x24xf32>
    %169 = tpu.matmul %166, %167, %cst_82 {dimension_numbers = #tpu.dot_dimension_numbers<[1], [1], [0], [0], [0, 0, 1, 0], [], []>} : vector<24x8xf32>, vector<24x8xf32>, vector<24x24xf32> -> vector<24x24xf32>
    %170 = arith.addf %169, %3 : vector<24x24xf32>
    %cst_83 = arith.constant dense<0xFF800000> : vector<24xf32>
    %171 = vector.multi_reduction <maximumf>, %170, %cst_83 [1] : vector<24x24xf32> to vector<24xf32>
    %172 = vector.shape_cast %171 : vector<24xf32> to vector<24x1xf32>
    %173 = vector.broadcast %172 : vector<24x1xf32> to vector<24x24xf32>
    %174 = arith.subf %170, %173 : vector<24x24xf32>
    %175 = math.exp %174 : vector<24x24xf32>
    %cst_84 = arith.constant dense<0.000000e+00> : vector<24xf32>
    %176 = vector.multi_reduction <add>, %175, %cst_84 [1] : vector<24x24xf32> to vector<24xf32>
    %177 = vector.shape_cast %176 : vector<24xf32> to vector<24x1xf32>
    %178 = tpu.reciprocal %177 : vector<24x1xf32> -> vector<24x1xf32>
    %179 = vector.broadcast %178 : vector<24x1xf32> to vector<24x24xf32>
    %180 = arith.mulf %175, %179 : vector<24x24xf32>
    %cst_85 = arith.constant dense<0.000000e+00> : vector<24x8xf32>
    %181 = tpu.matmul %180, %168, %cst_85 {dimension_numbers = #tpu.dot_dimension_numbers<[1], [0], [0], [1], [0, 0, 1, 1], [], []>} : vector<24x24xf32>, vector<24x8xf32>, vector<24x8xf32> -> vector<24x8xf32>
    %182 = vector.extract_strided_slice %164 {offsets = [0, 24], sizes = [24, 24], strides = [1, 1]} : vector<24x96xf32> to vector<24x24xf32>
    %183 = vector.extract_strided_slice %182 {offsets = [0, 0], sizes = [24, 8], strides = [1, 1]} : vector<24x24xf32> to vector<24x8xf32>
    %184 = vector.extract_strided_slice %182 {offsets = [0, 8], sizes = [24, 8], strides = [1, 1]} : vector<24x24xf32> to vector<24x8xf32>
    %185 = vector.extract_strided_slice %182 {offsets = [0, 16], sizes = [24, 8], strides = [1, 1]} : vector<24x24xf32> to vector<24x8xf32>
    %cst_86 = arith.constant dense<0.000000e+00> : vector<24x24xf32>
    %186 = tpu.matmul %183, %184, %cst_86 {dimension_numbers = #tpu.dot_dimension_numbers<[1], [1], [0], [0], [0, 0, 1, 0], [], []>} : vector<24x8xf32>, vector<24x8xf32>, vector<24x24xf32> -> vector<24x24xf32>
    %187 = arith.addf %186, %3 : vector<24x24xf32>
    %cst_87 = arith.constant dense<0xFF800000> : vector<24xf32>
    %188 = vector.multi_reduction <maximumf>, %187, %cst_87 [1] : vector<24x24xf32> to vector<24xf32>
    %189 = vector.shape_cast %188 : vector<24xf32> to vector<24x1xf32>
    %190 = vector.broadcast %189 : vector<24x1xf32> to vector<24x24xf32>
    %191 = arith.subf %187, %190 : vector<24x24xf32>
    %192 = math.exp %191 : vector<24x24xf32>
    %cst_88 = arith.constant dense<0.000000e+00> : vector<24xf32>
    %193 = vector.multi_reduction <add>, %192, %cst_88 [1] : vector<24x24xf32> to vector<24xf32>
    %194 = vector.shape_cast %193 : vector<24xf32> to vector<24x1xf32>
    %195 = tpu.reciprocal %194 : vector<24x1xf32> -> vector<24x1xf32>
    %196 = vector.broadcast %195 : vector<24x1xf32> to vector<24x24xf32>
    %197 = arith.mulf %192, %196 : vector<24x24xf32>
    %cst_89 = arith.constant dense<0.000000e+00> : vector<24x8xf32>
    %198 = tpu.matmul %197, %185, %cst_89 {dimension_numbers = #tpu.dot_dimension_numbers<[1], [0], [0], [1], [0, 0, 1, 1], [], []>} : vector<24x24xf32>, vector<24x8xf32>, vector<24x8xf32> -> vector<24x8xf32>
    %199 = vector.extract_strided_slice %164 {offsets = [0, 48], sizes = [24, 24], strides = [1, 1]} : vector<24x96xf32> to vector<24x24xf32>
    %200 = vector.extract_strided_slice %199 {offsets = [0, 0], sizes = [24, 8], strides = [1, 1]} : vector<24x24xf32> to vector<24x8xf32>
    %201 = vector.extract_strided_slice %199 {offsets = [0, 8], sizes = [24, 8], strides = [1, 1]} : vector<24x24xf32> to vector<24x8xf32>
    %202 = vector.extract_strided_slice %199 {offsets = [0, 16], sizes = [24, 8], strides = [1, 1]} : vector<24x24xf32> to vector<24x8xf32>
    %cst_90 = arith.constant dense<0.000000e+00> : vector<24x24xf32>
    %203 = tpu.matmul %200, %201, %cst_90 {dimension_numbers = #tpu.dot_dimension_numbers<[1], [1], [0], [0], [0, 0, 1, 0], [], []>} : vector<24x8xf32>, vector<24x8xf32>, vector<24x24xf32> -> vector<24x24xf32>
    %204 = arith.addf %203, %3 : vector<24x24xf32>
    %cst_91 = arith.constant dense<0xFF800000> : vector<24xf32>
    %205 = vector.multi_reduction <maximumf>, %204, %cst_91 [1] : vector<24x24xf32> to vector<24xf32>
    %206 = vector.shape_cast %205 : vector<24xf32> to vector<24x1xf32>
    %207 = vector.broadcast %206 : vector<24x1xf32> to vector<24x24xf32>
    %208 = arith.subf %204, %207 : vector<24x24xf32>
    %209 = math.exp %208 : vector<24x24xf32>
    %cst_92 = arith.constant dense<0.000000e+00> : vector<24xf32>
    %210 = vector.multi_reduction <add>, %209, %cst_92 [1] : vector<24x24xf32> to vector<24xf32>
    %211 = vector.shape_cast %210 : vector<24xf32> to vector<24x1xf32>
    %212 = tpu.reciprocal %211 : vector<24x1xf32> -> vector<24x1xf32>
    %213 = vector.broadcast %212 : vector<24x1xf32> to vector<24x24xf32>
    %214 = arith.mulf %209, %213 : vector<24x24xf32>
    %cst_93 = arith.constant dense<0.000000e+00> : vector<24x8xf32>
    %215 = tpu.matmul %214, %202, %cst_93 {dimension_numbers = #tpu.dot_dimension_numbers<[1], [0], [0], [1], [0, 0, 1, 1], [], []>} : vector<24x24xf32>, vector<24x8xf32>, vector<24x8xf32> -> vector<24x8xf32>
    %216 = vector.extract_strided_slice %164 {offsets = [0, 72], sizes = [24, 24], strides = [1, 1]} : vector<24x96xf32> to vector<24x24xf32>
    %217 = vector.extract_strided_slice %216 {offsets = [0, 0], sizes = [24, 8], strides = [1, 1]} : vector<24x24xf32> to vector<24x8xf32>
    %218 = vector.extract_strided_slice %216 {offsets = [0, 8], sizes = [24, 8], strides = [1, 1]} : vector<24x24xf32> to vector<24x8xf32>
    %219 = vector.extract_strided_slice %216 {offsets = [0, 16], sizes = [24, 8], strides = [1, 1]} : vector<24x24xf32> to vector<24x8xf32>
    %cst_94 = arith.constant dense<0.000000e+00> : vector<24x24xf32>
    %220 = tpu.matmul %217, %218, %cst_94 {dimension_numbers = #tpu.dot_dimension_numbers<[1], [1], [0], [0], [0, 0, 1, 0], [], []>} : vector<24x8xf32>, vector<24x8xf32>, vector<24x24xf32> -> vector<24x24xf32>
    %221 = arith.addf %220, %3 : vector<24x24xf32>
    %cst_95 = arith.constant dense<0xFF800000> : vector<24xf32>
    %222 = vector.multi_reduction <maximumf>, %221, %cst_95 [1] : vector<24x24xf32> to vector<24xf32>
    %223 = vector.shape_cast %222 : vector<24xf32> to vector<24x1xf32>
    %224 = vector.broadcast %223 : vector<24x1xf32> to vector<24x24xf32>
    %225 = arith.subf %221, %224 : vector<24x24xf32>
    %226 = math.exp %225 : vector<24x24xf32>
    %cst_96 = arith.constant dense<0.000000e+00> : vector<24xf32>
    %227 = vector.multi_reduction <add>, %226, %cst_96 [1] : vector<24x24xf32> to vector<24xf32>
    %228 = vector.shape_cast %227 : vector<24xf32> to vector<24x1xf32>
    %229 = tpu.reciprocal %228 : vector<24x1xf32> -> vector<24x1xf32>
    %230 = vector.broadcast %229 : vector<24x1xf32> to vector<24x24xf32>
    %231 = arith.mulf %226, %230 : vector<24x24xf32>
    %cst_97 = arith.constant dense<0.000000e+00> : vector<24x8xf32>
    %232 = tpu.matmul %231, %219, %cst_97 {dimension_numbers = #tpu.dot_dimension_numbers<[1], [0], [0], [1], [0, 0, 1, 1], [], []>} : vector<24x24xf32>, vector<24x8xf32>, vector<24x8xf32> -> vector<24x8xf32>
    %233 = tpu.concatenate %181, %198, %215, %232 in 1 : vector<24x8xf32>, vector<24x8xf32>, vector<24x8xf32>, vector<24x8xf32> -> vector<24x32xf32>
    %c1_98 = arith.constant 1 : index
    %c0_99 = arith.constant 0 : index
    %c0_100 = arith.constant 0 : index
    %234 = vector.load %arg7[%c1_98, %c0_99, %c0_100] : memref<2x32x32xf32, #tpu.memory_space<vmem>>, vector<1x32x32xf32>
    %235 = vector.shape_cast %234 : vector<1x32x32xf32> to vector<32x32xf32>
    %cst_101 = arith.constant dense<0.000000e+00> : vector<24x32xf32>
    %236 = tpu.matmul %233, %235, %cst_101 {dimension_numbers = #tpu.dot_dimension_numbers<[1], [0], [0], [1], [0, 0, 1, 1], [], []>} : vector<24x32xf32>, vector<32x32xf32>, vector<24x32xf32> -> vector<24x32xf32>
    %c1_102 = arith.constant 1 : index
    %c0_103 = arith.constant 0 : index
    %c0_104 = arith.constant 0 : index
    %237 = vector.load %arg8[%c1_102, %c0_103, %c0_104] : memref<2x1x32xf32, #tpu.memory_space<vmem>>, vector<1x1x32xf32>
    %238 = vector.shape_cast %237 : vector<1x1x32xf32> to vector<1x32xf32>
    %239 = vector.broadcast %238 : vector<1x32xf32> to vector<24x32xf32>
    %240 = arith.addf %236, %239 : vector<24x32xf32>
    %241 = arith.addf %240, %157 : vector<24x32xf32>
    %c1_105 = arith.constant 1 : index
    %c0_106 = arith.constant 0 : index
    %c0_107 = arith.constant 0 : index
    %242 = vector.load %arg9[%c1_105, %c0_106, %c0_107] : memref<2x1x32xf32, #tpu.memory_space<vmem>>, vector<1x1x32xf32>
    %243 = vector.shape_cast %242 : vector<1x1x32xf32> to vector<1x32xf32>
    %c1_108 = arith.constant 1 : index
    %c0_109 = arith.constant 0 : index
    %c0_110 = arith.constant 0 : index
    %244 = vector.load %arg10[%c1_108, %c0_109, %c0_110] : memref<2x1x32xf32, #tpu.memory_space<vmem>>, vector<1x1x32xf32>
    %245 = vector.shape_cast %244 : vector<1x1x32xf32> to vector<1x32xf32>
    %cst_111 = arith.constant dense<0.000000e+00> : vector<24xf32>
    %246 = vector.multi_reduction <add>, %241, %cst_111 [1] : vector<24x32xf32> to vector<24xf32>
    %247 = vector.shape_cast %246 : vector<24xf32> to vector<24x1xf32>
    %cst_112 = arith.constant 3.200000e+01 : f32
    %248 = vector.broadcast %cst_112 : f32 to vector<24x1xf32>
    %249 = arith.divf %247, %248 : vector<24x1xf32>
    %250 = vector.broadcast %249 : vector<24x1xf32> to vector<24x32xf32>
    %251 = arith.subf %241, %250 : vector<24x32xf32>
    %252 = arith.mulf %251, %251 : vector<24x32xf32>
    %cst_113 = arith.constant dense<0.000000e+00> : vector<24xf32>
    %253 = vector.multi_reduction <add>, %252, %cst_113 [1] : vector<24x32xf32> to vector<24xf32>
    %254 = vector.shape_cast %253 : vector<24xf32> to vector<24x1xf32>
    %cst_114 = arith.constant 3.200000e+01 : f32
    %255 = vector.broadcast %cst_114 : f32 to vector<24x1xf32>
    %256 = arith.divf %254, %255 : vector<24x1xf32>
    %cst_115 = arith.constant 9.99999974E-6 : f32
    %257 = vector.broadcast %cst_115 : f32 to vector<24x1xf32>
    %258 = arith.addf %256, %257 : vector<24x1xf32>
    %259 = math.rsqrt %258 : vector<24x1xf32>
    %260 = vector.broadcast %259 : vector<24x1xf32> to vector<24x32xf32>
    %261 = arith.mulf %251, %260 : vector<24x32xf32>
    %262 = vector.broadcast %243 : vector<1x32xf32> to vector<24x32xf32>
    %263 = arith.mulf %261, %262 : vector<24x32xf32>
    %264 = vector.broadcast %245 : vector<1x32xf32> to vector<24x32xf32>
    %265 = arith.addf %263, %264 : vector<24x32xf32>
    %c1_116 = arith.constant 1 : index
    %c0_117 = arith.constant 0 : index
    %c0_118 = arith.constant 0 : index
    %266 = vector.load %arg11[%c1_116, %c0_117, %c0_118] : memref<2x32x32xf32, #tpu.memory_space<vmem>>, vector<1x32x32xf32>
    %267 = vector.shape_cast %266 : vector<1x32x32xf32> to vector<32x32xf32>
    %cst_119 = arith.constant dense<0.000000e+00> : vector<24x32xf32>
    %268 = tpu.matmul %265, %267, %cst_119 {dimension_numbers = #tpu.dot_dimension_numbers<[1], [0], [0], [1], [0, 0, 1, 1], [], []>} : vector<24x32xf32>, vector<32x32xf32>, vector<24x32xf32> -> vector<24x32xf32>
    %c1_120 = arith.constant 1 : index
    %c0_121 = arith.constant 0 : index
    %c0_122 = arith.constant 0 : index
    %269 = vector.load %arg12[%c1_120, %c0_121, %c0_122] : memref<2x1x32xf32, #tpu.memory_space<vmem>>, vector<1x1x32xf32>
    %270 = vector.shape_cast %269 : vector<1x1x32xf32> to vector<1x32xf32>
    %271 = vector.broadcast %270 : vector<1x32xf32> to vector<24x32xf32>
    %272 = arith.addf %268, %271 : vector<24x32xf32>
    %cst_123 = arith.constant 0.000000e+00 : f32
    %273 = vector.broadcast %cst_123 : f32 to vector<24x32xf32>
    %274 = arith.maximumf %272, %273 : vector<24x32xf32>
    %c1_124 = arith.constant 1 : index
    %c0_125 = arith.constant 0 : index
    %c0_126 = arith.constant 0 : index
    %275 = vector.load %arg13[%c1_124, %c0_125, %c0_126] : memref<2x32x32xf32, #tpu.memory_space<vmem>>, vector<1x32x32xf32>
    %276 = vector.shape_cast %275 : vector<1x32x32xf32> to vector<32x32xf32>
    %cst_127 = arith.constant dense<0.000000e+00> : vector<24x32xf32>
    %277 = tpu.matmul %274, %276, %cst_127 {dimension_numbers = #tpu.dot_dimension_numbers<[1], [0], [0], [1], [0, 0, 1, 1], [], []>} : vector<24x32xf32>, vector<32x32xf32>, vector<24x32xf32> -> vector<24x32xf32>
    %c1_128 = arith.constant 1 : index
    %c0_129 = arith.constant 0 : index
    %c0_130 = arith.constant 0 : index
    %278 = vector.load %arg14[%c1_128, %c0_129, %c0_130] : memref<2x1x32xf32, #tpu.memory_space<vmem>>, vector<1x1x32xf32>
    %279 = vector.shape_cast %278 : vector<1x1x32xf32> to vector<1x32xf32>
    %280 = vector.broadcast %279 : vector<1x32xf32> to vector<24x32xf32>
    %281 = arith.addf %277, %280 : vector<24x32xf32>
    %282 = arith.addf %281, %265 : vector<24x32xf32>
    %c1_131 = arith.constant 1 : index
    %c0_132 = arith.constant 0 : index
    %c0_133 = arith.constant 0 : index
    %283 = vector.load %arg15[%c1_131, %c0_132, %c0_133] : memref<2x1x32xf32, #tpu.memory_space<vmem>>, vector<1x1x32xf32>
    %284 = vector.shape_cast %283 : vector<1x1x32xf32> to vector<1x32xf32>
    %c1_134 = arith.constant 1 : index
    %c0_135 = arith.constant 0 : index
    %c0_136 = arith.constant 0 : index
    %285 = vector.load %arg16[%c1_134, %c0_135, %c0_136] : memref<2x1x32xf32, #tpu.memory_space<vmem>>, vector<1x1x32xf32>
    %286 = vector.shape_cast %285 : vector<1x1x32xf32> to vector<1x32xf32>
    %cst_137 = arith.constant dense<0.000000e+00> : vector<24xf32>
    %287 = vector.multi_reduction <add>, %282, %cst_137 [1] : vector<24x32xf32> to vector<24xf32>
    %288 = vector.shape_cast %287 : vector<24xf32> to vector<24x1xf32>
    %cst_138 = arith.constant 3.200000e+01 : f32
    %289 = vector.broadcast %cst_138 : f32 to vector<24x1xf32>
    %290 = arith.divf %288, %289 : vector<24x1xf32>
    %291 = vector.broadcast %290 : vector<24x1xf32> to vector<24x32xf32>
    %292 = arith.subf %282, %291 : vector<24x32xf32>
    %293 = arith.mulf %292, %292 : vector<24x32xf32>
    %cst_139 = arith.constant dense<0.000000e+00> : vector<24xf32>
    %294 = vector.multi_reduction <add>, %293, %cst_139 [1] : vector<24x32xf32> to vector<24xf32>
    %295 = vector.shape_cast %294 : vector<24xf32> to vector<24x1xf32>
    %cst_140 = arith.constant 3.200000e+01 : f32
    %296 = vector.broadcast %cst_140 : f32 to vector<24x1xf32>
    %297 = arith.divf %295, %296 : vector<24x1xf32>
    %cst_141 = arith.constant 9.99999974E-6 : f32
    %298 = vector.broadcast %cst_141 : f32 to vector<24x1xf32>
    %299 = arith.addf %297, %298 : vector<24x1xf32>
    %300 = math.rsqrt %299 : vector<24x1xf32>
    %301 = vector.broadcast %300 : vector<24x1xf32> to vector<24x32xf32>
    %302 = arith.mulf %292, %301 : vector<24x32xf32>
    %303 = vector.broadcast %284 : vector<1x32xf32> to vector<24x32xf32>
    %304 = arith.mulf %302, %303 : vector<24x32xf32>
    %305 = vector.broadcast %286 : vector<1x32xf32> to vector<24x32xf32>
    %306 = arith.addf %304, %305 : vector<24x32xf32>
    %c0_142 = arith.constant 0 : index
    %c0_143 = arith.constant 0 : index
    %307 = vector.load %arg17[%c0_142, %c0_143] : memref<32x128xf32, #tpu.memory_space<vmem>>, vector<32x128xf32>
    %cst_144 = arith.constant dense<0.000000e+00> : vector<24x128xf32>
    %308 = tpu.matmul %306, %307, %cst_144 {dimension_numbers = #tpu.dot_dimension_numbers<[1], [0], [0], [1], [0, 0, 1, 1], [], []>} : vector<24x32xf32>, vector<32x128xf32>, vector<24x128xf32> -> vector<24x128xf32>
    %c0_145 = arith.constant 0 : index
    %c0_146 = arith.constant 0 : index
    %309 = vector.load %arg18[%c0_145, %c0_146] : memref<1x128xf32, #tpu.memory_space<vmem>>, vector<1x128xf32>
    %310 = vector.broadcast %309 : vector<1x128xf32> to vector<24x128xf32>
    %311 = arith.addf %308, %310 : vector<24x128xf32>
    %c0_147 = arith.constant 0 : index
    %c0_148 = arith.constant 0 : index
    %c0_149 = arith.constant 0 : index
    %312 = vector.load %arg19[%c0_147, %c0_148, %c0_149] : memref<1x24x128xf32, #tpu.memory_space<vmem>>, vector<1x24x128xf32>
    %313 = vector.shape_cast %312 : vector<1x24x128xf32> to vector<24x128xf32>
    %314 = vector.shape_cast %311 : vector<24x128xf32> to vector<1x24x128xf32>
    tpu.vector_store %arg19[%c0_147, %c0_148, %c0_149], %314 {strides = array<i32>} : memref<1x24x128xf32, #tpu.memory_space<vmem>>, vector<1x24x128xf32>,
    return
  }
  func.func @transform_0(%arg0: i32) -> (i32, i32, i32) {
    %c0_i32 = arith.constant 0 : i32
    %c0_i32_0 = arith.constant 0 : i32
    %c0_i32_1 = arith.constant 0 : i32
    return %arg0, %c0_i32, %c0_i32_0 : i32, i32, i32
  }
  func.func @transform_1(%arg0: i32) -> (i32, i32, i32) {
    %c0_i32 = arith.constant 0 : i32
    %c0_i32_0 = arith.constant 0 : i32
    %c0_i32_1 = arith.constant 0 : i32
    return %arg0, %c0_i32, %c0_i32_0 : i32, i32, i32
  }
  func.func @transform_2(%arg0: i32) -> (i32, i32) {
    %c0_i32 = arith.constant 0 : i32
    %c0_i32_0 = arith.constant 0 : i32
    %c0_i32_1 = arith.constant 0 : i32
    return %c0_i32, %c0_i32_0 : i32, i32
  }
  func.func @transform_3(%arg0: i32) -> (i32, i32) {
    %c0_i32 = arith.constant 0 : i32
    %c0_i32_0 = arith.constant 0 : i32
    %c0_i32_1 = arith.constant 0 : i32
    return %c0_i32, %c0_i32_0 : i32, i32
  }
  func.func @transform_4(%arg0: i32) -> (i32, i32, i32) {
    %c0_i32 = arith.constant 0 : i32
    %c0_i32_0 = arith.constant 0 : i32
    %c0_i32_1 = arith.constant 0 : i32
    %c0_i32_2 = arith.constant 0 : i32
    return %c0_i32, %c0_i32_0, %c0_i32_1 : i32, i32, i32
  }
  func.func @transform_5(%arg0: i32) -> (i32, i32, i32) {
    %c0_i32 = arith.constant 0 : i32
    %c0_i32_0 = arith.constant 0 : i32
    %c0_i32_1 = arith.constant 0 : i32
    %c0_i32_2 = arith.constant 0 : i32
    return %c0_i32, %c0_i32_0, %c0_i32_1 : i32, i32, i32
  }
  func.func @transform_6(%arg0: i32) -> (i32, i32, i32) {
    %c0_i32 = arith.constant 0 : i32
    %c0_i32_0 = arith.constant 0 : i32
    %c0_i32_1 = arith.constant 0 : i32
    %c0_i32_2 = arith.constant 0 : i32
    return %c0_i32, %c0_i32_0, %c0_i32_1 : i32, i32, i32
  }
  func.func @transform_7(%arg0: i32) -> (i32, i32, i32) {
    %c0_i32 = arith.constant 0 : i32
    %c0_i32_0 = arith.constant 0 : i32
    %c0_i32_1 = arith.constant 0 : i32
    %c0_i32_2 = arith.constant 0 : i32
    return %c0_i32, %c0_i32_0, %c0_i32_1 : i32, i32, i32
  }
  func.func @transform_8(%arg0: i32) -> (i32, i32, i32) {
    %c0_i32 = arith.constant 0 : i32
    %c0_i32_0 = arith.constant 0 : i32
    %c0_i32_1 = arith.constant 0 : i32
    %c0_i32_2 = arith.constant 0 : i32
    return %c0_i32, %c0_i32_0, %c0_i32_1 : i32, i32, i32
  }
  func.func @transform_9(%arg0: i32) -> (i32, i32, i32) {
    %c0_i32 = arith.constant 0 : i32
    %c0_i32_0 = arith.constant 0 : i32
    %c0_i32_1 = arith.constant 0 : i32
    %c0_i32_2 = arith.constant 0 : i32
    return %c0_i32, %c0_i32_0, %c0_i32_1 : i32, i32, i32
  }
  func.func @transform_10(%arg0: i32) -> (i32, i32, i32) {
    %c0_i32 = arith.constant 0 : i32
    %c0_i32_0 = arith.constant 0 : i32
    %c0_i32_1 = arith.constant 0 : i32
    %c0_i32_2 = arith.constant 0 : i32
    return %c0_i32, %c0_i32_0, %c0_i32_1 : i32, i32, i32
  }
  func.func @transform_11(%arg0: i32) -> (i32, i32, i32) {
    %c0_i32 = arith.constant 0 : i32
    %c0_i32_0 = arith.constant 0 : i32
    %c0_i32_1 = arith.constant 0 : i32
    %c0_i32_2 = arith.constant 0 : i32
    return %c0_i32, %c0_i32_0, %c0_i32_1 : i32, i32, i32
  }
  func.func @transform_12(%arg0: i32) -> (i32, i32, i32) {
    %c0_i32 = arith.constant 0 : i32
    %c0_i32_0 = arith.constant 0 : i32
    %c0_i32_1 = arith.constant 0 : i32
    %c0_i32_2 = arith.constant 0 : i32
    return %c0_i32, %c0_i32_0, %c0_i32_1 : i32, i32, i32
  }
  func.func @transform_13(%arg0: i32) -> (i32, i32, i32) {
    %c0_i32 = arith.constant 0 : i32
    %c0_i32_0 = arith.constant 0 : i32
    %c0_i32_1 = arith.constant 0 : i32
    %c0_i32_2 = arith.constant 0 : i32
    return %c0_i32, %c0_i32_0, %c0_i32_1 : i32, i32, i32
  }
  func.func @transform_14(%arg0: i32) -> (i32, i32, i32) {
    %c0_i32 = arith.constant 0 : i32
    %c0_i32_0 = arith.constant 0 : i32
    %c0_i32_1 = arith.constant 0 : i32
    %c0_i32_2 = arith.constant 0 : i32
    return %c0_i32, %c0_i32_0, %c0_i32_1 : i32, i32, i32
  }
  func.func @transform_15(%arg0: i32) -> (i32, i32, i32) {
    %c0_i32 = arith.constant 0 : i32
    %c0_i32_0 = arith.constant 0 : i32
    %c0_i32_1 = arith.constant 0 : i32
    %c0_i32_2 = arith.constant 0 : i32
    return %c0_i32, %c0_i32_0, %c0_i32_1 : i32, i32, i32
  }
  func.func @transform_16(%arg0: i32) -> (i32, i32) {
    %c0_i32 = arith.constant 0 : i32
    %c0_i32_0 = arith.constant 0 : i32
    %c0_i32_1 = arith.constant 0 : i32
    return %c0_i32, %c0_i32_0 : i32, i32
  }
  func.func @transform_17(%arg0: i32) -> (i32, i32) {
    %c0_i32 = arith.constant 0 : i32
    %c0_i32_0 = arith.constant 0 : i32
    %c0_i32_1 = arith.constant 0 : i32
    return %c0_i32, %c0_i32_0 : i32, i32
  }
  func.func @transform_18(%arg0: i32) -> (i32, i32, i32) {
    %c0_i32 = arith.constant 0 : i32
    %c0_i32_0 = arith.constant 0 : i32
    %c0_i32_1 = arith.constant 0 : i32
    return %arg0, %c0_i32, %c0_i32_0 : i32, i32, i32
  }
}

</mosaic_0001>

<bundles_post_ra>
// kernel: alignment_model_forward.1
= control target key start
LH: loop header
LB: loop body
LE: loop exit
PB: predicated region body
PF: predicated region fallthrough
CT: control target
= control target key end

     0   :  { %s5735_s0 = inlined_call_operand.vmem [shape: f32[1,24,16], index: 0, kind: input, shape index: {}]   ;;  %s5736_s1 = inlined_call_operand.vmem [shape: f32[1,24,24], index: 1, kind: input, shape index: {}]   ;;  %s5737_s2 = inlined_call_operand.hbm [shape: f32[16,32], index: 2, kind: input, shape index: {}]   ;;  %s5738_s3 = inlined_call_operand.hbm [shape: f32[1,32], index: 3, kind: input, shape index: {}]   ;;  %s5739_s4 = inlined_call_operand.vmem [shape: f32[2,32,96], index: 4, kind: input, shape index: {}]   ;;  %s5740_s5 = inlined_call_operand.vmem [shape: f32[2,1,96], index: 5, kind: input, shape index: {}]   ;;  %s5741_s6 = inlined_call_operand.vmem [shape: f32[2,32,32], index: 6, kind: input, shape index: {}]   ;;  %s5742_s7 = inlined_call_operand.hbm [shape: f32[2,1,32], index: 7, kind: input, shape index: {}]   ;;  %s5743_s8 = inlined_call_operand.hbm [shape: f32[2,1,32], index: 8, kind: input, shape index: {}]   ;;  %s5744_s9 = inlined_call_operand.hbm [shape: f32[2,1,32], index: 9, kind: input, shape index: {}]   ;;  %s5745_s10 = inlined_call_operand.hbm [shape: f32[2,32,32], index: 10, kind: input, shape index: {}]   ;;  %s5746_s11 = inlined_call_operand.hbm [shape: f32[2,1,32], index: 11, kind: input, shape index: {}]   ;;  %s5747_s12 = inlined_call_operand.hbm [shape: f32[2,32,32], index: 12, kind: input, shape index: {}]   ;;  %s5748_s13 = inlined_call_operand.hbm [shape: f32[2,1,32], index: 13, kind: input, shape index: {}]   ;;  %s5749_s14 = inlined_call_operand.hbm [shape: f32[2,1,32], index: 14, kind: input, shape index: {}]   ;;  %s5750_s15 = inlined_call_operand.hbm [shape: f32[2,1,32], index: 15, kind: input, shape index: {}]   ;;  %s5751_s16 = inlined_call_operand.hbm [shape: f32[32,128], index: 16, kind: input, shape index: {}]   ;;  %s5752_s17 = inlined_call_operand.hbm [shape: f32[1,128], index: 17, kind: input, shape index: {}]   ;;  %s5753_s18 = inlined_call_operand.vmem [shape: f32[1,24,128], index: 18, kind: output, shape index: {}]  }
   0x1   :  { %5756 = sst [smem:[#allocation29_spill]] %s5735_s0 }
   0x2   :  { %5757 = sst [smem:[#allocation30_spill]] %s5736_s1 }
   0x3   :  { %5758 = sst [smem:[#allocation31_spill]] %s5737_s2 }
   0x4   :  { %23 = vsyncpa [#allocation3], 0 }
   0x5   :  { %24 = vsyncpa [#allocation5], 0 }
   0x6   :  { %25 = vsyncpa [#allocation8], 0 }
   0x7   :  { %26 = vsyncpa [#allocation11], 0 }
   0x8   :  { %27 = vsyncpa [#allocation14], 0 }
   0x9   :  { %28 = vsyncpa [#allocation17], 0 }
   0xa   :  { %29 = vsyncpa [#allocation20], 0  ;;  %s4611_s27 = smov [#allocation4]  }
   0xb   :  { %s52_s28 = sshll.u32 %s4611_s27, 4  ;;  %s53_s28 = int_to_ptr.vmem [resolvable:$true] %s52_s28 }
   0xc   :  { %s4345_s29 = scalar_lea.vmem %s53_s28, 16  ;;  %s4349_s30 = scalar_lea.vmem %s53_s28, 32 }
   0xd   :  { %p4346_p0 = scmp.ne.s32.totalorder %s53_s28, %s4345_s29  ;;  %p4350_p1 = scmp.lt.s32.totalorder %s53_s28, %s53_s28 }
   0xe   :  { %p4351_p2 = scmp.lt.s32.totalorder %s4349_s30, %s4345_s29 }
  0x10   :  { %p4352_p3 = por %p4351_p2, %p4350_p1 }
  0x12   :  { %p4353_p4 = pnand %p4352_p3, %p4346_p0 }
  0x14   :  { %4356 = shalt.err (!%p4353_p4)
}
  0x15   :  { %55 = dma.hbm_to_vmem [thread:$0]  %s5738_s3, 16, %s53_s28, [#allocation5]  }
  0x16   :  { %s4612_s1 = smov [#allocation7]  }
  0x17   :  { %s79_s20 = sshll.u32 %s4612_s1, 4  ;;  %s80_s20 = int_to_ptr.vmem [resolvable:$true] %s79_s20 }
  0x18   :  { %s4365_s21 = scalar_lea.vmem %s80_s20, 32  ;;  %p4370_p6 = scmp.lt.s32.totalorder %s80_s20, %s80_s20 }
  0x19   :  { %p4366_p5 = scmp.ne.s32.totalorder %s80_s20, %s4365_s21  ;;  %p4371_p7 = scmp.lt.s32.totalorder %s4365_s21, %s4365_s21 }
  0x1b   :  { %p4372_p8 = por %p4371_p7, %p4370_p6 }
  0x1d   :  { %p4373_p9 = pnand %p4372_p8, %p4366_p5 }
  0x1f   :  { %4376 = shalt.err (!%p4373_p9)
}
  0x20   :  { %s4613_s22 = smov 16   ;;  %s4614_s2 = smov 1  }
  0x21   :  { %85 = dma.hbm_to_vmem [thread:$0]  %s5743_s8, 32, %s80_s20, [#allocation8], %s4613_s22, %s4613_s22, %s4614_s2  }
  0x22   :  { %s4615_s3 = smov [#allocation10]   ;;  %s4616_s26 = smov [#allocation13]  }
  0x23   :  { %s103_s25 = sshll.u32 %s4615_s3, 4  ;;  %s127_s27 = sshll.u32 %s4616_s26, 4  ;;  %s104_s25 = int_to_ptr.vmem [resolvable:$true] %s103_s25  ;;  %s128_s27 = int_to_ptr.vmem [resolvable:$true] %s127_s27 }
  0x24   :  { %s4385_s28 = scalar_lea.vmem %s104_s25, 1024  ;;  %p4390_p11 = scmp.lt.s32.totalorder %s104_s25, %s104_s25 }
  0x25   :  { %p4386_p10 = scmp.ne.s32.totalorder %s104_s25, %s4385_s28  ;;  %p4391_p12 = scmp.lt.s32.totalorder %s4385_s28, %s4385_s28 }
  0x27   :  { %p4392_p13 = por %p4391_p12, %p4390_p11 }
  0x29   :  { %p4393_p0 = pnand %p4392_p13, %p4386_p10 }
  0x2b   :  { %4396 = shalt.err (!%p4393_p0)
}
  0x2c   :  { %s4617_s29 = smov 128   ;;  %s4618_s30 = smov 8  }
  0x2d   :  { %109 = dma.hbm_to_vmem [thread:$0]  %s5745_s10, 1024, %s104_s25, [#allocation11], %s4617_s29, %s4617_s29, %s4618_s30  }
  0x2e   :  { %s4405_s19 = scalar_lea.vmem %s128_s27, 1024  ;;  %p4410_p2 = scmp.lt.s32.totalorder %s128_s27, %s128_s27 }
  0x2f   :  { %p4406_p1 = scmp.ne.s32.totalorder %s128_s27, %s4405_s19  ;;  %p4411_p3 = scmp.lt.s32.totalorder %s4405_s19, %s4405_s19 }
  0x31   :  { %p4412_p4 = por %p4411_p3, %p4410_p2 }
  0x33   :  { %p4413_p5 = pnand %p4412_p4, %p4406_p1 }
  0x35   :  { %4416 = shalt.err (!%p4413_p5)
}
  0x36   :  { %133 = dma.hbm_to_vmem [thread:$0]  %s5747_s12, 1024, %s128_s27, [#allocation14], %s4617_s29, %s4617_s29, %s4618_s30  }
  0x37   :  { %s4619_s21 = smov [#allocation16]   ;;  %s4620_s24 = smov [#allocation19]  }
  0x38   :  { %s151_s23 = sshll.u32 %s4619_s21, 4  ;;  %s175_s3 = sshll.u32 %s4620_s24, 4  ;;  %s152_s23 = int_to_ptr.vmem [resolvable:$true] %s151_s23  ;;  %s176_s3 = int_to_ptr.vmem [resolvable:$true] %s175_s3 }
  0x39   :  { %s4425_s10 = scalar_lea.vmem %s152_s23, 32  ;;  %p4430_p7 = scmp.lt.s32.totalorder %s152_s23, %s152_s23 }
  0x3a   :  { %p4426_p6 = scmp.ne.s32.totalorder %s152_s23, %s4425_s10  ;;  %p4431_p8 = scmp.lt.s32.totalorder %s4425_s10, %s4425_s10 }
  0x3c   :  { %p4432_p9 = por %p4431_p8, %p4430_p7 }
  0x3e   :  { %p4433_p10 = pnand %p4432_p9, %p4426_p6 }
  0x40   :  { %4436 = shalt.err (!%p4433_p10)
}
  0x41   :  { %157 = dma.hbm_to_vmem [thread:$0]  %s5749_s14, 32, %s152_s23, [#allocation17], %s4613_s22, %s4613_s22, %s4614_s2  }
  0x42   :  { %s4445_s12 = scalar_lea.vmem %s176_s3, 512  ;;  %p4450_p12 = scmp.lt.s32.totalorder %s176_s3, %s176_s3 }
  0x43   :  { %p4446_p11 = scmp.ne.s32.totalorder %s176_s3, %s4445_s12  ;;  %p4451_p13 = scmp.lt.s32.totalorder %s4445_s12, %s4445_s12 }
  0x45   :  { %p4452_p0 = por %p4451_p13, %p4450_p12 }
  0x47   :  { %p4453_p1 = pnand %p4452_p0, %p4446_p11 }
  0x49   :  { %4456 = shalt.err (!%p4453_p1)
}
  0x4a   :  { %181 = dma.hbm_to_vmem [thread:$0]  %s5751_s16, 512, %s176_s3, [#allocation20], %s4617_s29, %s4617_s29, %s4618_s30  }
  0x4b   :  { %s4621_s0 = smov [#allocation2]   ;;  %s4622_s19 = smov [#allocation6]  }
  0x4c   :  { %s39_s8 = sshll.u32 %s4621_s0, 4  ;;  %s67_s1 = sshll.u32 %s4622_s19, 4  ;;  %s40_s8 = int_to_ptr.vmem [resolvable:$true] %s39_s8  ;;  %s68_s1 = int_to_ptr.vmem [resolvable:$true] %s67_s1 }
  0x4d   :  { %s4465_s14 = scalar_lea.vmem %s40_s8, 256  ;;  %p4470_p3 = scmp.lt.s32.totalorder %s40_s8, %s40_s8 }
  0x4e   :  { %p4466_p2 = scmp.ne.s32.totalorder %s40_s8, %s4465_s14  ;;  %p4471_p4 = scmp.lt.s32.totalorder %s4465_s14, %s4465_s14 }
  0x50   :  { %p4472_p5 = por %p4471_p4, %p4470_p3 }
  0x52   :  { %p4473_p6 = pnand %p4472_p5, %p4466_p2 }
  0x54   :  { %4476 = shalt.err (!%p4473_p6)
}
  0x55   :  { %s5759_s23 = sld [smem:[#allocation31_spill]]  ;;  %s4485_s16 = scalar_lea.vmem %s68_s1, 32 }
  0x56   :  { %p4486_p7 = scmp.ne.s32.totalorder %s68_s1, %s4485_s16  ;;  %p4490_p8 = scmp.lt.s32.totalorder %s68_s1, %s68_s1 }
  0x57   :  { %p4491_p9 = scmp.lt.s32.totalorder %s4485_s16, %s4485_s16 }
  0x59   :  { %p4492_p10 = por %p4491_p9, %p4490_p8 }
  0x5b   :  { %45 = dma.hbm_to_vmem [thread:$0]  %s5759_s23, 256, %s40_s8, [#allocation3], %s4617_s29, %s4617_s29, %s4618_s30  }
  0x5c   :  { %p4493_p11 = pnand %p4492_p10, %p4486_p7 }
  0x5e   :  { %4496 = shalt.err (!%p4493_p11)
}
  0x5f   :  { %73 = dma.hbm_to_vmem [thread:$0]  %s5742_s7, 32, %s68_s1, [#allocation5], %s4613_s22, %s4613_s22, %s4614_s2  }
  0x60   :  { %s4623_s10 = smov [#allocation9]   ;;  %s4624_s26 = smov [#allocation12]  }
  0x61   :  { %s91_s25 = sshll.u32 %s4623_s10, 4  ;;  %s115_s12 = sshll.u32 %s4624_s26, 4  ;;  %s92_s25 = int_to_ptr.vmem [resolvable:$true] %s91_s25  ;;  %s116_s12 = int_to_ptr.vmem [resolvable:$true] %s115_s12 }
  0x62   :  { %s4505_s29 = scalar_lea.vmem %s92_s25, 32  ;;  %p4510_p13 = scmp.lt.s32.totalorder %s92_s25, %s92_s25 }
  0x63   :  { %p4506_p12 = scmp.ne.s32.totalorder %s92_s25, %s4505_s29  ;;  %p4511_p0 = scmp.lt.s32.totalorder %s4505_s29, %s4505_s29 }
  0x65   :  { %p4512_p1 = por %p4511_p0, %p4510_p13 }
  0x67   :  { %p4513_p2 = pnand %p4512_p1, %p4506_p12 }
  0x69   :  { %4516 = shalt.err (!%p4513_p2)
}
  0x6a   :  { %97 = dma.hbm_to_vmem [thread:$0]  %s5744_s9, 32, %s92_s25, [#allocation8], %s4613_s22, %s4613_s22, %s4614_s2  }
  0x6b   :  { %s4525_s7 = scalar_lea.vmem %s116_s12, 32  ;;  %p4530_p4 = scmp.lt.s32.totalorder %s116_s12, %s116_s12 }
  0x6c   :  { %p4526_p3 = scmp.ne.s32.totalorder %s116_s12, %s4525_s7  ;;  %p4531_p5 = scmp.lt.s32.totalorder %s4525_s7, %s4525_s7 }
  0x6e   :  { %p4532_p6 = por %p4531_p5, %p4530_p4 }
  0x70   :  { %p4533_p7 = pnand %p4532_p6, %p4526_p3 }
  0x72   :  { %4536 = shalt.err (!%p4533_p7)
}
  0x73   :  { %121 = dma.hbm_to_vmem [thread:$0]  %s5746_s11, 32, %s116_s12, [#allocation11], %s4613_s22, %s4613_s22, %s4614_s2  }
  0x74   :  { %s4625_s19 = smov [#allocation15]   ;;  %s4626_s14 = smov [#allocation18]  }
  0x75   :  { %s139_s1 = sshll.u32 %s4625_s19, 4  ;;  %s163_s20 = sshll.u32 %s4626_s14, 4  ;;  %s140_s1 = int_to_ptr.vmem [resolvable:$true] %s139_s1  ;;  %s164_s20 = int_to_ptr.vmem [resolvable:$true] %s163_s20 }
  0x76   :  { %s4545_s9 = scalar_lea.vmem %s140_s1, 32  ;;  %p4550_p9 = scmp.lt.s32.totalorder %s140_s1, %s140_s1 }
  0x77   :  { %p4546_p8 = scmp.ne.s32.totalorder %s140_s1, %s4545_s9  ;;  %p4551_p10 = scmp.lt.s32.totalorder %s4545_s9, %s4545_s9 }
  0x79   :  { %p4552_p11 = por %p4551_p10, %p4550_p9 }
  0x7b   :  { %p4553_p12 = pnand %p4552_p11, %p4546_p8 }
  0x7d   :  { %4556 = shalt.err (!%p4553_p12)
}
  0x7e   :  { %145 = dma.hbm_to_vmem [thread:$0]  %s5748_s13, 32, %s140_s1, [#allocation14], %s4613_s22, %s4613_s22, %s4614_s2  }
  0x7f   :  { %s4565_s11 = scalar_lea.vmem %s164_s20, 32  ;;  %p4570_p0 = scmp.lt.s32.totalorder %s164_s20, %s164_s20 }
  0x80   :  { %p4566_p13 = scmp.ne.s32.totalorder %s164_s20, %s4565_s11  ;;  %p4571_p1 = scmp.lt.s32.totalorder %s4565_s11, %s4565_s11 }
  0x82   :  { %p4572_p2 = por %p4571_p1, %p4570_p0 }
  0x84   :  { %p4573_p3 = pnand %p4572_p2, %p4566_p13 }
  0x86   :  { %4576 = shalt.err (!%p4573_p3)
}
  0x87   :  { %169 = dma.hbm_to_vmem [thread:$0]  %s5750_s15, 32, %s164_s20, [#allocation17], %s4613_s22, %s4613_s22, %s4614_s2  }
  0x88   :  { %s4627_s3 = smov [#allocation21]  }
  0x89   :  { %s188_s10 = sshll.u32 %s4627_s3, 4  ;;  %s189_s10 = int_to_ptr.vmem [resolvable:$true] %s188_s10 }
  0x8a   :  { %s4585_s25 = scalar_lea.vmem %s189_s10, 16  ;;  %s4589_s13 = scalar_lea.vmem %s189_s10, 32 }
  0x8b   :  { %p4586_p4 = scmp.ne.s32.totalorder %s189_s10, %s4585_s25  ;;  %p4590_p5 = scmp.lt.s32.totalorder %s189_s10, %s189_s10 }
  0x8c   :  { %p4591_p6 = scmp.lt.s32.totalorder %s4589_s13, %s4585_s25 }
  0x8e   :  { %p4592_p7 = por %p4591_p6, %p4590_p5 }
  0x90   :  { %p4593_p8 = pnand %p4592_p7, %p4586_p4 }
  0x92   :  { %4596 = shalt.err (!%p4593_p8)
}
  0x93   :  { %191 = dma.hbm_to_vmem [thread:$0]  %s5752_s17, 16, %s189_s10, [#allocation20]  }
  0x94   :  { %4597 = dma.done.wait [#allocation3], 256  }
  0x95   :  { %4598 = vsyncadd [#allocation3], 4294967040 }
  0x96   :  { %4599 = dma.done.wait [#allocation5], 48  }
  0x97   :  { %4600 = vsyncadd [#allocation5], 4294967248 }
  0x98   :  { %4601 = dma.done.wait [#allocation8], 64  }
  0x99   :  { %4602 = vsyncadd [#allocation8], 4294967232 }
  0x9a   :  { %4603 = dma.done.wait [#allocation11], 1056  }
  0x9b   :  { %4604 = vsyncadd [#allocation11], 4294966240 }
  0x9c   :  { %4605 = dma.done.wait [#allocation14], 1056  }
  0x9d   :  { %4606 = vsyncadd [#allocation14], 4294966240 }
  0x9e   :  { %4607 = dma.done.wait [#allocation17], 64  }
  0x9f   :  { %4608 = vsyncadd [#allocation17], 4294967232 }
  0xa0   :  { %4609 = dma.done.wait [#allocation20], 528  }
  0xa1   :  { %4610 = vsyncadd [#allocation20], 4294966768  ;;  %v4628_v0 = vmov 0.0   ;;  %vm4629_vm0 = vmmov 0   ;;  %v238_v1 = vld [vmem:[#allocation2 + $0x8] sm:$0xff]  ;;  %v237_v2 = vld [vmem:[#allocation2] sm:$0xff] }
  0xa2   :  { %3777 = vmatprep.subr.mxu0 %v4628_v0  ;;  %3781 = vmatprep.mubr.msk.f32.mxu0 %vm4629_vm0, %v4628_v0  ;;  %s5760_s2 = sld [smem:[#allocation29_spill]]  ;;  %vm246_vm1 = vcmask 130048   ;;  %v339_v4 = vld [vmem:[%s5739_s4 + $0x18] sm:$0xff]  ;;  %v338_v5 = vld [vmem:[%s5739_s4 + $0x10] sm:$0xff]  ;;  %v337_v8 = vld [vmem:[%s5739_s4 + $0x8] sm:$0xff]  ;;  %vm347_vm2 = vcmask 261120  }
  0xa3   :  { %3790 = vmatprep.subr.mxu1 %v4628_v0  ;;  %3798 = vmatprep.mubr.msk.f32.mxu1 %vm4629_vm0, %v4628_v0  ;;  %v336_v9 = vld [vmem:[%s5739_s4] sm:$0xff]  ;;  %v3484_v10 = vld [vmem:[#allocation4] ss:$0 sm:$0xff]  ;;  %s4630_s16 = smov 120   ;;  %s4631_s24 = smov 96   ;;  %vm446_vm3 = vcmask 64512  }
  0xa4   :  { %3778 = vmatpush3.msra.mxu0 %v238_v1  ;;  %3791 = vmatpush3.msra.mxu1 %v339_v4  ;;  %v3488_v20 = vld [vmem:[%s5740_s5] ss:$0 sm:$0xff]  ;;  %s4632_s3 = smov 72   ;;  %s4633_s10 = smov 104   ;;  %vm539_vm4 = vcmask 195584  }
  0xa5   :  { %3779 = vmatprep.subr.mxu0 %v4628_v0  ;;  %3792 = vmatprep.subr.mxu1 %v4628_v0  ;;  %s4634_s25 = smov 48   ;;  %s4635_s13 = smov 80  }
  0xa6   :  { %3780 = vmatpush3.msra.mxu0 %v237_v2  ;;  %3793 = vmatpush3.msra.mxu1 %v338_v5  ;;  %s4636_s26 = smov 56   ;;  %s4637_s12 = smov 112  }
  0xa7   :  { %3794 = vmatprep.subr.mxu1 %v4628_v0  ;;  %3807 = vmatprep.subr.mxu0 %v4628_v0  ;;  %s4638_s15 = smov 88   ;;  %s5761_s29 = sld [smem:[#allocation30_spill]] }
  0xa8   :  { %v231_v3 = vld [vmem:[%s5760_s2] sm:$0xff]  ;;  %v232_v6 = vld [vmem:[%s5760_s2 + $0x8] sm:$0xff]  ;;  %v233_v7 = vld [vmem:[%s5760_s2 + $0x10] sm:$0xff]  ;;  %3795 = vmatpush3.msra.mxu1 %v337_v8  ;;  %s4639_s8 = smov 64   ;;  %s4640_s19 = smov 40  }
  0xa9   :  { %3782 = vmatmul.mubr.msk.f32.vlgmr.msra.gmra.mxu0 %vm246_vm1, %v231_v3  ;;  %3796 = vmatprep.subr.mxu1 %v4628_v0  ;;  %s4641_s2 = smov 24  }
  0xaa   :  { %3784 = vmatprep.mubr.msk.f32.mxu0 %vm4629_vm0, %v4628_v0  ;;  %3797 = vmatpush3.msra.mxu1 %v336_v9 }
  0xab   :  { %3822 = vmatprep.subr.mxu1 %v4628_v0 }
  0xad   :  { %3785 = vmatmul.mubr.msk.f32.gmra.mxu0 %vm246_vm1, %v232_v6  ;;  %v234_v55 = vld [vmem:[%s5761_s29] sm:$0xff]  ;;  %v235_v59 = vld [vmem:[%s5761_s29 + $0x8] sm:$0xff]  ;;  %v236_v1 = vld [vmem:[%s5761_s29 + $0x10] sm:$0xff] }
  0xae   :  { %3787 = vmatprep.mubr.msk.f32.mxu0 %vm4629_vm0, %v4628_v0 }
  0xb1   :  { %3788 = vmatmul.mubr.msk.f32.gmra.mxu0 %vm246_vm1, %v233_v7 }
  0xb2   :  { %3813 = vmatprep.mubr.msk.f32.mxu0 %vm4629_vm0, %v4628_v0 }
 0x169   :  { %v322_v11 = vpop.f32.mrf.mxu0 }
 0x16a   :  { %v4851_v12 = vadd.f32 %v3484_v10, %v322_v11 }
 0x16b   :  { %v3783_v13 = vpop.f32.mrf.mxu0 }
 0x16c   :  { %3799 = vmatmul.mubr.msk.f32.vlgmr.msra.gmra.mxu1 %vm347_vm2, %v4851_v12 }
 0x16d   :  { %v327_v14 = vpop.f32.mrf.mxu0  ;;  %3801 = vmatprep.mubr.msk.f32.mxu1 %vm4629_vm0, %v4628_v0 }
 0x16e   :  { %v4857_v15 = vadd.f32 %v3484_v10, %v327_v14 }
 0x16f   :  { %v3786_v16 = vpop.f32.mrf.mxu0 }
 0x170   :  { %3802 = vmatmul.mubr.msk.f32.gmra.mxu1 %vm347_vm2, %v4857_v15 }
 0x171   :  { %v332_v17 = vpop.f32.mrf.mxu0  ;;  %3804 = vmatprep.mubr.msk.f32.mxu1 %vm4629_vm0, %v4628_v0 }
 0x172   :  { %v4863_v18 = vadd.f32 %v3484_v10, %v332_v17 }
 0x173   :  { %v3789_v19 = vpop.f32.mrf.mxu0 }
 0x174   :  { %3805 = vmatmul.mubr.msk.f32.gmra.mxu1 %vm347_vm2, %v4863_v18 }
 0x175   :  { %3828 = vmatprep.mubr.msk.f32.mxu1 %vm4629_vm0, %v4628_v0 }
 0x22c   :  { %v423_v21 = vpop.f32.mrf.mxu1 }
 0x22d   :  { %v4872_v22 = vadd.f32 %v3488_v20, %v423_v21 }
 0x22e   :  { %v3800_v23 = vpop.f32.mrf.mxu1 }
 0x22f   :  { %440 = vrot.lane.b32.xlu1 %v4872_v22, %s4630_s16 }
 0x230   :  { %v428_v24 = vpop.f32.mrf.mxu1 }
 0x231   :  { %v4882_v29 = vadd.f32 %v3488_v20, %v428_v24 }
 0x232   :  { %v3803_v25 = vpop.f32.mrf.mxu1 }
 0x234   :  { %v433_v26 = vpop.f32.mrf.mxu1 }
 0x235   :  { %v4876_v27 = vadd.f32 %v3488_v20, %v433_v26 }
 0x236   :  { %v3806_v28 = vpop.f32.mrf.mxu1 }
 0x237   :  { %681 = vrot.lane.b32.xlu1 %v4876_v27, %s4631_s24  ;;  %444 = vrot.lane.b32.xlu0 %v4876_v27, %s4630_s16 }
 0x23b   :  { %677 = vrot.lane.b32.xlu1 %v4872_v22, %s4631_s24  ;;  %442 = vrot.lane.b32.xlu0 %v4882_v29, %s4630_s16 }
 0x23f   :  { %916 = vrot.lane.b32.xlu1 %v4876_v27, %s4632_s3  ;;  %679 = vrot.lane.b32.xlu0 %v4882_v29, %s4631_s24 }
 0x243   :  { %914 = vrot.lane.b32.xlu1 %v4882_v29, %s4632_s3  ;;  %671 = vrot.lane.b32.xlu0 %v4872_v22, %s4633_s10 }
 0x247   :  { %912 = vrot.lane.b32.xlu1 %v4872_v22, %s4632_s3  ;;  %673 = vrot.lane.b32.xlu0 %v4882_v29, %s4633_s10 }
 0x24b   :  { %1151 = vrot.lane.b32.xlu1 %v4876_v27, %s4634_s25  ;;  %675 = vrot.lane.b32.xlu0 %v4876_v27, %s4633_s10 }
 0x24f   :  { %1149 = vrot.lane.b32.xlu1 %v4882_v29, %s4634_s25  ;;  %906 = vrot.lane.b32.xlu0 %v4872_v22, %s4635_s13 }
 0x253   :  { %1147 = vrot.lane.b32.xlu1 %v4872_v22, %s4634_s25  ;;  %908 = vrot.lane.b32.xlu0 %v4882_v29, %s4635_s13 }
 0x257   :  { %1143 = vrot.lane.b32.xlu1 %v4882_v29, %s4636_s26  ;;  %910 = vrot.lane.b32.xlu0 %v4876_v27, %s4635_s13 }
 0x25b   :  { %575 = vrot.lane.b32.xlu1 %v4882_v29, %s4637_s12  ;;  %1141 = vrot.lane.b32.xlu0 %v4872_v22, %s4636_s26 }
 0x25f   :  { %810 = vrot.lane.b32.xlu1 %v4882_v29, %s4638_s15  ;;  %1145 = vrot.lane.b32.xlu0 %v4876_v27, %s4636_s26 }
 0x263   :  { %573 = vrot.lane.b32.xlu0 %v4872_v22, %s4637_s12 }
 0x267   :  { %808 = vrot.lane.b32.xlu0 %v4872_v22, %s4638_s15 }
 0x26b   :  { %577 = vrot.lane.b32.xlu0 %v4876_v27, %s4637_s12 }
 0x26f   :  { %812 = vrot.lane.b32.xlu0 %v4876_v27, %s4638_s15 }
 0x2a1   :  { %v441_v30 = vpop.permute.xlu1 %440 }
 0x2a9   :  { %v682_v31 = vpop.permute.xlu1 %681  ;;  %v445_v32 = vpop.permute.xlu0 %444 }
 0x2aa   :  { %3808 = vmatpush3.xpose.msk.msra.mxu0 %vm446_vm3, %v445_v32 }
 0x2ab   :  { %3809 = vmatprep.subr.mxu0 %v4628_v0 }
 0x2ad   :  { %v443_v33 = vpop.permute.xlu0 %442  ;;  %v678_v34 = vpop.permute.xlu1 %677 }
 0x2ae   :  { %3810 = vmatpush3.xpose.msk.msra.mxu0 %vm446_vm3, %v443_v33 }
 0x2af   :  { %3811 = vmatprep.subr.mxu0 %v4628_v0 }
 0x2b1   :  { %v680_v35 = vpop.permute.xlu0 %679  ;;  %v917_v36 = vpop.permute.xlu1 %916 }
 0x2b2   :  { %3812 = vmatpush3.xpose.msk.msra.mxu0 %vm446_vm3, %v441_v30 }
 0x2b3   :  { %3837 = vmatprep.subr.mxu0 %v4628_v0 }
 0x2b5   :  { %3814 = vmatmul.mubr.msk.f32.vlgmr.msra.gmra.mxu0 %vm446_vm3, %v4872_v22  ;;  %v672_v37 = vpop.permute.xlu0 %671  ;;  %v915_v39 = vpop.permute.xlu1 %914 }
 0x2b6   :  { %3838 = vmatpush3.xpose.msk.msra.mxu0 %vm446_vm3, %v682_v31  ;;  %3816 = vmatprep.mubr.msk.f32.mxu0 %vm4629_vm0, %v4628_v0 }
 0x2b7   :  { %3839 = vmatprep.subr.mxu0 %v4628_v0 }
 0x2b9   :  { %3817 = vmatmul.mubr.msk.f32.gmra.mxu0 %vm446_vm3, %v4882_v29  ;;  %v674_v38 = vpop.permute.xlu0 %673  ;;  %v913_v41 = vpop.permute.xlu1 %912 }
 0x2ba   :  { %3840 = vmatpush3.xpose.msk.msra.mxu0 %vm446_vm3, %v680_v35  ;;  %3819 = vmatprep.mubr.msk.f32.mxu0 %vm4629_vm0, %v4628_v0 }
 0x2bb   :  { %3841 = vmatprep.subr.mxu0 %v4628_v0 }
 0x2bd   :  { %3820 = vmatmul.mubr.msk.f32.gmra.mxu0 %vm446_vm3, %v4876_v27  ;;  %v676_v40 = vpop.permute.xlu0 %675  ;;  %v1152_v44 = vpop.permute.xlu1 %1151 }
 0x2be   :  { %3842 = vmatpush3.xpose.msk.msra.mxu0 %vm446_vm3, %v678_v34  ;;  %3843 = vmatprep.mubr.msk.f32.mxu0 %vm4629_vm0, %v4628_v0 }
 0x2bf   :  { %3867 = vmatprep.subr.mxu0 %v4628_v0 }
 0x2c1   :  { %3844 = vmatmul.mubr.msk.f32.vlgmr.msra.gmra.mxu0 %vm446_vm3, %v672_v37  ;;  %v907_v42 = vpop.permute.xlu0 %906  ;;  %v1150_v46 = vpop.permute.xlu1 %1149 }
 0x2c2   :  { %3868 = vmatpush3.xpose.msk.msra.mxu0 %vm446_vm3, %v917_v36  ;;  %3846 = vmatprep.mubr.msk.f32.mxu0 %vm4629_vm0, %v4628_v0 }
 0x2c3   :  { %3869 = vmatprep.subr.mxu0 %v4628_v0 }
 0x2c5   :  { %3847 = vmatmul.mubr.msk.f32.gmra.mxu0 %vm446_vm3, %v674_v38  ;;  %v909_v43 = vpop.permute.xlu0 %908  ;;  %v1148_v49 = vpop.permute.xlu1 %1147 }
 0x2c6   :  { %3870 = vmatpush3.xpose.msk.msra.mxu0 %vm446_vm3, %v915_v39  ;;  %3849 = vmatprep.mubr.msk.f32.mxu0 %vm4629_vm0, %v4628_v0 }
 0x2c7   :  { %3871 = vmatprep.subr.mxu0 %v4628_v0 }
 0x2c9   :  { %3850 = vmatmul.mubr.msk.f32.gmra.mxu0 %vm446_vm3, %v676_v40  ;;  %v911_v45 = vpop.permute.xlu0 %910  ;;  %v1144_v51 = vpop.permute.xlu1 %1143 }
 0x2ca   :  { %3872 = vmatpush3.xpose.msk.msra.mxu0 %vm446_vm3, %v913_v41  ;;  %3873 = vmatprep.mubr.msk.f32.mxu0 %vm4629_vm0, %v4628_v0 }
 0x2cb   :  { %3897 = vmatprep.subr.mxu0 %v4628_v0 }
 0x2cd   :  { %3874 = vmatmul.mubr.msk.f32.vlgmr.msra.gmra.mxu0 %vm446_vm3, %v907_v42  ;;  %v1142_v47 = vpop.permute.xlu0 %1141  ;;  %v576_v54 = vpop.permute.xlu1 %575 }
 0x2ce   :  { %3898 = vmatpush3.xpose.msk.msra.mxu0 %vm446_vm3, %v1152_v44  ;;  %3876 = vmatprep.mubr.msk.f32.mxu0 %vm4629_vm0, %v4628_v0 }
 0x2cf   :  { %3899 = vmatprep.subr.mxu0 %v4628_v0 }
 0x2d1   :  { %3877 = vmatmul.mubr.msk.f32.gmra.mxu0 %vm446_vm3, %v909_v43  ;;  %v1146_v48 = vpop.permute.xlu0 %1145 }
 0x2d2   :  { %3900 = vmatpush3.xpose.msk.msra.mxu0 %vm446_vm3, %v1150_v46  ;;  %3879 = vmatprep.mubr.msk.f32.mxu0 %vm4629_vm0, %v4628_v0 }
 0x2d3   :  { %3901 = vmatprep.subr.mxu0 %v4628_v0 }
 0x2d5   :  { %3880 = vmatmul.mubr.msk.f32.gmra.mxu0 %vm446_vm3, %v911_v45  ;;  %v574_v50 = vpop.permute.xlu0 %573 }
 0x2d6   :  { %3902 = vmatpush3.xpose.msk.msra.mxu0 %vm446_vm3, %v1148_v49  ;;  %3903 = vmatprep.mubr.msk.f32.mxu0 %vm4629_vm0, %v4628_v0  ;;  %v5063_v49 = vpop.permute.xlu1 %810 }
 0x2d7   :  { %3927 = vmatprep.subr.mxu0 %v4628_v0 }
 0x2d9   :  { %3904 = vmatmul.mubr.msk.f32.vlgmr.msra.gmra.mxu0 %vm446_vm3, %v1142_v47  ;;  %v4987_v52 = vpop.permute.xlu0 %808 }
 0x2da   :  { %3906 = vmatprep.mubr.msk.f32.mxu0 %vm4629_vm0, %v4628_v0 }
 0x2dd   :  { %3907 = vmatmul.mubr.msk.f32.gmra.mxu0 %vm446_vm3, %v1144_v51  ;;  %v578_v53 = vpop.permute.xlu0 %577 }
 0x2de   :  { %3823 = vmatpush3.msra.mxu1 %v578_v53  ;;  %3909 = vmatprep.mubr.msk.f32.mxu0 %vm4629_vm0, %v4628_v0 }
 0x2df   :  { %3824 = vmatprep.subr.mxu1 %v4628_v0 }
 0x2e0   :  { %3825 = vmatpush3.msra.mxu1 %v576_v54 }
 0x2e1   :  { %3826 = vmatprep.subr.mxu1 %v4628_v0  ;;  %3910 = vmatmul.mubr.msk.f32.gmra.mxu0 %vm446_vm3, %v1146_v48 }
 0x2e2   :  { %3827 = vmatpush3.msra.mxu1 %v574_v50  ;;  %3935 = vmatprep.mubr.msk.f32.mxu0 %vm4629_vm0, %v4628_v0  ;;  %v5065_v50 = vpop.permute.xlu0 %812 }
 0x2e3   :  { %3852 = vmatprep.subr.mxu1 %v4628_v0 }
 0x375   :  { %v525_v56 = vpop.f32.mrf.mxu0 }
 0x376   :  { %v5003_v57 = vadd.f32 %v525_v56, %v234_v55 }
 0x377   :  { %v3815_v58 = vpop.f32.mrf.mxu0 }
 0x378   :  { %v540_v60 = vsel %vm539_vm4, %v5003_v57, -inf }
 0x379   :  { %541 = vmax.xlane.f32.xlu1 %v540_v60  ;;  %v530_v61 = vpop.f32.mrf.mxu0 }
 0x37a   :  { %v5010_v62 = vadd.f32 %v530_v61, %v235_v59 }
 0x37b   :  { %v3818_v63 = vpop.f32.mrf.mxu0 }
 0x37c   :  { %v543_v2 = vsel %vm539_vm4, %v5010_v62, -inf }
 0x37d   :  { %544 = vmax.xlane.f32.xlu0 %v543_v2  ;;  %v535_v3 = vpop.f32.mrf.mxu0 }
 0x37e   :  { %v5017_v4 = vadd.f32 %v535_v3, %v236_v1 }
 0x37f   :  { %v3821_v5 = vpop.f32.mrf.mxu0 }
 0x380   :  { %v546_v6 = vsel %vm539_vm4, %v5017_v4, -inf }
 0x381   :  { %547 = vmax.xlane.f32.xlu0 %v546_v6  ;;  %v761_v7 = vpop.f32.mrf.mxu0 }
 0x382   :  { %v5021_v8 = vadd.f32 %v761_v7, %v234_v55 }
 0x383   :  { %v3845_v9 = vpop.f32.mrf.mxu0 }
 0x384   :  { %v775_v10 = vsel %vm539_vm4, %v5021_v8, -inf }
 0x385   :  { %776 = vmax.xlane.f32.xlu1 %v775_v10  ;;  %v766_v11 = vpop.f32.mrf.mxu0 }
 0x386   :  { %v5025_v13 = vadd.f32 %v766_v11, %v235_v59 }
 0x387   :  { %v3848_v14 = vpop.f32.mrf.mxu0 }
 0x388   :  { %v778_v16 = vsel %vm539_vm4, %v5025_v13, -inf }
 0x389   :  { %779 = vmax.xlane.f32.xlu0 %v778_v16  ;;  %v771_v17 = vpop.f32.mrf.mxu0 }
 0x38a   :  { %v5029_v19 = vadd.f32 %v771_v17, %v236_v1 }
 0x38b   :  { %v3851_v20 = vpop.f32.mrf.mxu0 }
 0x38c   :  { %v781_v21 = vsel %vm539_vm4, %v5029_v19, -inf }
 0x38d   :  { %782 = vmax.xlane.f32.xlu1 %v781_v21  ;;  %v996_v23 = vpop.f32.mrf.mxu0 }
 0x38e   :  { %v5033_v24 = vadd.f32 %v996_v23, %v234_v55 }
 0x38f   :  { %v3875_v25 = vpop.f32.mrf.mxu0 }
 0x390   :  { %v1010_v26 = vsel %vm539_vm4, %v5033_v24, -inf }
 0x391   :  { %1011 = vmax.xlane.f32.xlu0 %v1010_v26  ;;  %v1001_v28 = vpop.f32.mrf.mxu0 }
 0x392   :  { %v5037_v30 = vadd.f32 %v1001_v28, %v235_v59 }
 0x393   :  { %v3878_v31 = vpop.f32.mrf.mxu0 }
 0x394   :  { %v1013_v32 = vsel %vm539_vm4, %v5037_v30, -inf }
 0x395   :  { %1014 = vmax.xlane.f32.xlu1 %v1013_v32  ;;  %v1006_v33 = vpop.f32.mrf.mxu0 }
 0x396   :  { %v5041_v34 = vadd.f32 %v1006_v33, %v236_v1 }
 0x397   :  { %v3881_v35 = vpop.f32.mrf.mxu0 }
 0x398   :  { %v1016_v36 = vsel %vm539_vm4, %v5041_v34, -inf }
 0x399   :  { %1017 = vmax.xlane.f32.xlu0 %v1016_v36  ;;  %v1231_v37 = vpop.f32.mrf.mxu0 }
 0x39a   :  { %v5045_v38 = vadd.f32 %v1231_v37, %v234_v55 }
 0x39b   :  { %v3905_v39 = vpop.f32.mrf.mxu0 }
 0x39c   :  { %v1245_v40 = vsel %vm539_vm4, %v5045_v38, -inf }
 0x39d   :  { %1246 = vmax.xlane.f32.xlu1 %v1245_v40  ;;  %v1236_v41 = vpop.f32.mrf.mxu0 }
 0x39e   :  { %v5049_v42 = vadd.f32 %v1236_v41, %v235_v59 }
 0x39f   :  { %v3908_v43 = vpop.f32.mrf.mxu0 }
 0x3a0   :  { %v1248_v44 = vsel %vm539_vm4, %v5049_v42, -inf }
 0x3a1   :  { %1249 = vmax.xlane.f32.xlu0 %v1248_v44  ;;  %v1241_v45 = vpop.f32.mrf.mxu0 }
 0x3a2   :  { %v5057_v47 = vadd.f32 %v1241_v45, %v236_v1 }
 0x3a3   :  { %v3911_v46 = vpop.f32.mrf.mxu0 }
 0x3a4   :  { %v1251_v48 = vsel %vm539_vm4, %v5057_v47, -inf }
 0x3ae   :  { %1045 = vrot.lane.b32.xlu1 %v4882_v29, %s4639_s8 }
 0x3b7   :  { %1047 = vrot.lane.b32.xlu0 %v4876_v27, %s4639_s8 }
 0x3d2   :  { %1252 = vmax.xlane.f32.xlu1 %v1251_v48 }
 0x3e3   :  { %1043 = vrot.lane.b32.xlu1 %v4872_v22, %s4639_s8 }
 0x402   :  { %v542_v51 = vpop.xlane.xlu1 %541 }
 0x403   :  { %v549_v53 = vsub.f32 %v5003_v57, %v542_v51 }
 0x405   :  { %v552_v54 = vmul.f32 1.442695, %v549_v53 }
 0x406   :  { %v545_v55 = vpop.xlane.xlu0 %544 }
 0x407   :  { %4214 = vpow2.f32 %v552_v54  ;;  %v550_v56 = vsub.f32 %v5010_v62, %v545_v55 }
 0x409   :  { %v554_v58 = vmul.f32 1.442695, %v550_v56 }
 0x40a   :  { %v548_v59 = vpop.xlane.xlu0 %547 }
 0x40b   :  { %4216 = vpow2.f32 %v554_v58  ;;  %v551_v60 = vsub.f32 %v5017_v4, %v548_v59 }
 0x40d   :  { %v556_v61 = vmul.f32 1.442695, %v551_v60 }
 0x40e   :  { %v777_v63 = vpop.xlane.xlu1 %776 }
 0x40f   :  { %4218 = vpow2.f32 %v556_v61  ;;  %v784_v1 = vsub.f32 %v5021_v8, %v777_v63 }
 0x411   :  { %v787_v2 = vmul.f32 1.442695, %v784_v1 }
 0x412   :  { %v780_v3 = vpop.xlane.xlu0 %779 }
 0x413   :  { %4220 = vpow2.f32 %v787_v2  ;;  %v785_v57 = vsub.f32 %v5025_v13, %v780_v3 }
 0x414   :  { %v5072_v5 = vpop.eup %4214 }
 0x415   :  { %v789_v6 = vmul.f32 1.442695, %v785_v57  ;;  %v558_v62 = vsel %vm539_vm4, %v5072_v5, 0.0 }
 0x416   :  { %v783_v7 = vpop.xlane.xlu1 %782  ;;  %559 = vadd.xlane.f32.xlu0 %v558_v62 }
 0x417   :  { %4222 = vpow2.f32 %v789_v6  ;;  %v786_v4 = vsub.f32 %v5029_v19, %v783_v7 }
 0x418   :  { %v5077_v9 = vpop.eup %4216 }
 0x419   :  { %v791_v10 = vmul.f32 1.442695, %v786_v4  ;;  %v561_v8 = vsel %vm539_vm4, %v5077_v9, 0.0 }
 0x41a   :  { %v1012_v11 = vpop.xlane.xlu0 %1011  ;;  %562 = vadd.xlane.f32.xlu1 %v561_v8 }
 0x41b   :  { %4224 = vpow2.f32 %v791_v10  ;;  %v1019_v13 = vsub.f32 %v5033_v24, %v1012_v11 }
 0x41c   :  { %v5082_v14 = vpop.eup %4218 }
 0x41d   :  { %v1022_v16 = vmul.f32 1.442695, %v1019_v13  ;;  %v564_v17 = vsel %vm539_vm4, %v5082_v14, 0.0 }
 0x41e   :  { %v1015_v20 = vpop.xlane.xlu1 %1014  ;;  %565 = vadd.xlane.f32.xlu0 %v564_v17 }
 0x41f   :  { %4226 = vpow2.f32 %v1022_v16  ;;  %v1020_v19 = vsub.f32 %v5037_v30, %v1015_v20 }
 0x420   :  { %v5087_v21 = vpop.eup %4220 }
 0x421   :  { %v1024_v23 = vmul.f32 1.442695, %v1020_v19  ;;  %v793_v25 = vsel %vm539_vm4, %v5087_v21, 0.0 }
 0x422   :  { %794 = vadd.xlane.f32.xlu1 %v793_v25  ;;  %v1018_v28 = vpop.xlane.xlu0 %1017 }
 0x423   :  { %4228 = vpow2.f32 %v1024_v23  ;;  %v1021_v48 = vsub.f32 %v5041_v34, %v1018_v28 }
 0x424   :  { %v5091_v24 = vpop.eup %4222 }
 0x425   :  { %v796_v26 = vsel %vm539_vm4, %v5091_v24, 0.0  ;;  %v1026_v51 = vmul.f32 1.442695, %v1021_v48  ;;  %v1424_v48 = vld [vmem:[%s5741_s6 + $0x18] sm:$0xff] }
 0x426   :  { %v1247_v31 = vpop.xlane.xlu1 %1246  ;;  %797 = vadd.xlane.f32.xlu0 %v796_v26  ;;  %3928 = vmatpush3.msra.mxu0 %v1424_v48 }
 0x427   :  { %v1254_v32 = vsub.f32 %v5045_v38, %v1247_v31  ;;  %3929 = vmatprep.subr.mxu0 %v4628_v0 }
 0x428   :  { %v5096_v33 = vpop.eup %4224 }
 0x429   :  { %v1257_v30 = vmul.f32 1.442695, %v1254_v32  ;;  %v799_v35 = vsel %vm539_vm4, %v5096_v33, 0.0 }
 0x42a   :  { %v1250_v36 = vpop.xlane.xlu0 %1249  ;;  %800 = vadd.xlane.f32.xlu1 %v799_v35  ;;  %v1046_v54 = vpop.permute.xlu1 %1045 }
 0x42b   :  { %4230 = vpow2.f32 %v1257_v30  ;;  %v1255_v37 = vsub.f32 %v5049_v42, %v1250_v36 }
 0x42c   :  { %v5101_v39 = vpop.eup %4226 }
 0x42d   :  { %v1259_v40 = vmul.f32 1.442695, %v1255_v37  ;;  %v1028_v41 = vsel %vm539_vm4, %v5101_v39, 0.0 }
 0x42e   :  { %1029 = vadd.xlane.f32.xlu1 %v1028_v41 }
 0x42f   :  { %4232 = vpow2.f32 %v1259_v40 }
 0x430   :  { %v5105_v38 = vpop.eup %4228  ;;  %4234 = vpow2.f32 %v1026_v51  ;;  %v1423_v51 = vld [vmem:[%s5741_s6 + $0x10] sm:$0xff] }
 0x431   :  { %v1031_v43 = vsel %vm539_vm4, %v5105_v38, 0.0  ;;  %3930 = vmatpush3.msra.mxu0 %v1423_v51 }
 0x432   :  { %1032 = vadd.xlane.f32.xlu1 %v1031_v43  ;;  %3931 = vmatprep.subr.mxu0 %v4628_v0 }
 0x438   :  { %v5109_v44 = vpop.eup %4230 }
 0x439   :  { %v1263_v45 = vsel %vm539_vm4, %v5109_v44, 0.0 }
 0x43a   :  { %1264 = vadd.xlane.f32.xlu1 %v1263_v45 }
 0x43c   :  { %v5113_v42 = vpop.eup %4232  ;;  %1282 = vrot.lane.b32.xlu0 %v4876_v27, %s4640_s19 }
 0x43d   :  { %v1266_v46 = vsel %vm539_vm4, %v5113_v42, 0.0  ;;  %v5122_v53 = vpop.eup %4234 }
 0x43e   :  { %1267 = vadd.xlane.f32.xlu1 %v1266_v46  ;;  %v1034_v55 = vsel %vm539_vm4, %v5122_v53, 0.0 }
 0x44f   :  { %1280 = vrot.lane.b32.xlu1 %v4882_v29, %s4640_s19  ;;  %v1048_v29 = vpop.permute.xlu0 %1047 }
 0x45b   :  { %1035 = vadd.xlane.f32.xlu0 %v1034_v55  ;;  %v1253_v56 = vpop.xlane.xlu1 %1252 }
 0x45c   :  { %v1256_v27 = vsub.f32 %v5057_v47, %v1253_v56 }
 0x45e   :  { %v1261_v58 = vmul.f32 1.442695, %v1256_v27 }
 0x45f   :  { %v1044_v60 = vpop.permute.xlu1 %1043 }
 0x460   :  { %4236 = vpow2.f32 %v1261_v58 }
 0x46d   :  { %v5127_v59 = vpop.eup %4236 }
 0x46e   :  { %v1269_v34 = vsel %vm539_vm4, %v5127_v59, 0.0 }
 0x46f   :  { %1270 = vadd.xlane.f32.xlu0 %v1269_v34 }
 0x485   :  { %1278 = vrot.lane.b32.xlu0 %v4872_v22, %s4640_s19 }
 0x49f   :  { %v560_v61 = vpop.xlane.xlu0 %559 }
 0x4a0   :  { %4238 = vrcp.f32 %v560_v61 }
 0x4a3   :  { %v563_v63 = vpop.xlane.xlu1 %562 }
 0x4a4   :  { %4240 = vrcp.f32 %v563_v63 }
 0x4a7   :  { %v566_v1 = vpop.xlane.xlu0 %565 }
 0x4a8   :  { %4242 = vrcp.f32 %v566_v1 }
 0x4ab   :  { %v795_v47 = vpop.xlane.xlu1 %794 }
 0x4ac   :  { %4244 = vrcp.f32 %v795_v47 }
 0x4ad   :  { %v4239_v2 = vpop.eup %4238 }
 0x4ae   :  { %v570_v3 = vmul.f32 %v4239_v2, %v5072_v5 }
 0x4af   :  { %v798_v57 = vpop.xlane.xlu0 %797 }
 0x4b0   :  { %4246 = vrcp.f32 %v798_v57  ;;  %3829 = vmatmul.mubr.msk.f32.vlgmr.msra.gmra.mxu1 %vm539_vm4, %v570_v3 }
 0x4b1   :  { %v4241_v6 = vpop.eup %4240  ;;  %3853 = vmatpush3.msra.mxu1 %v5065_v50  ;;  %3831 = vmatprep.mubr.msk.f32.mxu1 %vm4629_vm0, %v4628_v0 }
 0x4b2   :  { %3854 = vmatprep.subr.mxu1 %v4628_v0  ;;  %v571_v22 = vmul.f32 %v4241_v6, %v5077_v9 }
 0x4b3   :  { %3855 = vmatpush3.msra.mxu1 %v5063_v49  ;;  %v801_v62 = vpop.xlane.xlu1 %800  ;;  %v1283_v20 = vpop.permute.xlu0 %1282 }
 0x4b4   :  { %3856 = vmatprep.subr.mxu1 %v4628_v0  ;;  %4248 = vrcp.f32 %v801_v62  ;;  %3832 = vmatmul.mubr.msk.f32.gmra.mxu1 %vm539_vm4, %v571_v22 }
 0x4b5   :  { %v4243_v5 = vpop.eup %4242  ;;  %3857 = vmatpush3.msra.mxu1 %v4987_v52  ;;  %3834 = vmatprep.mubr.msk.f32.mxu1 %vm4629_vm0, %v4628_v0 }
 0x4b6   :  { %v572_v50 = vmul.f32 %v4243_v5, %v5082_v14  ;;  %3882 = vmatprep.subr.mxu1 %v4628_v0 }
 0x4b7   :  { %v1030_v7 = vpop.xlane.xlu1 %1029 }
 0x4b8   :  { %4250 = vrcp.f32 %v1030_v7  ;;  %3835 = vmatmul.mubr.msk.f32.gmra.mxu1 %vm539_vm4, %v572_v50 }
 0x4b9   :  { %v4245_v49 = vpop.eup %4244  ;;  %3858 = vmatprep.mubr.msk.f32.mxu1 %vm4629_vm0, %v4628_v0 }
 0x4ba   :  { %v805_v4 = vmul.f32 %v4245_v49, %v5087_v21 }
 0x4bb   :  { %v1033_v9 = vpop.xlane.xlu1 %1032 }
 0x4bc   :  { %4252 = vrcp.f32 %v1033_v9  ;;  %3859 = vmatmul.mubr.msk.f32.vlgmr.msra.gmra.mxu1 %vm539_vm4, %v805_v4 }
 0x4bd   :  { %v4247_v52 = vpop.eup %4246  ;;  %3883 = vmatpush3.msra.mxu1 %v1048_v29  ;;  %3861 = vmatprep.mubr.msk.f32.mxu1 %vm4629_vm0, %v4628_v0  ;;  %v1421_v29 = vld [vmem:[%s5741_s6] sm:$0xff] }
 0x4be   :  { %3884 = vmatprep.subr.mxu1 %v4628_v0  ;;  %v806_v10 = vmul.f32 %v4247_v52, %v5091_v24 }
 0x4bf   :  { %3885 = vmatpush3.msra.mxu1 %v1046_v54  ;;  %v1422_v54 = vld [vmem:[%s5741_s6 + $0x8] sm:$0xff] }
 0x4c0   :  { %3886 = vmatprep.subr.mxu1 %v4628_v0  ;;  %3862 = vmatmul.mubr.msk.f32.gmra.mxu1 %vm539_vm4, %v806_v10 }
 0x4c1   :  { %v4249_v8 = vpop.eup %4248  ;;  %3887 = vmatpush3.msra.mxu1 %v1044_v60  ;;  %3864 = vmatprep.mubr.msk.f32.mxu1 %vm4629_vm0, %v4628_v0 }
 0x4c2   :  { %v807_v11 = vmul.f32 %v4249_v8, %v5096_v33  ;;  %3912 = vmatprep.subr.mxu1 %v4628_v0  ;;  %3932 = vmatpush3.msra.mxu0 %v1422_v54 }
 0x4c3   :  { %v1265_v13 = vpop.xlane.xlu1 %1264  ;;  %3933 = vmatprep.subr.mxu0 %v4628_v0 }
 0x4c4   :  { %3865 = vmatmul.mubr.msk.f32.gmra.mxu1 %vm539_vm4, %v807_v11  ;;  %3934 = vmatpush3.msra.mxu0 %v1421_v29 }
 0x4c5   :  { %v4251_v14 = vpop.eup %4250  ;;  %3888 = vmatprep.mubr.msk.f32.mxu1 %vm4629_vm0, %v4628_v0  ;;  %3961 = vmatprep.subr.mxu0 %v4628_v0 }
 0x4c6   :  { %v1040_v16 = vmul.f32 %v4251_v14, %v5101_v39 }
 0x4c7   :  { %v1268_v17 = vpop.xlane.xlu1 %1267 }
 0x4c8   :  { %3889 = vmatmul.mubr.msk.f32.vlgmr.msra.gmra.mxu1 %vm539_vm4, %v1040_v16 }
 0x4c9   :  { %v4253_v19 = vpop.eup %4252  ;;  %3913 = vmatpush3.msra.mxu1 %v1283_v20  ;;  %3891 = vmatprep.mubr.msk.f32.mxu1 %vm4629_vm0, %v4628_v0 }
 0x4ca   :  { %3914 = vmatprep.subr.mxu1 %v4628_v0  ;;  %v1041_v21 = vmul.f32 %v4253_v19, %v5105_v38  ;;  %v3528_v19 = vld [vmem:[#allocation6] ss:$0 sm:$0xff] }
 0x4cb   :  { %v1281_v23 = vpop.permute.xlu1 %1280 }
 0x4cc   :  { %3892 = vmatmul.mubr.msk.f32.gmra.mxu1 %vm539_vm4, %v1041_v21 }
 0x4cd   :  { %3915 = vmatpush3.msra.mxu1 %v1281_v23  ;;  %3894 = vmatprep.mubr.msk.f32.mxu1 %vm4629_vm0, %v4628_v0 }
 0x4ce   :  { %3916 = vmatprep.subr.mxu1 %v4628_v0 }
 0x4e4   :  { %v1036_v25 = vpop.xlane.xlu0 %1035 }
 0x4e5   :  { %4254 = vrcp.f32 %v1036_v25 }
 0x4e6   :  { %4256 = vrcp.f32 %v1265_v13 }
 0x4e7   :  { %4258 = vrcp.f32 %v1268_v17 }
 0x4f2   :  { %v4255_v24 = vpop.eup %4254 }
 0x4f3   :  { %v1042_v26 = vmul.f32 %v4255_v24, %v5122_v53  ;;  %v4257_v31 = vpop.eup %4256 }
 0x4f4   :  { %v1275_v32 = vmul.f32 %v4257_v31, %v5109_v44  ;;  %v4259_v30 = vpop.eup %4258 }
 0x4f5   :  { %3895 = vmatmul.mubr.msk.f32.gmra.mxu1 %vm539_vm4, %v1042_v26  ;;  %v1276_v35 = vmul.f32 %v4259_v30, %v5113_v42 }
 0x4f6   :  { %3918 = vmatprep.mubr.msk.f32.mxu1 %vm4629_vm0, %v4628_v0 }
 0x4f8   :  { %v1271_v28 = vpop.xlane.xlu0 %1270 }
 0x4f9   :  { %4260 = vrcp.f32 %v1271_v28 }
 0x4fc   :  { %v1279_v33 = vpop.permute.xlu0 %1278 }
 0x4fd   :  { %3917 = vmatpush3.msra.mxu1 %v1279_v33 }
 0x4fe   :  { %3919 = vmatmul.mubr.msk.f32.vlgmr.msra.gmra.mxu1 %vm539_vm4, %v1275_v32  ;;  %3944 = vmatprep.subr.mxu1 %v4628_v0 }
 0x4ff   :  { %3921 = vmatprep.mubr.msk.f32.mxu1 %vm4629_vm0, %v4628_v0 }
 0x502   :  { %3922 = vmatmul.mubr.msk.f32.gmra.mxu1 %vm539_vm4, %v1276_v35 }
 0x503   :  { %3924 = vmatprep.mubr.msk.f32.mxu1 %vm4629_vm0, %v4628_v0 }
 0x506   :  { %v4261_v36 = vpop.eup %4260 }
 0x507   :  { %v1277_v37 = vmul.f32 %v4261_v36, %v5127_v59 }
 0x509   :  { %3925 = vmatmul.mubr.msk.f32.gmra.mxu1 %vm539_vm4, %v1277_v37 }
 0x50a   :  { %3952 = vmatprep.mubr.msk.f32.mxu1 %vm4629_vm0, %v4628_v0 }
 0x570   :  { %v657_v39 = vpop.f32.mrf.mxu1 }
 0x572   :  { %v3830_v40 = vpop.f32.mrf.mxu1 }
 0x574   :  { %v662_v41 = vpop.f32.mrf.mxu1 }
 0x576   :  { %v3833_v38 = vpop.f32.mrf.mxu1 }
 0x578   :  { %v667_v43 = vpop.f32.mrf.mxu1 }
 0x57a   :  { %v3836_v44 = vpop.f32.mrf.mxu1 }
 0x57c   :  { %v892_v45 = vpop.f32.mrf.mxu1 }
 0x57d   :  { %1379 = vrot.lane.b32.xlu1 %v892_v45, %s4618_s30 }
 0x57e   :  { %v3860_v42 = vpop.f32.mrf.mxu1 }
 0x580   :  { %v897_v46 = vpop.f32.mrf.mxu1 }
 0x581   :  { %1381 = vrot.lane.b32.xlu0 %v897_v46, %s4618_s30 }
 0x582   :  { %v3863_v53 = vpop.f32.mrf.mxu1 }
 0x584   :  { %v902_v55 = vpop.f32.mrf.mxu1 }
 0x586   :  { %v3866_v56 = vpop.f32.mrf.mxu1 }
 0x587   :  { %v1587_v56 = vld [vmem:[#allocation10 + $0x18] sm:$0xff] }
 0x588   :  { %v1127_v27 = vpop.f32.mrf.mxu1  ;;  %3945 = vmatpush3.msra.mxu1 %v1587_v56 }
 0x589   :  { %1391 = vrot.lane.b32.xlu0 %v1127_v27, %s4613_s22  ;;  %3946 = vmatprep.subr.mxu1 %v4628_v0  ;;  %v1586_v27 = vld [vmem:[#allocation10 + $0x10] sm:$0xff] }
 0x58a   :  { %v3890_v58 = vpop.f32.mrf.mxu1  ;;  %3947 = vmatpush3.msra.mxu1 %v1586_v27 }
 0x58b   :  { %v1585_v58 = vld [vmem:[#allocation10 + $0x8] sm:$0xff]  ;;  %3948 = vmatprep.subr.mxu1 %v4628_v0 }
 0x58c   :  { %v1132_v59 = vpop.f32.mrf.mxu1  ;;  %3949 = vmatpush3.msra.mxu1 %v1585_v58 }
 0x58d   :  { %1393 = vrot.lane.b32.xlu1 %v1132_v59, %s4613_s22  ;;  %v1584_v59 = vld [vmem:[#allocation10] sm:$0xff]  ;;  %3950 = vmatprep.subr.mxu1 %v4628_v0 }
 0x58e   :  { %v3893_v34 = vpop.f32.mrf.mxu1  ;;  %3951 = vmatpush3.msra.mxu1 %v1584_v59 }
 0x58f   :  { %3978 = vmatprep.subr.mxu1 %v4628_v0  ;;  %v1690_v34 = vld [vmem:[#allocation13 + $0x18] sm:$0xff] }
 0x5b5   :  { %v1137_v60 = vpop.f32.mrf.mxu1 }
 0x5b7   :  { %v3896_v61 = vpop.f32.mrf.mxu1 }
 0x5be   :  { %v1362_v63 = vpop.f32.mrf.mxu1 }
 0x5bf   :  { %1403 = vrot.lane.b32.xlu1 %v1362_v63, %s4641_s2 }
 0x5c0   :  { %v3920_v1 = vpop.f32.mrf.mxu1 }
 0x5c2   :  { %v1367_v47 = vpop.f32.mrf.mxu1 }
 0x5c3   :  { %1383 = vrot.lane.b32.xlu1 %v902_v55, %s4618_s30  ;;  %1405 = vrot.lane.b32.xlu0 %v1367_v47, %s4641_s2 }
 0x5c4   :  { %v3923_v2 = vpop.f32.mrf.mxu1 }
 0x5c7   :  { %1395 = vrot.lane.b32.xlu0 %v1137_v60, %s4613_s22 }
 0x5c9   :  { %v1372_v3 = vpop.f32.mrf.mxu1 }
 0x5ca   :  { %1407 = vrot.lane.b32.xlu1 %v1372_v3, %s4641_s2 }
 0x5cb   :  { %v3926_v57 = vpop.f32.mrf.mxu1 }
 0x5ef   :  { %v1380_v6 = vpop.permute.xlu1 %1379 }
 0x5f0   :  { %v1412_v50 = vsel %vm446_vm3, %v657_v39, %v1380_v6 }
 0x5f3   :  { %v1382_v22 = vpop.permute.xlu0 %1381 }
 0x5f4   :  { %v1413_v9 = vsel %vm446_vm3, %v662_v41, %v1382_v22  ;;  %v3532_v22 = vld [vmem:[#allocation7] ss:$0 sm:$0xff] }
 0x5fb   :  { %v1392_v5 = vpop.permute.xlu0 %1391 }
 0x5fc   :  { %v1415_v7 = vsel %vm246_vm1, %v1412_v50, %v1392_v5  ;;  %v3533_v5 = vld [vmem:[#allocation9] ss:$0 sm:$0xff] }
 0x5ff   :  { %v1394_v62 = vpop.permute.xlu1 %1393 }
 0x600   :  { %v1416_v52 = vsel %vm246_vm1, %v1413_v9, %v1394_v62 }
 0x631   :  { %v1404_v49 = vpop.permute.xlu1 %1403 }
 0x632   :  { %v1418_v4 = vsel %vm539_vm4, %v1415_v7, %v1404_v49 }
 0x633   :  { %3936 = vmatmul.mubr.msk.f32.vlgmr.msra.gmra.mxu0 %vm347_vm2, %v1418_v4 }
 0x634   :  { %3938 = vmatprep.mubr.msk.f32.mxu0 %vm4629_vm0, %v4628_v0  ;;  %3962 = vmatpush3.msra.mxu0 %v1690_v34 }
 0x635   :  { %v1406_v10 = vpop.permute.xlu0 %1405  ;;  %v1384_v11 = vpop.permute.xlu1 %1383  ;;  %3963 = vmatprep.subr.mxu0 %v4628_v0 }
 0x636   :  { %v1419_v8 = vsel %vm539_vm4, %v1416_v52, %v1406_v10  ;;  %v1414_v14 = vsel %vm446_vm3, %v667_v43, %v1384_v11 }
 0x637   :  { %3939 = vmatmul.mubr.msk.f32.gmra.mxu0 %vm347_vm2, %v1419_v8 }
 0x638   :  { %3941 = vmatprep.mubr.msk.f32.mxu0 %vm4629_vm0, %v4628_v0 }
 0x639   :  { %v1396_v13 = vpop.permute.xlu0 %1395 }
 0x63a   :  { %v1417_v16 = vsel %vm246_vm1, %v1414_v14, %v1396_v13  ;;  %v1689_v14 = vld [vmem:[#allocation13 + $0x10] sm:$0xff] }
 0x63b   :  { %3964 = vmatpush3.msra.mxu0 %v1689_v14  ;;  %v3543_v14 = vld [vmem:[#allocation18] ss:$0 sm:$0xff] }
 0x63c   :  { %v1408_v17 = vpop.permute.xlu1 %1407  ;;  %3965 = vmatprep.subr.mxu0 %v4628_v0 }
 0x63d   :  { %v1420_v20 = vsel %vm539_vm4, %v1417_v16, %v1408_v17  ;;  %v1688_v16 = vld [vmem:[#allocation13 + $0x8] sm:$0xff]  ;;  %v1687_v17 = vld [vmem:[#allocation13] sm:$0xff] }
 0x63e   :  { %3942 = vmatmul.mubr.msk.f32.gmra.mxu0 %vm347_vm2, %v1420_v20  ;;  %v3534_v20 = vld [vmem:[#allocation12] ss:$0 sm:$0xff] }
 0x63f   :  { %3969 = vmatprep.mubr.msk.f32.mxu0 %vm4629_vm0, %v4628_v0  ;;  %3966 = vmatpush3.msra.mxu0 %v1688_v16 }
 0x640   :  { %3967 = vmatprep.subr.mxu0 %v4628_v0 }
 0x641   :  { %3968 = vmatpush3.msra.mxu0 %v1687_v17 }
 0x642   :  { %3995 = vmatprep.subr.mxu0 %v4628_v0 }
 0x6f3   :  { %v1507_v21 = vpop.f32.mrf.mxu0 }
 0x6f4   :  { %v1508_v23 = vadd.f32 %v3528_v19, %v1507_v21 }
 0x6f5   :  { %v3937_v25 = vpop.f32.mrf.mxu0 }
 0x6f6   :  { %v1521_v24 = vadd.f32 %v1508_v23, %v4851_v12 }
 0x6f7   :  { %v1512_v26 = vpop.f32.mrf.mxu0 }
 0x6f8   :  { %v1513_v28 = vadd.f32 %v3528_v19, %v1512_v26  ;;  %v1526_v31 = vsel %vm347_vm2, %v1521_v24, 0.0 }
 0x6f9   :  { %1527 = vadd.xlane.f32.xlu0 %v1526_v31  ;;  %v3940_v32 = vpop.f32.mrf.mxu0 }
 0x6fa   :  { %v1522_v33 = vadd.f32 %v1513_v28, %v4857_v15 }
 0x6fc   :  { %v1529_v30 = vsel %vm347_vm2, %v1522_v33, 0.0 }
 0x6fd   :  { %1530 = vadd.xlane.f32.xlu1 %v1529_v30 }
 0x6fe   :  { %v1517_v35 = vpop.f32.mrf.mxu0 }
 0x6ff   :  { %v1518_v36 = vadd.f32 %v3528_v19, %v1517_v35 }
 0x700   :  { %v3943_v37 = vpop.f32.mrf.mxu0 }
 0x701   :  { %v1523_v39 = vadd.f32 %v1518_v36, %v4863_v18  ;;  %v3538_v36 = vld [vmem:[#allocation15] ss:$0 sm:$0xff] }
 0x703   :  { %v1532_v40 = vsel %vm347_vm2, %v1523_v39, 0.0 }
 0x704   :  { %1533 = vadd.xlane.f32.xlu0 %v1532_v40 }
 0x782   :  { %v1528_v12 = vpop.xlane.xlu0 %1527 }
 0x783   :  { %v1536_v41 = vmul.f32 0.03125, %v1528_v12 }
 0x785   :  { %v1539_v38 = vsub.f32 %v1521_v24, %v1536_v41 }
 0x786   :  { %v1531_v43 = vpop.xlane.xlu1 %1530 }
 0x787   :  { %v1537_v44 = vmul.f32 0.03125, %v1531_v43  ;;  %v1542_v45 = vmul.f32 %v1539_v38, %v1539_v38 }
 0x789   :  { %v1540_v42 = vsub.f32 %v1522_v33, %v1537_v44  ;;  %v1545_v15 = vsel %vm347_vm2, %v1542_v45, 0.0 }
 0x78a   :  { %1546 = vadd.xlane.f32.xlu0 %v1545_v15 }
 0x78b   :  { %v1543_v46 = vmul.f32 %v1540_v42, %v1540_v42 }
 0x78d   :  { %v1534_v48 = vpop.xlane.xlu0 %1533  ;;  %v1548_v51 = vsel %vm347_vm2, %v1543_v46, 0.0 }
 0x78e   :  { %v1538_v53 = vmul.f32 0.03125, %v1534_v48  ;;  %1549 = vadd.xlane.f32.xlu1 %v1548_v51 }
 0x790   :  { %v1541_v18 = vsub.f32 %v1523_v39, %v1538_v53 }
 0x792   :  { %v1544_v54 = vmul.f32 %v1541_v18, %v1541_v18 }
 0x794   :  { %v1551_v55 = vsel %vm347_vm2, %v1544_v54, 0.0 }
 0x795   :  { %1552 = vadd.xlane.f32.xlu0 %v1551_v55 }
 0x813   :  { %v1547_v29 = vpop.xlane.xlu0 %1546 }
 0x814   :  { %v1554_v60 = vmul.f32 0.03125, %v1547_v29 }
 0x816   :  { %v1557_v61 = vadd.f32 1e-05, %v1554_v60 }
 0x817   :  { %v1550_v63 = vpop.xlane.xlu1 %1549 }
 0x818   :  { %4262 = vrsqrt.f32 %v1557_v61  ;;  %v1555_v1 = vmul.f32 0.03125, %v1550_v63 }
 0x81a   :  { %v1558_v47 = vadd.f32 1e-05, %v1555_v1 }
 0x81c   :  { %4264 = vrsqrt.f32 %v1558_v47 }
 0x81e   :  { %v1553_v2 = vpop.xlane.xlu0 %1552 }
 0x81f   :  { %v1556_v3 = vmul.f32 0.03125, %v1553_v2 }
 0x821   :  { %v1559_v57 = vadd.f32 1e-05, %v1556_v3  ;;  %v3547_v3 = vld [vmem:[%s5739_s4 + $0x38] sm:$0xff] }
 0x823   :  { %4266 = vrsqrt.f32 %v1559_v57  ;;  %v3546_v57 = vld [vmem:[%s5739_s4 + $0x30] sm:$0xff] }
 0x825   :  { %v4263_v6 = vpop.eup %4262 }
 0x826   :  { %v1563_v62 = vmul.f32 %v4263_v6, %v1539_v38  ;;  %v3545_v6 = vld [vmem:[%s5739_s4 + $0x28] sm:$0xff] }
 0x828   :  { %v1572_v50 = vmul.f32 %v3532_v22, %v1563_v62 }
 0x829   :  { %v4265_v7 = vpop.eup %4264 }
 0x82a   :  { %v1581_v49 = vadd.f32 %v3533_v5, %v1572_v50  ;;  %v1564_v4 = vmul.f32 %v4265_v7, %v1540_v42 }
 0x82c   :  { %3953 = vmatmul.mubr.msk.f32.vlgmr.msra.gmra.mxu1 %vm347_vm2, %v1581_v49  ;;  %v1573_v9 = vmul.f32 %v3532_v22, %v1564_v4 }
 0x82d   :  { %3955 = vmatprep.mubr.msk.f32.mxu1 %vm4629_vm0, %v4628_v0  ;;  %3979 = vmatpush3.msra.mxu1 %v3547_v3  ;;  %v4334_v3 = vld [vmem:[%s5761_s29] sm:$0xff] }
 0x82e   :  { %v1582_v52 = vadd.f32 %v3533_v5, %v1573_v9  ;;  %3980 = vmatprep.subr.mxu1 %v4628_v0 }
 0x82f   :  { %3981 = vmatpush3.msra.mxu1 %v3546_v57 }
 0x830   :  { %v4267_v10 = vpop.eup %4266  ;;  %3956 = vmatmul.mubr.msk.f32.gmra.mxu1 %vm347_vm2, %v1582_v52  ;;  %3982 = vmatprep.subr.mxu1 %v4628_v0 }
 0x831   :  { %3958 = vmatprep.mubr.msk.f32.mxu1 %vm4629_vm0, %v4628_v0  ;;  %v1565_v8 = vmul.f32 %v4267_v10, %v1541_v18  ;;  %3983 = vmatpush3.msra.mxu1 %v3545_v6 }
 0x832   :  { %3984 = vmatprep.subr.mxu1 %v4628_v0 }
 0x833   :  { %v1574_v11 = vmul.f32 %v3532_v22, %v1565_v8  ;;  %v3544_v22 = vld [vmem:[%s5739_s4 + $0x20] sm:$0xff] }
 0x834   :  { %3985 = vmatpush3.msra.mxu1 %v3544_v22 }
 0x835   :  { %v1583_v13 = vadd.f32 %v3533_v5, %v1574_v11  ;;  %4010 = vmatprep.subr.mxu1 %v4628_v0  ;;  %v3542_v11 = vld [vmem:[#allocation16] ss:$0 sm:$0xff] }
 0x837   :  { %3959 = vmatmul.mubr.msk.f32.gmra.mxu1 %vm347_vm2, %v1583_v13 }
 0x838   :  { %3986 = vmatprep.mubr.msk.f32.mxu1 %vm4629_vm0, %v4628_v0 }
 0x8ec   :  { %v1670_v19 = vpop.f32.mrf.mxu1 }
 0x8ed   :  { %v1671_v21 = vadd.f32 %v3534_v20, %v1670_v19 }
 0x8ee   :  { %v3954_v23 = vpop.f32.mrf.mxu1 }
 0x8ef   :  { %v1684_v25 = vmax.f32 %v1671_v21, 0.0 }
 0x8f0   :  { %v1675_v24 = vpop.f32.mrf.mxu1 }
 0x8f1   :  { %v1676_v26 = vadd.f32 %v3534_v20, %v1675_v24  ;;  %3970 = vmatmul.mubr.msk.f32.vlgmr.msra.gmra.mxu0 %vm347_vm2, %v1684_v25 }
 0x8f2   :  { %v3957_v28 = vpop.f32.mrf.mxu1  ;;  %3972 = vmatprep.mubr.msk.f32.mxu0 %vm4629_vm0, %v4628_v0 }
 0x8f3   :  { %v1685_v31 = vmax.f32 %v1676_v26, 0.0 }
 0x8f5   :  { %3973 = vmatmul.mubr.msk.f32.gmra.mxu0 %vm347_vm2, %v1685_v31 }
 0x8f6   :  { %3975 = vmatprep.mubr.msk.f32.mxu0 %vm4629_vm0, %v4628_v0 }
 0x8f7   :  { %v1680_v32 = vpop.f32.mrf.mxu1 }
 0x8f8   :  { %v1681_v33 = vadd.f32 %v3534_v20, %v1680_v32 }
 0x8f9   :  { %v3960_v30 = vpop.f32.mrf.mxu1 }
 0x8fa   :  { %v1686_v35 = vmax.f32 %v1681_v33, 0.0  ;;  %v3549_v33 = vld [vmem:[%s5740_s5 + $0x1] ss:$0 sm:$0xff] }
 0x8fc   :  { %3976 = vmatmul.mubr.msk.f32.gmra.mxu0 %vm347_vm2, %v1686_v35 }
 0x8fd   :  { %4001 = vmatprep.mubr.msk.f32.mxu0 %vm4629_vm0, %v4628_v0 }
 0x9b1   :  { %v1773_v37 = vpop.f32.mrf.mxu0 }
 0x9b2   :  { %v1774_v39 = vadd.f32 %v3538_v36, %v1773_v37 }
 0x9b3   :  { %v3971_v40 = vpop.f32.mrf.mxu0 }
 0x9b4   :  { %v1787_v12 = vadd.f32 %v1774_v39, %v1581_v49 }
 0x9b5   :  { %v1778_v41 = vpop.f32.mrf.mxu0 }
 0x9b6   :  { %v1779_v38 = vadd.f32 %v3538_v36, %v1778_v41  ;;  %v1792_v43 = vsel %vm347_vm2, %v1787_v12, 0.0 }
 0x9b7   :  { %1793 = vadd.xlane.f32.xlu1 %v1792_v43  ;;  %v3974_v44 = vpop.f32.mrf.mxu0 }
 0x9b8   :  { %v1788_v45 = vadd.f32 %v1779_v38, %v1582_v52 }
 0x9ba   :  { %v1795_v42 = vsel %vm347_vm2, %v1788_v45, 0.0 }
 0x9bb   :  { %1796 = vadd.xlane.f32.xlu0 %v1795_v42 }
 0x9bc   :  { %v1783_v15 = vpop.f32.mrf.mxu0 }
 0x9bd   :  { %v1784_v46 = vadd.f32 %v3538_v36, %v1783_v15 }
 0x9be   :  { %v3977_v48 = vpop.f32.mrf.mxu0 }
 0x9bf   :  { %v1789_v51 = vadd.f32 %v1784_v46, %v1583_v13 }
 0x9c1   :  { %v1798_v53 = vsel %vm347_vm2, %v1789_v51, 0.0 }
 0x9c2   :  { %1799 = vadd.xlane.f32.xlu1 %v1798_v53 }
 0xa40   :  { %v1794_v18 = vpop.xlane.xlu1 %1793 }
 0xa41   :  { %v1801_v54 = vmul.f32 0.03125, %v1794_v18 }
 0xa43   :  { %v1804_v55 = vsub.f32 %v1787_v12, %v1801_v54 }
 0xa44   :  { %v1797_v56 = vpop.xlane.xlu0 %1796 }
 0xa45   :  { %v1802_v27 = vmul.f32 0.03125, %v1797_v56  ;;  %v1807_v58 = vmul.f32 %v1804_v55, %v1804_v55 }
 0xa47   :  { %v1805_v59 = vsub.f32 %v1788_v45, %v1802_v27  ;;  %v1810_v34 = vsel %vm347_vm2, %v1807_v58, 0.0 }
 0xa48   :  { %1811 = vadd.xlane.f32.xlu0 %v1810_v34 }
 0xa49   :  { %v1808_v29 = vmul.f32 %v1805_v59, %v1805_v59 }
 0xa4b   :  { %v1800_v60 = vpop.xlane.xlu1 %1799  ;;  %v1813_v61 = vsel %vm347_vm2, %v1808_v29, 0.0 }
 0xa4c   :  { %v1803_v63 = vmul.f32 0.03125, %v1800_v60  ;;  %1814 = vadd.xlane.f32.xlu1 %v1813_v61 }
 0xa4e   :  { %v1806_v1 = vsub.f32 %v1789_v51, %v1803_v63 }
 0xa50   :  { %v1809_v47 = vmul.f32 %v1806_v1, %v1806_v1 }
 0xa52   :  { %v1816_v2 = vsel %vm347_vm2, %v1809_v47, 0.0 }
 0xa53   :  { %1817 = vadd.xlane.f32.xlu0 %v1816_v2 }
 0xad1   :  { %v1812_v62 = vpop.xlane.xlu0 %1811 }
 0xad2   :  { %v1819_v5 = vmul.f32 0.03125, %v1812_v62 }
 0xad4   :  { %v1822_v50 = vadd.f32 1e-05, %v1819_v5  ;;  %v4335_v5 = vld [vmem:[%s5761_s29 + $0x8] sm:$0xff] }
 0xad5   :  { %v1815_v7 = vpop.xlane.xlu1 %1814 }
 0xad6   :  { %4268 = vrsqrt.f32 %v1822_v50  ;;  %v1820_v49 = vmul.f32 0.03125, %v1815_v7 }
 0xad8   :  { %v1823_v4 = vadd.f32 1e-05, %v1820_v49 }
 0xada   :  { %4270 = vrsqrt.f32 %v1823_v4 }
 0xadc   :  { %v1818_v9 = vpop.xlane.xlu0 %1817 }
 0xadd   :  { %v1821_v52 = vmul.f32 0.03125, %v1818_v9  ;;  %v4336_v9 = vld [vmem:[%s5761_s29 + $0x10] sm:$0xff] }
 0xadf   :  { %v1824_v10 = vadd.f32 1e-05, %v1821_v52 }
 0xae1   :  { %4272 = vrsqrt.f32 %v1824_v10 }
 0xae3   :  { %v4269_v8 = vpop.eup %4268 }
 0xae4   :  { %v1828_v13 = vmul.f32 %v4269_v8, %v1804_v55 }
 0xae6   :  { %v1837_v16 = vmul.f32 %v3542_v11, %v1828_v13 }
 0xae7   :  { %v4271_v17 = vpop.eup %4270 }
 0xae8   :  { %v5293_v20 = vadd.f32 %v3543_v14, %v1837_v16  ;;  %v1829_v19 = vmul.f32 %v4271_v17, %v1805_v59 }
 0xaea   :  { %3987 = vmatmul.mubr.msk.f32.vlgmr.msra.gmra.mxu1 %vm347_vm2, %v5293_v20  ;;  %v1838_v21 = vmul.f32 %v3542_v11, %v1829_v19 }
 0xaeb   :  { %3989 = vmatprep.mubr.msk.f32.mxu1 %vm4629_vm0, %v4628_v0 }
 0xaec   :  { %v5299_v23 = vadd.f32 %v3543_v14, %v1838_v21 }
 0xaee   :  { %v4273_v25 = vpop.eup %4272  ;;  %3990 = vmatmul.mubr.msk.f32.gmra.mxu1 %vm347_vm2, %v5299_v23 }
 0xaef   :  { %3992 = vmatprep.mubr.msk.f32.mxu1 %vm4629_vm0, %v4628_v0  ;;  %v1830_v24 = vmul.f32 %v4273_v25, %v1806_v1 }
 0xaf1   :  { %v1839_v26 = vmul.f32 %v3542_v11, %v1830_v24 }
 0xaf3   :  { %v5305_v28 = vadd.f32 %v3543_v14, %v1839_v26 }
 0xaf5   :  { %3993 = vmatmul.mubr.msk.f32.gmra.mxu1 %vm347_vm2, %v5305_v28 }
 0xaf6   :  { %4016 = vmatprep.mubr.msk.f32.mxu1 %vm4629_vm0, %v4628_v0 }
 0xbaa   :  { %v1937_v31 = vpop.f32.mrf.mxu1 }
 0xbab   :  { %v5322_v40 = vadd.f32 %v3549_v33, %v1937_v31 }
 0xbac   :  { %v3988_v32 = vpop.f32.mrf.mxu1 }
 0xbae   :  { %v1942_v30 = vpop.f32.mrf.mxu1 }
 0xbaf   :  { %v5314_v35 = vadd.f32 %v3549_v33, %v1942_v30 }
 0xbb0   :  { %v3991_v36 = vpop.f32.mrf.mxu1 }
 0xbb1   :  { %1956 = vrot.lane.b32.xlu0 %v5314_v35, %s4630_s16 }
 0xbb5   :  { %2191 = vrot.lane.b32.xlu0 %v5314_v35, %s4631_s24  ;;  %v1947_v37 = vpop.f32.mrf.mxu1 }
 0xbb6   :  { %v5320_v39 = vadd.f32 %v3549_v33, %v1947_v37 }
 0xbb7   :  { %v3994_v12 = vpop.f32.mrf.mxu1 }
 0xbb8   :  { %1958 = vrot.lane.b32.xlu1 %v5320_v39, %s4630_s16 }
 0xbb9   :  { %2183 = vrot.lane.b32.xlu0 %v5322_v40, %s4633_s10 }
 0xbbc   :  { %1954 = vrot.lane.b32.xlu1 %v5322_v40, %s4630_s16 }
 0xbbd   :  { %2185 = vrot.lane.b32.xlu0 %v5314_v35, %s4633_s10 }
 0xbc0   :  { %2193 = vrot.lane.b32.xlu1 %v5320_v39, %s4631_s24 }
 0xbc1   :  { %2187 = vrot.lane.b32.xlu0 %v5320_v39, %s4633_s10 }
 0xbc4   :  { %2189 = vrot.lane.b32.xlu1 %v5322_v40, %s4631_s24 }
 0xbc5   :  { %2418 = vrot.lane.b32.xlu0 %v5322_v40, %s4635_s13 }
 0xbc8   :  { %2428 = vrot.lane.b32.xlu1 %v5320_v39, %s4632_s3 }
 0xbc9   :  { %2420 = vrot.lane.b32.xlu0 %v5314_v35, %s4635_s13 }
 0xbcc   :  { %2426 = vrot.lane.b32.xlu1 %v5314_v35, %s4632_s3 }
 0xbcd   :  { %2422 = vrot.lane.b32.xlu0 %v5320_v39, %s4635_s13 }
 0xbd0   :  { %2424 = vrot.lane.b32.xlu1 %v5322_v40, %s4632_s3 }
 0xbd1   :  { %2653 = vrot.lane.b32.xlu0 %v5322_v40, %s4636_s26 }
 0xbd4   :  { %2663 = vrot.lane.b32.xlu1 %v5320_v39, %s4634_s25 }
 0xbd5   :  { %2657 = vrot.lane.b32.xlu0 %v5320_v39, %s4636_s26 }
 0xbd8   :  { %2661 = vrot.lane.b32.xlu1 %v5314_v35, %s4634_s25 }
 0xbd9   :  { %2085 = vrot.lane.b32.xlu0 %v5322_v40, %s4637_s12 }
 0xbdc   :  { %2659 = vrot.lane.b32.xlu1 %v5322_v40, %s4634_s25 }
 0xbdd   :  { %2320 = vrot.lane.b32.xlu0 %v5322_v40, %s4638_s15 }
 0xbe0   :  { %2655 = vrot.lane.b32.xlu1 %v5314_v35, %s4636_s26 }
 0xbe1   :  { %2089 = vrot.lane.b32.xlu0 %v5320_v39, %s4637_s12 }
 0xbe4   :  { %2087 = vrot.lane.b32.xlu1 %v5314_v35, %s4637_s12 }
 0xbe5   :  { %2324 = vrot.lane.b32.xlu0 %v5320_v39, %s4638_s15 }
 0xbe8   :  { %2322 = vrot.lane.b32.xlu1 %v5314_v35, %s4638_s15 }
 0xc23   :  { %v1957_v41 = vpop.permute.xlu0 %1956 }
 0xc27   :  { %v2192_v38 = vpop.permute.xlu0 %2191 }
 0xc2a   :  { %v1959_v43 = vpop.permute.xlu1 %1958 }
 0xc2b   :  { %v2184_v44 = vpop.permute.xlu0 %2183  ;;  %3996 = vmatpush3.xpose.msk.msra.mxu0 %vm446_vm3, %v1959_v43 }
 0xc2c   :  { %3997 = vmatprep.subr.mxu0 %v4628_v0 }
 0xc2e   :  { %v1955_v45 = vpop.permute.xlu1 %1954 }
 0xc2f   :  { %v2186_v42 = vpop.permute.xlu0 %2185  ;;  %3998 = vmatpush3.xpose.msk.msra.mxu0 %vm446_vm3, %v1957_v41 }
 0xc30   :  { %3999 = vmatprep.subr.mxu0 %v4628_v0 }
 0xc32   :  { %v2194_v15 = vpop.permute.xlu1 %2193 }
 0xc33   :  { %v2188_v46 = vpop.permute.xlu0 %2187  ;;  %4000 = vmatpush3.xpose.msk.msra.mxu0 %vm446_vm3, %v1955_v45 }
 0xc34   :  { %4025 = vmatprep.subr.mxu0 %v4628_v0 }
 0xc36   :  { %4002 = vmatmul.mubr.msk.f32.vlgmr.msra.gmra.mxu0 %vm446_vm3, %v5322_v40  ;;  %v2190_v48 = vpop.permute.xlu1 %2189 }
 0xc37   :  { %v2419_v51 = vpop.permute.xlu0 %2418  ;;  %4026 = vmatpush3.xpose.msk.msra.mxu0 %vm446_vm3, %v2194_v15  ;;  %4004 = vmatprep.mubr.msk.f32.mxu0 %vm4629_vm0, %v4628_v0 }
 0xc38   :  { %4027 = vmatprep.subr.mxu0 %v4628_v0 }
 0xc3a   :  { %4005 = vmatmul.mubr.msk.f32.gmra.mxu0 %vm446_vm3, %v5314_v35  ;;  %v2429_v53 = vpop.permute.xlu1 %2428 }
 0xc3b   :  { %v2421_v18 = vpop.permute.xlu0 %2420  ;;  %4028 = vmatpush3.xpose.msk.msra.mxu0 %vm446_vm3, %v2192_v38  ;;  %4007 = vmatprep.mubr.msk.f32.mxu0 %vm4629_vm0, %v4628_v0 }
 0xc3c   :  { %4029 = vmatprep.subr.mxu0 %v4628_v0 }
 0xc3e   :  { %4008 = vmatmul.mubr.msk.f32.gmra.mxu0 %vm446_vm3, %v5320_v39  ;;  %v2427_v54 = vpop.permute.xlu1 %2426 }
 0xc3f   :  { %v2423_v55 = vpop.permute.xlu0 %2422  ;;  %4030 = vmatpush3.xpose.msk.msra.mxu0 %vm446_vm3, %v2190_v48  ;;  %4031 = vmatprep.mubr.msk.f32.mxu0 %vm4629_vm0, %v4628_v0 }
 0xc40   :  { %4055 = vmatprep.subr.mxu0 %v4628_v0 }
 0xc42   :  { %4032 = vmatmul.mubr.msk.f32.vlgmr.msra.gmra.mxu0 %vm446_vm3, %v2184_v44  ;;  %v2425_v56 = vpop.permute.xlu1 %2424 }
 0xc43   :  { %v2654_v27 = vpop.permute.xlu0 %2653  ;;  %4056 = vmatpush3.xpose.msk.msra.mxu0 %vm446_vm3, %v2429_v53  ;;  %4034 = vmatprep.mubr.msk.f32.mxu0 %vm4629_vm0, %v4628_v0 }
 0xc44   :  { %4057 = vmatprep.subr.mxu0 %v4628_v0 }
 0xc46   :  { %4035 = vmatmul.mubr.msk.f32.gmra.mxu0 %vm446_vm3, %v2186_v42  ;;  %v2664_v58 = vpop.permute.xlu1 %2663 }
 0xc47   :  { %v2658_v59 = vpop.permute.xlu0 %2657  ;;  %4058 = vmatpush3.xpose.msk.msra.mxu0 %vm446_vm3, %v2427_v54  ;;  %4037 = vmatprep.mubr.msk.f32.mxu0 %vm4629_vm0, %v4628_v0 }
 0xc48   :  { %4059 = vmatprep.subr.mxu0 %v4628_v0 }
 0xc4a   :  { %4038 = vmatmul.mubr.msk.f32.gmra.mxu0 %vm446_vm3, %v2188_v46  ;;  %v2662_v34 = vpop.permute.xlu1 %2661 }
 0xc4b   :  { %v2086_v29 = vpop.permute.xlu0 %2085  ;;  %4060 = vmatpush3.xpose.msk.msra.mxu0 %vm446_vm3, %v2425_v56  ;;  %4061 = vmatprep.mubr.msk.f32.mxu0 %vm4629_vm0, %v4628_v0 }
 0xc4c   :  { %4085 = vmatprep.subr.mxu0 %v4628_v0 }
 0xc4e   :  { %4062 = vmatmul.mubr.msk.f32.vlgmr.msra.gmra.mxu0 %vm446_vm3, %v2419_v51  ;;  %v2660_v60 = vpop.permute.xlu1 %2659 }
 0xc4f   :  { %v5414_v61 = vpop.permute.xlu0 %2320  ;;  %4086 = vmatpush3.xpose.msk.msra.mxu0 %vm446_vm3, %v2664_v58  ;;  %4064 = vmatprep.mubr.msk.f32.mxu0 %vm4629_vm0, %v4628_v0 }
 0xc50   :  { %4087 = vmatprep.subr.mxu0 %v4628_v0 }
 0xc52   :  { %4065 = vmatmul.mubr.msk.f32.gmra.mxu0 %vm446_vm3, %v2421_v18  ;;  %v2656_v63 = vpop.permute.xlu1 %2655 }
 0xc53   :  { %v2090_v1 = vpop.permute.xlu0 %2089  ;;  %4088 = vmatpush3.xpose.msk.msra.mxu0 %vm446_vm3, %v2662_v34  ;;  %4067 = vmatprep.mubr.msk.f32.mxu0 %vm4629_vm0, %v4628_v0 }
 0xc54   :  { %4011 = vmatpush3.msra.mxu1 %v2090_v1  ;;  %4089 = vmatprep.subr.mxu0 %v4628_v0 }
 0xc55   :  { %4012 = vmatprep.subr.mxu1 %v4628_v0 }
 0xc56   :  { %4068 = vmatmul.mubr.msk.f32.gmra.mxu0 %vm446_vm3, %v2423_v55  ;;  %v2088_v47 = vpop.permute.xlu1 %2087 }
 0xc57   :  { %4013 = vmatpush3.msra.mxu1 %v2088_v47  ;;  %4090 = vmatpush3.xpose.msk.msra.mxu0 %vm446_vm3, %v2660_v60  ;;  %v5507_v60 = vpop.permute.xlu0 %2324 }
 0xc58   :  { %4014 = vmatprep.subr.mxu1 %v4628_v0  ;;  %4091 = vmatprep.mubr.msk.f32.mxu0 %vm4629_vm0, %v4628_v0 }
 0xc59   :  { %4015 = vmatpush3.msra.mxu1 %v2086_v29  ;;  %4115 = vmatprep.subr.mxu0 %v4628_v0 }
 0xc5a   :  { %4092 = vmatmul.mubr.msk.f32.vlgmr.msra.gmra.mxu0 %vm446_vm3, %v2654_v27  ;;  %4040 = vmatprep.subr.mxu1 %v4628_v0  ;;  %v5505_v29 = vpop.permute.xlu1 %2322 }
 0xc5b   :  { %4094 = vmatprep.mubr.msk.f32.mxu0 %vm4629_vm0, %v4628_v0 }
 0xc5e   :  { %4095 = vmatmul.mubr.msk.f32.gmra.mxu0 %vm446_vm3, %v2656_v63 }
 0xc5f   :  { %4097 = vmatprep.mubr.msk.f32.mxu0 %vm4629_vm0, %v4628_v0 }
 0xc62   :  { %4098 = vmatmul.mubr.msk.f32.gmra.mxu0 %vm446_vm3, %v2658_v59 }
 0xc63   :  { %4123 = vmatprep.mubr.msk.f32.mxu0 %vm4629_vm0, %v4628_v0 }
 0xcf6   :  { %v2038_v2 = vpop.f32.mrf.mxu0 }
 0xcf7   :  { %v5445_v57 = vadd.f32 %v4334_v3, %v2038_v2 }
 0xcf8   :  { %v4003_v6 = vpop.f32.mrf.mxu0 }
 0xcf9   :  { %v2052_v22 = vsel %vm539_vm4, %v5445_v57, -inf }
 0xcfa   :  { %2053 = vmax.xlane.f32.xlu1 %v2052_v22  ;;  %v2043_v62 = vpop.f32.mrf.mxu0 }
 0xcfb   :  { %v5452_v50 = vadd.f32 %v4335_v5, %v2043_v62 }
 0xcfc   :  { %v4006_v7 = vpop.f32.mrf.mxu0 }
 0xcfd   :  { %v2055_v49 = vsel %vm539_vm4, %v5452_v50, -inf }
 0xcfe   :  { %2056 = vmax.xlane.f32.xlu0 %v2055_v49  ;;  %v2048_v4 = vpop.f32.mrf.mxu0 }
 0xcff   :  { %v5459_v52 = vadd.f32 %v4336_v9, %v2048_v4 }
 0xd00   :  { %v4009_v10 = vpop.f32.mrf.mxu0 }
 0xd01   :  { %v2058_v8 = vsel %vm539_vm4, %v5459_v52, -inf }
 0xd02   :  { %2059 = vmax.xlane.f32.xlu0 %v2058_v8  ;;  %v2273_v11 = vpop.f32.mrf.mxu0 }
 0xd03   :  { %v5463_v13 = vadd.f32 %v4334_v3, %v2273_v11 }
 0xd04   :  { %v4033_v14 = vpop.f32.mrf.mxu0 }
 0xd05   :  { %v2287_v16 = vsel %vm539_vm4, %v5463_v13, -inf }
 0xd06   :  { %2288 = vmax.xlane.f32.xlu1 %v2287_v16  ;;  %v2278_v17 = vpop.f32.mrf.mxu0 }
 0xd07   :  { %v5467_v19 = vadd.f32 %v4335_v5, %v2278_v17 }
 0xd08   :  { %v4036_v21 = vpop.f32.mrf.mxu0 }
 0xd09   :  { %v2290_v25 = vsel %vm539_vm4, %v5467_v19, -inf }
 0xd0a   :  { %2291 = vmax.xlane.f32.xlu0 %v2290_v25  ;;  %v2283_v24 = vpop.f32.mrf.mxu0 }
 0xd0b   :  { %v5471_v26 = vadd.f32 %v4336_v9, %v2283_v24 }
 0xd0c   :  { %v4039_v31 = vpop.f32.mrf.mxu0 }
 0xd0d   :  { %v2293_v32 = vsel %vm539_vm4, %v5471_v26, -inf }
 0xd0e   :  { %2294 = vmax.xlane.f32.xlu1 %v2293_v32  ;;  %v2508_v33 = vpop.f32.mrf.mxu0 }
 0xd0f   :  { %v5475_v30 = vadd.f32 %v4334_v3, %v2508_v33 }
 0xd10   :  { %v4063_v36 = vpop.f32.mrf.mxu0 }
 0xd11   :  { %v2522_v37 = vsel %vm539_vm4, %v5475_v30, -inf }
 0xd12   :  { %2523 = vmax.xlane.f32.xlu0 %v2522_v37  ;;  %v2513_v12 = vpop.f32.mrf.mxu0 }
 0xd13   :  { %v5479_v41 = vadd.f32 %v4335_v5, %v2513_v12 }
 0xd14   :  { %v4066_v38 = vpop.f32.mrf.mxu0 }
 0xd15   :  { %v2525_v43 = vsel %vm539_vm4, %v5479_v41, -inf }
 0xd16   :  { %2526 = vmax.xlane.f32.xlu1 %v2525_v43  ;;  %v2518_v44 = vpop.f32.mrf.mxu0 }
 0xd17   :  { %v5483_v45 = vadd.f32 %v4336_v9, %v2518_v44 }
 0xd18   :  { %v4069_v42 = vpop.f32.mrf.mxu0 }
 0xd19   :  { %v2528_v15 = vsel %vm539_vm4, %v5483_v45, -inf }
 0xd1a   :  { %2529 = vmax.xlane.f32.xlu0 %v2528_v15  ;;  %v2743_v46 = vpop.f32.mrf.mxu0 }
 0xd1b   :  { %v5487_v48 = vadd.f32 %v4334_v3, %v2743_v46 }
 0xd1c   :  { %v4093_v51 = vpop.f32.mrf.mxu0 }
 0xd1d   :  { %v2757_v53 = vsel %vm539_vm4, %v5487_v48, -inf }
 0xd1e   :  { %2758 = vmax.xlane.f32.xlu1 %v2757_v53  ;;  %v2748_v18 = vpop.f32.mrf.mxu0 }
 0xd1f   :  { %v5491_v54 = vadd.f32 %v4335_v5, %v2748_v18 }
 0xd20   :  { %v4096_v55 = vpop.f32.mrf.mxu0 }
 0xd21   :  { %v2760_v56 = vsel %vm539_vm4, %v5491_v54, -inf }
 0xd22   :  { %2761 = vmax.xlane.f32.xlu0 %v2760_v56  ;;  %v2753_v27 = vpop.f32.mrf.mxu0 }
 0xd23   :  { %v5499_v59 = vadd.f32 %v4336_v9, %v2753_v27 }
 0xd24   :  { %v4099_v58 = vpop.f32.mrf.mxu0 }
 0xd25   :  { %v2763_v34 = vsel %vm539_vm4, %v5499_v59, -inf }
 0xd2f   :  { %2557 = vrot.lane.b32.xlu1 %v5314_v35, %s4639_s8 }
 0xd38   :  { %2559 = vrot.lane.b32.xlu0 %v5320_v39, %s4639_s8 }
 0xd53   :  { %2764 = vmax.xlane.f32.xlu1 %v2763_v34 }
 0xd64   :  { %2555 = vrot.lane.b32.xlu1 %v5322_v40, %s4639_s8 }
 0xd83   :  { %v2054_v63 = vpop.xlane.xlu1 %2053 }
 0xd84   :  { %v2061_v1 = vsub.f32 %v5445_v57, %v2054_v63 }
 0xd86   :  { %v2064_v47 = vmul.f32 1.442695, %v2061_v1 }
 0xd87   :  { %v2057_v2 = vpop.xlane.xlu0 %2056 }
 0xd88   :  { %4274 = vpow2.f32 %v2064_v47  ;;  %v2062_v3 = vsub.f32 %v5452_v50, %v2057_v2 }
 0xd8a   :  { %v2066_v6 = vmul.f32 1.442695, %v2062_v3 }
 0xd8b   :  { %v2060_v22 = vpop.xlane.xlu0 %2059 }
 0xd8c   :  { %4276 = vpow2.f32 %v2066_v6  ;;  %v2063_v62 = vsub.f32 %v5459_v52, %v2060_v22 }
 0xd8e   :  { %v2068_v5 = vmul.f32 1.442695, %v2063_v62 }
 0xd8f   :  { %v2289_v7 = vpop.xlane.xlu1 %2288 }
 0xd90   :  { %4278 = vpow2.f32 %v2068_v5  ;;  %v2296_v49 = vsub.f32 %v5463_v13, %v2289_v7 }
 0xd92   :  { %v2299_v4 = vmul.f32 1.442695, %v2296_v49 }
 0xd93   :  { %v2292_v9 = vpop.xlane.xlu0 %2291 }
 0xd94   :  { %4280 = vpow2.f32 %v2299_v4  ;;  %v2297_v57 = vsub.f32 %v5467_v19, %v2292_v9 }
 0xd95   :  { %v5514_v10 = vpop.eup %4274 }
 0xd96   :  { %v2301_v8 = vmul.f32 1.442695, %v2297_v57  ;;  %v2070_v50 = vsel %vm539_vm4, %v5514_v10, 0.0 }
 0xd97   :  { %v2295_v11 = vpop.xlane.xlu1 %2294  ;;  %2071 = vadd.xlane.f32.xlu0 %v2070_v50 }
 0xd98   :  { %4282 = vpow2.f32 %v2301_v8  ;;  %v2298_v52 = vsub.f32 %v5471_v26, %v2295_v11 }
 0xd99   :  { %v5519_v14 = vpop.eup %4276 }
 0xd9a   :  { %v2303_v16 = vmul.f32 1.442695, %v2298_v52  ;;  %v2073_v13 = vsel %vm539_vm4, %v5519_v14, 0.0 }
 0xd9b   :  { %v2524_v17 = vpop.xlane.xlu0 %2523  ;;  %2074 = vadd.xlane.f32.xlu1 %v2073_v13 }
 0xd9c   :  { %4284 = vpow2.f32 %v2303_v16  ;;  %v2531_v19 = vsub.f32 %v5475_v30, %v2524_v17 }
 0xd9d   :  { %v5524_v21 = vpop.eup %4278 }
 0xd9e   :  { %v2534_v25 = vmul.f32 1.442695, %v2531_v19  ;;  %v2076_v24 = vsel %vm539_vm4, %v5524_v21, 0.0 }
 0xd9f   :  { %v2527_v31 = vpop.xlane.xlu1 %2526  ;;  %2077 = vadd.xlane.f32.xlu0 %v2076_v24 }
 0xda0   :  { %4286 = vpow2.f32 %v2534_v25  ;;  %v2532_v26 = vsub.f32 %v5479_v41, %v2527_v31 }
 0xda1   :  { %v5529_v32 = vpop.eup %4280 }
 0xda2   :  { %v2536_v33 = vmul.f32 1.442695, %v2532_v26  ;;  %v2305_v36 = vsel %vm539_vm4, %v5529_v32, 0.0 }
 0xda3   :  { %2306 = vadd.xlane.f32.xlu1 %v2305_v36  ;;  %v2530_v12 = vpop.xlane.xlu0 %2529 }
 0xda4   :  { %4288 = vpow2.f32 %v2536_v33  ;;  %v2533_v34 = vsub.f32 %v5483_v45, %v2530_v12 }
 0xda5   :  { %v5533_v30 = vpop.eup %4282 }
 0xda6   :  { %v2308_v37 = vsel %vm539_vm4, %v5533_v30, 0.0  ;;  %v2538_v63 = vmul.f32 1.442695, %v2533_v34  ;;  %v3592_v34 = vld [vmem:[%s5741_s6 + $0x38] sm:$0xff] }
 0xda7   :  { %v2759_v38 = vpop.xlane.xlu1 %2758  ;;  %2309 = vadd.xlane.f32.xlu0 %v2308_v37  ;;  %4116 = vmatpush3.msra.mxu0 %v3592_v34 }
 0xda8   :  { %v2766_v43 = vsub.f32 %v5487_v48, %v2759_v38  ;;  %4117 = vmatprep.subr.mxu0 %v4628_v0 }
 0xda9   :  { %v5538_v44 = vpop.eup %4284 }
 0xdaa   :  { %v2769_v41 = vmul.f32 1.442695, %v2766_v43  ;;  %v2311_v42 = vsel %vm539_vm4, %v5538_v44, 0.0 }
 0xdab   :  { %v2762_v15 = vpop.xlane.xlu0 %2761  ;;  %2312 = vadd.xlane.f32.xlu1 %v2311_v42  ;;  %v2558_v47 = vpop.permute.xlu1 %2557 }
 0xdac   :  { %4290 = vpow2.f32 %v2769_v41  ;;  %v2767_v46 = vsub.f32 %v5491_v54, %v2762_v15 }
 0xdad   :  { %v5543_v51 = vpop.eup %4286 }
 0xdae   :  { %v2771_v53 = vmul.f32 1.442695, %v2767_v46  ;;  %v2540_v18 = vsel %vm539_vm4, %v5543_v51, 0.0 }
 0xdaf   :  { %2541 = vadd.xlane.f32.xlu1 %v2540_v18 }
 0xdb0   :  { %4292 = vpow2.f32 %v2771_v53 }
 0xdb1   :  { %v5547_v48 = vpop.eup %4288  ;;  %4294 = vpow2.f32 %v2538_v63  ;;  %v3591_v63 = vld [vmem:[%s5741_s6 + $0x30] sm:$0xff] }
 0xdb2   :  { %v2543_v55 = vsel %vm539_vm4, %v5547_v48, 0.0  ;;  %4118 = vmatpush3.msra.mxu0 %v3591_v63 }
 0xdb3   :  { %2544 = vadd.xlane.f32.xlu1 %v2543_v55  ;;  %4119 = vmatprep.subr.mxu0 %v4628_v0 }
 0xdb9   :  { %v5551_v56 = vpop.eup %4290 }
 0xdba   :  { %v2775_v27 = vsel %vm539_vm4, %v5551_v56, 0.0 }
 0xdbb   :  { %2776 = vadd.xlane.f32.xlu1 %v2775_v27 }
 0xdbd   :  { %v5555_v54 = vpop.eup %4292  ;;  %2794 = vrot.lane.b32.xlu0 %v5320_v39, %s4640_s19 }
 0xdbe   :  { %v2778_v58 = vsel %vm539_vm4, %v5555_v54, 0.0  ;;  %v5564_v1 = vpop.eup %4294 }
 0xdbf   :  { %2779 = vadd.xlane.f32.xlu1 %v2778_v58  ;;  %v2546_v2 = vsel %vm539_vm4, %v5564_v1, 0.0 }
 0xdd0   :  { %2792 = vrot.lane.b32.xlu1 %v5314_v35, %s4640_s19  ;;  %v2560_v35 = vpop.permute.xlu0 %2559 }
 0xddc   :  { %2547 = vadd.xlane.f32.xlu0 %v2546_v2  ;;  %v2765_v3 = vpop.xlane.xlu1 %2764 }
 0xddd   :  { %v2768_v39 = vsub.f32 %v5499_v59, %v2765_v3 }
 0xddf   :  { %v2773_v6 = vmul.f32 1.442695, %v2768_v39 }
 0xde0   :  { %v2556_v62 = vpop.permute.xlu1 %2555 }
 0xde1   :  { %4296 = vpow2.f32 %v2773_v6 }
 0xdee   :  { %v5569_v22 = vpop.eup %4296 }
 0xdef   :  { %v2781_v45 = vsel %vm539_vm4, %v5569_v22, 0.0 }
 0xdf0   :  { %2782 = vadd.xlane.f32.xlu0 %v2781_v45 }
 0xe06   :  { %2790 = vrot.lane.b32.xlu0 %v5322_v40, %s4640_s19 }
 0xe20   :  { %v2072_v5 = vpop.xlane.xlu0 %2071 }
 0xe21   :  { %4298 = vrcp.f32 %v2072_v5 }
 0xe24   :  { %v2075_v7 = vpop.xlane.xlu1 %2074 }
 0xe25   :  { %4300 = vrcp.f32 %v2075_v7 }
 0xe28   :  { %v2078_v49 = vpop.xlane.xlu0 %2077 }
 0xe29   :  { %4302 = vrcp.f32 %v2078_v49 }
 0xe2c   :  { %v2307_v59 = vpop.xlane.xlu1 %2306 }
 0xe2d   :  { %4304 = vrcp.f32 %v2307_v59 }
 0xe2e   :  { %v4299_v4 = vpop.eup %4298 }
 0xe2f   :  { %v2082_v9 = vmul.f32 %v4299_v4, %v5514_v10 }
 0xe30   :  { %v2310_v57 = vpop.xlane.xlu0 %2309 }
 0xe31   :  { %4306 = vrcp.f32 %v2310_v57  ;;  %4017 = vmatmul.mubr.msk.f32.vlgmr.msra.gmra.mxu1 %vm539_vm4, %v2082_v9 }
 0xe32   :  { %v4301_v8 = vpop.eup %4300  ;;  %4041 = vmatpush3.msra.mxu1 %v5507_v60  ;;  %4019 = vmatprep.mubr.msk.f32.mxu1 %vm4629_vm0, %v4628_v0 }
 0xe33   :  { %4042 = vmatprep.subr.mxu1 %v4628_v0  ;;  %v2083_v40 = vmul.f32 %v4301_v8, %v5519_v14 }
 0xe34   :  { %4043 = vmatpush3.msra.mxu1 %v5505_v29  ;;  %v2313_v50 = vpop.xlane.xlu1 %2312  ;;  %v2795_v31 = vpop.permute.xlu0 %2794 }
 0xe35   :  { %4044 = vmatprep.subr.mxu1 %v4628_v0  ;;  %4308 = vrcp.f32 %v2313_v50  ;;  %4020 = vmatmul.mubr.msk.f32.gmra.mxu1 %vm539_vm4, %v2083_v40 }
 0xe36   :  { %v4303_v10 = vpop.eup %4302  ;;  %4045 = vmatpush3.msra.mxu1 %v5414_v61  ;;  %4022 = vmatprep.mubr.msk.f32.mxu1 %vm4629_vm0, %v4628_v0 }
 0xe37   :  { %v2084_v60 = vmul.f32 %v4303_v10, %v5524_v21  ;;  %4070 = vmatprep.subr.mxu1 %v4628_v0 }
 0xe38   :  { %v2542_v11 = vpop.xlane.xlu1 %2541 }
 0xe39   :  { %4310 = vrcp.f32 %v2542_v11  ;;  %4023 = vmatmul.mubr.msk.f32.gmra.mxu1 %vm539_vm4, %v2084_v60 }
 0xe3a   :  { %v4305_v29 = vpop.eup %4304  ;;  %4046 = vmatprep.mubr.msk.f32.mxu1 %vm4629_vm0, %v4628_v0 }
 0xe3b   :  { %v2317_v52 = vmul.f32 %v4305_v29, %v5529_v32 }
 0xe3c   :  { %v2545_v14 = vpop.xlane.xlu1 %2544 }
 0xe3d   :  { %4312 = vrcp.f32 %v2545_v14  ;;  %4047 = vmatmul.mubr.msk.f32.vlgmr.msra.gmra.mxu1 %vm539_vm4, %v2317_v52 }
 0xe3e   :  { %v4307_v61 = vpop.eup %4306  ;;  %4071 = vmatpush3.msra.mxu1 %v2560_v35  ;;  %4049 = vmatprep.mubr.msk.f32.mxu1 %vm4629_vm0, %v4628_v0  ;;  %v3589_v35 = vld [vmem:[%s5741_s6 + $0x20] sm:$0xff] }
 0xe3f   :  { %4072 = vmatprep.subr.mxu1 %v4628_v0  ;;  %v2318_v16 = vmul.f32 %v4307_v61, %v5533_v30 }
 0xe40   :  { %4073 = vmatpush3.msra.mxu1 %v2558_v47  ;;  %v3590_v47 = vld [vmem:[%s5741_s6 + $0x28] sm:$0xff] }
 0xe41   :  { %4074 = vmatprep.subr.mxu1 %v4628_v0  ;;  %4050 = vmatmul.mubr.msk.f32.gmra.mxu1 %vm539_vm4, %v2318_v16 }
 0xe42   :  { %v4309_v13 = vpop.eup %4308  ;;  %4075 = vmatpush3.msra.mxu1 %v2556_v62  ;;  %4052 = vmatprep.mubr.msk.f32.mxu1 %vm4629_vm0, %v4628_v0 }
 0xe43   :  { %v2319_v17 = vmul.f32 %v4309_v13, %v5538_v44  ;;  %4100 = vmatprep.subr.mxu1 %v4628_v0  ;;  %4120 = vmatpush3.msra.mxu0 %v3590_v47 }
 0xe44   :  { %v2777_v19 = vpop.xlane.xlu1 %2776  ;;  %4121 = vmatprep.subr.mxu0 %v4628_v0 }
 0xe45   :  { %4053 = vmatmul.mubr.msk.f32.gmra.mxu1 %vm539_vm4, %v2319_v17  ;;  %4122 = vmatpush3.msra.mxu0 %v3589_v35 }
 0xe46   :  { %v4311_v21 = vpop.eup %4310  ;;  %4076 = vmatprep.mubr.msk.f32.mxu1 %vm4629_vm0, %v4628_v0  ;;  %4149 = vmatprep.subr.mxu0 %v4628_v0 }
 0xe47   :  { %v2552_v25 = vmul.f32 %v4311_v21, %v5543_v51 }
 0xe48   :  { %v2780_v24 = vpop.xlane.xlu1 %2779 }
 0xe49   :  { %4077 = vmatmul.mubr.msk.f32.vlgmr.msra.gmra.mxu1 %vm539_vm4, %v2552_v25 }
 0xe4a   :  { %v4313_v26 = vpop.eup %4312  ;;  %4101 = vmatpush3.msra.mxu1 %v2795_v31  ;;  %4079 = vmatprep.mubr.msk.f32.mxu1 %vm4629_vm0, %v4628_v0 }
 0xe4b   :  { %4102 = vmatprep.subr.mxu1 %v4628_v0  ;;  %v2553_v32 = vmul.f32 %v4313_v26, %v5547_v48  ;;  %v3593_v26 = vld [vmem:[#allocation6 + $0x1] ss:$0 sm:$0xff] }
 0xe4c   :  { %v2793_v33 = vpop.permute.xlu1 %2792 }
 0xe4d   :  { %4080 = vmatmul.mubr.msk.f32.gmra.mxu1 %vm539_vm4, %v2553_v32 }
 0xe4e   :  { %4103 = vmatpush3.msra.mxu1 %v2793_v33  ;;  %4082 = vmatprep.mubr.msk.f32.mxu1 %vm4629_vm0, %v4628_v0 }
 0xe4f   :  { %4104 = vmatprep.subr.mxu1 %v4628_v0 }
 0xe65   :  { %v2548_v36 = vpop.xlane.xlu0 %2547 }
 0xe66   :  { %4314 = vrcp.f32 %v2548_v36 }
 0xe67   :  { %4316 = vrcp.f32 %v2777_v19 }
 0xe68   :  { %4318 = vrcp.f32 %v2780_v24 }
 0xe73   :  { %v4315_v30 = vpop.eup %4314 }
 0xe74   :  { %v2554_v37 = vmul.f32 %v4315_v30, %v5564_v1  ;;  %v4317_v38 = vpop.eup %4316 }
 0xe75   :  { %v2787_v43 = vmul.f32 %v4317_v38, %v5551_v56  ;;  %v4319_v41 = vpop.eup %4318 }
 0xe76   :  { %4083 = vmatmul.mubr.msk.f32.gmra.mxu1 %vm539_vm4, %v2554_v37  ;;  %v2788_v42 = vmul.f32 %v4319_v41, %v5555_v54 }
 0xe77   :  { %4106 = vmatprep.mubr.msk.f32.mxu1 %vm4629_vm0, %v4628_v0 }
 0xe79   :  { %v2783_v12 = vpop.xlane.xlu0 %2782 }
 0xe7a   :  { %4320 = vrcp.f32 %v2783_v12 }
 0xe7d   :  { %v2791_v44 = vpop.permute.xlu0 %2790 }
 0xe7e   :  { %4105 = vmatpush3.msra.mxu1 %v2791_v44 }
 0xe7f   :  { %4107 = vmatmul.mubr.msk.f32.vlgmr.msra.gmra.mxu1 %vm539_vm4, %v2787_v43  ;;  %4132 = vmatprep.subr.mxu1 %v4628_v0 }
 0xe80   :  { %4109 = vmatprep.mubr.msk.f32.mxu1 %vm4629_vm0, %v4628_v0 }
 0xe83   :  { %4110 = vmatmul.mubr.msk.f32.gmra.mxu1 %vm539_vm4, %v2788_v42 }
 0xe84   :  { %4112 = vmatprep.mubr.msk.f32.mxu1 %vm4629_vm0, %v4628_v0 }
 0xe87   :  { %v4321_v15 = vpop.eup %4320 }
 0xe88   :  { %v2789_v46 = vmul.f32 %v4321_v15, %v5569_v22 }
 0xe8a   :  { %4113 = vmatmul.mubr.msk.f32.gmra.mxu1 %vm539_vm4, %v2789_v46 }
 0xe8b   :  { %4140 = vmatprep.mubr.msk.f32.mxu1 %vm4629_vm0, %v4628_v0 }
 0xef1   :  { %v2169_v51 = vpop.f32.mrf.mxu1 }
 0xef3   :  { %v4018_v53 = vpop.f32.mrf.mxu1 }
 0xef5   :  { %v2174_v18 = vpop.f32.mrf.mxu1 }
 0xef7   :  { %v4021_v48 = vpop.f32.mrf.mxu1 }
 0xef9   :  { %v2179_v55 = vpop.f32.mrf.mxu1 }
 0xefb   :  { %v4024_v56 = vpop.f32.mrf.mxu1 }
 0xefd   :  { %v2404_v27 = vpop.f32.mrf.mxu1 }
 0xefe   :  { %2891 = vrot.lane.b32.xlu1 %v2404_v27, %s4618_s30 }
 0xeff   :  { %v4048_v54 = vpop.f32.mrf.mxu1 }
 0xf01   :  { %v2409_v58 = vpop.f32.mrf.mxu1 }
 0xf02   :  { %2893 = vrot.lane.b32.xlu0 %v2409_v58, %s4618_s30 }
 0xf03   :  { %v4051_v1 = vpop.f32.mrf.mxu1 }
 0xf05   :  { %v2414_v2 = vpop.f32.mrf.mxu1 }
 0xf07   :  { %v4054_v3 = vpop.f32.mrf.mxu1 }
 0xf08   :  { %v3103_v3 = vld [vmem:[#allocation10 + $0x38] sm:$0xff] }
 0xf09   :  { %v2639_v39 = vpop.f32.mrf.mxu1  ;;  %4133 = vmatpush3.msra.mxu1 %v3103_v3 }
 0xf0a   :  { %2903 = vrot.lane.b32.xlu0 %v2639_v39, %s4613_s22  ;;  %4134 = vmatprep.subr.mxu1 %v4628_v0  ;;  %v3102_v39 = vld [vmem:[#allocation10 + $0x30] sm:$0xff] }
 0xf0b   :  { %v4078_v6 = vpop.f32.mrf.mxu1  ;;  %4135 = vmatpush3.msra.mxu1 %v3102_v39 }
 0xf0c   :  { %v3101_v6 = vld [vmem:[#allocation10 + $0x28] sm:$0xff]  ;;  %4136 = vmatprep.subr.mxu1 %v4628_v0 }
 0xf0d   :  { %v2644_v22 = vpop.f32.mrf.mxu1  ;;  %4137 = vmatpush3.msra.mxu1 %v3101_v6 }
 0xf0e   :  { %2905 = vrot.lane.b32.xlu1 %v2644_v22, %s4613_s22  ;;  %v3100_v22 = vld [vmem:[#allocation10 + $0x20] sm:$0xff]  ;;  %4138 = vmatprep.subr.mxu1 %v4628_v0 }
 0xf0f   :  { %v4081_v45 = vpop.f32.mrf.mxu1  ;;  %4139 = vmatpush3.msra.mxu1 %v3100_v22 }
 0xf10   :  { %4166 = vmatprep.subr.mxu1 %v4628_v0  ;;  %v3208_v45 = vld [vmem:[#allocation13 + $0x38] sm:$0xff] }
 0xf36   :  { %v2649_v62 = vpop.f32.mrf.mxu1 }
 0xf38   :  { %v4084_v5 = vpop.f32.mrf.mxu1 }
 0xf3f   :  { %v2874_v7 = vpop.f32.mrf.mxu1 }
 0xf40   :  { %2915 = vrot.lane.b32.xlu1 %v2874_v7, %s4641_s2 }
 0xf41   :  { %v4108_v49 = vpop.f32.mrf.mxu1 }
 0xf43   :  { %v2879_v59 = vpop.f32.mrf.mxu1 }
 0xf44   :  { %2895 = vrot.lane.b32.xlu1 %v2414_v2, %s4618_s30  ;;  %2917 = vrot.lane.b32.xlu0 %v2879_v59, %s4641_s2 }
 0xf45   :  { %v4111_v4 = vpop.f32.mrf.mxu1 }
 0xf48   :  { %2907 = vrot.lane.b32.xlu0 %v2649_v62, %s4613_s22 }
 0xf4a   :  { %v2884_v9 = vpop.f32.mrf.mxu1 }
 0xf4b   :  { %2919 = vrot.lane.b32.xlu1 %v2884_v9, %s4641_s2 }
 0xf4c   :  { %v4114_v57 = vpop.f32.mrf.mxu1 }
 0xf70   :  { %v2892_v8 = vpop.permute.xlu1 %2891 }
 0xf71   :  { %v2924_v60 = vsel %vm446_vm3, %v2169_v51, %v2892_v8 }
 0xf74   :  { %v2894_v40 = vpop.permute.xlu0 %2893 }
 0xf75   :  { %v2925_v14 = vsel %vm446_vm3, %v2174_v18, %v2894_v40  ;;  %v3597_v40 = vld [vmem:[#allocation7 + $0x1] ss:$0 sm:$0xff] }
 0xf7c   :  { %v2904_v10 = vpop.permute.xlu0 %2903 }
 0xf7d   :  { %v2927_v11 = vsel %vm246_vm1, %v2924_v60, %v2904_v10  ;;  %v3598_v10 = vld [vmem:[#allocation9 + $0x1] ss:$0 sm:$0xff] }
 0xf80   :  { %v2906_v50 = vpop.permute.xlu1 %2905 }
 0xf81   :  { %v2928_v61 = vsel %vm246_vm1, %v2925_v14, %v2906_v50 }
 0xfb2   :  { %v2916_v29 = vpop.permute.xlu1 %2915 }
 0xfb3   :  { %v2930_v52 = vsel %vm539_vm4, %v2927_v11, %v2916_v29 }
 0xfb4   :  { %4124 = vmatmul.mubr.msk.f32.vlgmr.msra.gmra.mxu0 %vm347_vm2, %v2930_v52 }
 0xfb5   :  { %4126 = vmatprep.mubr.msk.f32.mxu0 %vm4629_vm0, %v4628_v0  ;;  %4150 = vmatpush3.msra.mxu0 %v3208_v45 }
 0xfb6   :  { %v2918_v16 = vpop.permute.xlu0 %2917  ;;  %v2896_v17 = vpop.permute.xlu1 %2895  ;;  %4151 = vmatprep.subr.mxu0 %v4628_v0 }
 0xfb7   :  { %v2931_v13 = vsel %vm539_vm4, %v2928_v61, %v2918_v16  ;;  %v2926_v21 = vsel %vm446_vm3, %v2179_v55, %v2896_v17 }
 0xfb8   :  { %4127 = vmatmul.mubr.msk.f32.gmra.mxu0 %vm347_vm2, %v2931_v13 }
 0xfb9   :  { %4129 = vmatprep.mubr.msk.f32.mxu0 %vm4629_vm0, %v4628_v0 }
 0xfba   :  { %v2908_v19 = vpop.permute.xlu0 %2907 }
 0xfbb   :  { %v2929_v25 = vsel %vm246_vm1, %v2926_v21, %v2908_v19  ;;  %v3207_v21 = vld [vmem:[#allocation13 + $0x30] sm:$0xff] }
 0xfbc   :  { %4152 = vmatpush3.msra.mxu0 %v3207_v21  ;;  %v3608_v21 = vld [vmem:[#allocation18 + $0x1] ss:$0 sm:$0xff] }
 0xfbd   :  { %v2920_v24 = vpop.permute.xlu1 %2919  ;;  %4153 = vmatprep.subr.mxu0 %v4628_v0 }
 0xfbe   :  { %v2932_v31 = vsel %vm539_vm4, %v2929_v25, %v2920_v24  ;;  %v3206_v25 = vld [vmem:[#allocation13 + $0x28] sm:$0xff]  ;;  %v3205_v24 = vld [vmem:[#allocation13 + $0x20] sm:$0xff] }
 0xfbf   :  { %4130 = vmatmul.mubr.msk.f32.gmra.mxu0 %vm347_vm2, %v2932_v31  ;;  %v3599_v31 = vld [vmem:[#allocation12 + $0x1] ss:$0 sm:$0xff] }
 0xfc0   :  { %4157 = vmatprep.mubr.msk.f32.mxu0 %vm4629_vm0, %v4628_v0  ;;  %4154 = vmatpush3.msra.mxu0 %v3206_v25 }
 0xfc1   :  { %4155 = vmatprep.subr.mxu0 %v4628_v0 }
 0xfc2   :  { %4156 = vmatpush3.msra.mxu0 %v3205_v24 }
0x1074   :  { %v3021_v32 = vpop.f32.mrf.mxu0 }
0x1075   :  { %v3022_v33 = vadd.f32 %v3593_v26, %v3021_v32 }
0x1076   :  { %v4125_v36 = vpop.f32.mrf.mxu0 }
0x1077   :  { %v3035_v30 = vadd.f32 %v3022_v33, %v5293_v20 }
0x1078   :  { %v3026_v37 = vpop.f32.mrf.mxu0 }
0x1079   :  { %v3027_v12 = vadd.f32 %v3593_v26, %v3026_v37  ;;  %v3042_v38 = vsel %vm347_vm2, %v3035_v30, 0.0 }
0x107a   :  { %3043 = vadd.xlane.f32.xlu0 %v3042_v38  ;;  %v4128_v43 = vpop.f32.mrf.mxu0 }
0x107b   :  { %v3036_v44 = vadd.f32 %v3027_v12, %v5299_v23 }
0x107d   :  { %v3045_v41 = vsel %vm347_vm2, %v3036_v44, 0.0 }
0x107e   :  { %3046 = vadd.xlane.f32.xlu1 %v3045_v41 }
0x107f   :  { %v3031_v42 = vpop.f32.mrf.mxu0 }
0x1080   :  { %v3032_v15 = vadd.f32 %v3593_v26, %v3031_v42 }
0x1081   :  { %v4131_v46 = vpop.f32.mrf.mxu0 }
0x1082   :  { %v3037_v51 = vadd.f32 %v3032_v15, %v5305_v28  ;;  %v3603_v15 = vld [vmem:[#allocation15 + $0x1] ss:$0 sm:$0xff] }
0x1084   :  { %v3048_v53 = vsel %vm347_vm2, %v3037_v51, 0.0 }
0x1085   :  { %3049 = vadd.xlane.f32.xlu0 %v3048_v53 }
0x1103   :  { %v3044_v20 = vpop.xlane.xlu0 %3043 }
0x1104   :  { %v3051_v18 = vmul.f32 0.03125, %v3044_v20 }
0x1106   :  { %v3054_v48 = vsub.f32 %v3035_v30, %v3051_v18 }
0x1107   :  { %v3047_v55 = vpop.xlane.xlu1 %3046 }
0x1108   :  { %v3052_v56 = vmul.f32 0.03125, %v3047_v55  ;;  %v3057_v27 = vmul.f32 %v3054_v48, %v3054_v48 }
0x110a   :  { %v3055_v54 = vsub.f32 %v3036_v44, %v3052_v56  ;;  %v3060_v23 = vsel %vm347_vm2, %v3057_v27, 0.0 }
0x110b   :  { %3061 = vadd.xlane.f32.xlu0 %v3060_v23 }
0x110c   :  { %v3058_v58 = vmul.f32 %v3055_v54, %v3055_v54 }
0x110e   :  { %v3050_v34 = vpop.xlane.xlu0 %3049  ;;  %v3063_v63 = vsel %vm347_vm2, %v3058_v58, 0.0 }
0x110f   :  { %v3053_v1 = vmul.f32 0.03125, %v3050_v34  ;;  %3064 = vadd.xlane.f32.xlu1 %v3063_v63 }
0x1111   :  { %v3056_v28 = vsub.f32 %v3037_v51, %v3053_v1 }
0x1113   :  { %v3059_v47 = vmul.f32 %v3056_v28, %v3056_v28 }
0x1115   :  { %v3066_v2 = vsel %vm347_vm2, %v3059_v47, 0.0 }
0x1116   :  { %3067 = vadd.xlane.f32.xlu0 %v3066_v2 }
0x1194   :  { %v3062_v35 = vpop.xlane.xlu0 %3061 }
0x1195   :  { %v3069_v62 = vmul.f32 0.03125, %v3062_v35 }
0x1197   :  { %v3072_v5 = vadd.f32 1e-05, %v3069_v62 }
0x1198   :  { %v3065_v7 = vpop.xlane.xlu1 %3064 }
0x1199   :  { %4322 = vrsqrt.f32 %v3072_v5  ;;  %v3070_v49 = vmul.f32 0.03125, %v3065_v7 }
0x119b   :  { %v3073_v59 = vadd.f32 1e-05, %v3070_v49 }
0x119d   :  { %4324 = vrsqrt.f32 %v3073_v59 }
0x119f   :  { %v3068_v4 = vpop.xlane.xlu0 %3067 }
0x11a0   :  { %v3071_v9 = vmul.f32 0.03125, %v3068_v4 }
0x11a2   :  { %v3074_v57 = vadd.f32 1e-05, %v3071_v9  ;;  %v3373_v9 = vld [vmem:[#allocation19 + $0x18] sm:$0xff] }
0x11a4   :  { %4326 = vrsqrt.f32 %v3074_v57  ;;  %v3372_v57 = vld [vmem:[#allocation19 + $0x10] sm:$0xff] }
0x11a6   :  { %v4323_v8 = vpop.eup %4322 }
0x11a7   :  { %v3078_v50 = vmul.f32 %v4323_v8, %v3054_v48  ;;  %v3371_v8 = vld [vmem:[#allocation19 + $0x8] sm:$0xff] }
0x11a9   :  { %v3087_v60 = vmul.f32 %v3597_v40, %v3078_v50 }
0x11aa   :  { %v4325_v11 = vpop.eup %4324 }
0x11ab   :  { %v3096_v29 = vadd.f32 %v3598_v10, %v3087_v60  ;;  %v3079_v52 = vmul.f32 %v4325_v11, %v3055_v54 }
0x11ad   :  { %4141 = vmatmul.mubr.msk.f32.vlgmr.msra.gmra.mxu1 %vm347_vm2, %v3096_v29  ;;  %v3088_v14 = vmul.f32 %v3597_v40, %v3079_v52 }
0x11ae   :  { %4143 = vmatprep.mubr.msk.f32.mxu1 %vm4629_vm0, %v4628_v0  ;;  %4167 = vmatpush3.msra.mxu1 %v3373_v9 }
0x11af   :  { %v3097_v61 = vadd.f32 %v3598_v10, %v3088_v14  ;;  %4168 = vmatprep.subr.mxu1 %v4628_v0 }
0x11b0   :  { %4169 = vmatpush3.msra.mxu1 %v3372_v57 }
0x11b1   :  { %v4327_v16 = vpop.eup %4326  ;;  %4144 = vmatmul.mubr.msk.f32.gmra.mxu1 %vm347_vm2, %v3097_v61  ;;  %4170 = vmatprep.subr.mxu1 %v4628_v0 }
0x11b2   :  { %4146 = vmatprep.mubr.msk.f32.mxu1 %vm4629_vm0, %v4628_v0  ;;  %v3080_v13 = vmul.f32 %v4327_v16, %v3056_v28  ;;  %4171 = vmatpush3.msra.mxu1 %v3371_v8 }
0x11b3   :  { %4172 = vmatprep.subr.mxu1 %v4628_v0 }
0x11b4   :  { %v3089_v17 = vmul.f32 %v3597_v40, %v3080_v13  ;;  %v3370_v40 = vld [vmem:[#allocation19] sm:$0xff] }
0x11b5   :  { %4173 = vmatpush3.msra.mxu1 %v3370_v40 }
0x11b6   :  { %v3098_v19 = vadd.f32 %v3598_v10, %v3089_v17  ;;  %v3607_v17 = vld [vmem:[#allocation16 + $0x1] ss:$0 sm:$0xff] }
0x11b8   :  { %4147 = vmatmul.mubr.msk.f32.gmra.mxu1 %vm347_vm2, %v3098_v19 }
0x11b9   :  { %4174 = vmatprep.mubr.msk.f32.mxu1 %vm4629_vm0, %v4628_v0 }
0x126d   :  { %v3187_v26 = vpop.f32.mrf.mxu1 }
0x126e   :  { %v3188_v32 = vadd.f32 %v3599_v31, %v3187_v26 }
0x126f   :  { %v4142_v33 = vpop.f32.mrf.mxu1 }
0x1270   :  { %v3201_v36 = vmax.f32 %v3188_v32, 0.0 }
0x1271   :  { %v3192_v30 = vpop.f32.mrf.mxu1 }
0x1272   :  { %v3193_v37 = vadd.f32 %v3599_v31, %v3192_v30  ;;  %4158 = vmatmul.mubr.msk.f32.vlgmr.msra.gmra.mxu0 %vm347_vm2, %v3201_v36 }
0x1273   :  { %v4145_v12 = vpop.f32.mrf.mxu1  ;;  %4160 = vmatprep.mubr.msk.f32.mxu0 %vm4629_vm0, %v4628_v0 }
0x1274   :  { %v3202_v38 = vmax.f32 %v3193_v37, 0.0 }
0x1276   :  { %4161 = vmatmul.mubr.msk.f32.gmra.mxu0 %vm347_vm2, %v3202_v38  ;;  %v3609_v38 = vld [vmem:[#allocation21] ss:$0 sm:$0xff] }
0x1277   :  { %4163 = vmatprep.mubr.msk.f32.mxu0 %vm4629_vm0, %v4628_v0 }
0x1278   :  { %v3197_v43 = vpop.f32.mrf.mxu1 }
0x1279   :  { %v3198_v44 = vadd.f32 %v3599_v31, %v3197_v43 }
0x127a   :  { %v4148_v41 = vpop.f32.mrf.mxu1 }
0x127b   :  { %v3203_v42 = vmax.f32 %v3198_v44, 0.0 }
0x127d   :  { %4164 = vmatmul.mubr.msk.f32.gmra.mxu0 %vm347_vm2, %v3203_v42 }
0x1332   :  { %v3292_v46 = vpop.f32.mrf.mxu0 }
0x1333   :  { %v3293_v51 = vadd.f32 %v3603_v15, %v3292_v46 }
0x1334   :  { %v4159_v53 = vpop.f32.mrf.mxu0 }
0x1335   :  { %v3306_v20 = vadd.f32 %v3293_v51, %v3096_v29 }
0x1336   :  { %v3297_v18 = vpop.f32.mrf.mxu0 }
0x1337   :  { %v3298_v48 = vadd.f32 %v3603_v15, %v3297_v18  ;;  %v3313_v55 = vsel %vm347_vm2, %v3306_v20, 0.0 }
0x1338   :  { %3314 = vadd.xlane.f32.xlu1 %v3313_v55  ;;  %v4162_v56 = vpop.f32.mrf.mxu0 }
0x1339   :  { %v3307_v27 = vadd.f32 %v3298_v48, %v3097_v61 }
0x133b   :  { %v3316_v54 = vsel %vm347_vm2, %v3307_v27, 0.0 }
0x133c   :  { %3317 = vadd.xlane.f32.xlu0 %v3316_v54 }
0x133d   :  { %v3302_v23 = vpop.f32.mrf.mxu0 }
0x133e   :  { %v3303_v58 = vadd.f32 %v3603_v15, %v3302_v23 }
0x133f   :  { %v4165_v34 = vpop.f32.mrf.mxu0 }
0x1340   :  { %v3308_v63 = vadd.f32 %v3303_v58, %v3098_v19 }
0x1342   :  { %v3319_v1 = vsel %vm347_vm2, %v3308_v63, 0.0 }
0x1343   :  { %3320 = vadd.xlane.f32.xlu1 %v3319_v1 }
0x13c1   :  { %v3315_v28 = vpop.xlane.xlu1 %3314 }
0x13c2   :  { %v3322_v47 = vmul.f32 0.03125, %v3315_v28 }
0x13c4   :  { %v3325_v2 = vsub.f32 %v3306_v20, %v3322_v47 }
0x13c5   :  { %v3318_v3 = vpop.xlane.xlu0 %3317 }
0x13c6   :  { %v3323_v39 = vmul.f32 0.03125, %v3318_v3  ;;  %v3328_v6 = vmul.f32 %v3325_v2, %v3325_v2 }
0x13c8   :  { %v3326_v22 = vsub.f32 %v3307_v27, %v3323_v39  ;;  %v3331_v45 = vsel %vm347_vm2, %v3328_v6, 0.0 }
0x13c9   :  { %3332 = vadd.xlane.f32.xlu0 %v3331_v45 }
0x13ca   :  { %v3329_v35 = vmul.f32 %v3326_v22, %v3326_v22 }
0x13cc   :  { %v3321_v62 = vpop.xlane.xlu1 %3320  ;;  %v3334_v5 = vsel %vm347_vm2, %v3329_v35, 0.0 }
0x13cd   :  { %v3324_v7 = vmul.f32 0.03125, %v3321_v62  ;;  %3335 = vadd.xlane.f32.xlu1 %v3334_v5 }
0x13cf   :  { %v3327_v49 = vsub.f32 %v3308_v63, %v3324_v7 }
0x13d1   :  { %v3330_v59 = vmul.f32 %v3327_v49, %v3327_v49 }
0x13d3   :  { %v3337_v4 = vsel %vm347_vm2, %v3330_v59, 0.0 }
0x13d4   :  { %3338 = vadd.xlane.f32.xlu0 %v3337_v4 }
0x1452   :  { %v3333_v50 = vpop.xlane.xlu0 %3332 }
0x1453   :  { %v3340_v10 = vmul.f32 0.03125, %v3333_v50 }
0x1455   :  { %v3343_v60 = vadd.f32 1e-05, %v3340_v10 }
0x1456   :  { %v3336_v11 = vpop.xlane.xlu1 %3335 }
0x1457   :  { %4328 = vrsqrt.f32 %v3343_v60  ;;  %v3341_v29 = vmul.f32 0.03125, %v3336_v11 }
0x1459   :  { %v3344_v52 = vadd.f32 1e-05, %v3341_v29 }
0x145b   :  { %4330 = vrsqrt.f32 %v3344_v52 }
0x145d   :  { %v3339_v14 = vpop.xlane.xlu0 %3338 }
0x145e   :  { %v3342_v61 = vmul.f32 0.03125, %v3339_v14 }
0x1460   :  { %v3345_v16 = vadd.f32 1e-05, %v3342_v61 }
0x1462   :  { %4332 = vrsqrt.f32 %v3345_v16 }
0x1464   :  { %v4329_v13 = vpop.eup %4328 }
0x1465   :  { %v3349_v19 = vmul.f32 %v4329_v13, %v3325_v2 }
0x1467   :  { %v3358_v25 = vmul.f32 %v3607_v17, %v3349_v19 }
0x1468   :  { %v4331_v24 = vpop.eup %4330 }
0x1469   :  { %v3367_v31 = vadd.f32 %v3608_v21, %v3358_v25  ;;  %v3350_v26 = vmul.f32 %v4331_v24, %v3326_v22 }
0x146b   :  { %4175 = vmatmul.mubr.msk.f32.vlgmr.msra.gmra.mxu1 %vm347_vm2, %v3367_v31  ;;  %v3359_v32 = vmul.f32 %v3607_v17, %v3350_v26 }
0x146c   :  { %4177 = vmatprep.mubr.msk.f32.mxu1 %vm4629_vm0, %v4628_v0 }
0x146d   :  { %v3368_v33 = vadd.f32 %v3608_v21, %v3359_v32 }
0x146f   :  { %v4333_v36 = vpop.eup %4332  ;;  %4178 = vmatmul.mubr.msk.f32.gmra.mxu1 %vm347_vm2, %v3368_v33 }
0x1470   :  { %4180 = vmatprep.mubr.msk.f32.mxu1 %vm4629_vm0, %v4628_v0  ;;  %v3351_v30 = vmul.f32 %v4333_v36, %v3327_v49 }
0x1472   :  { %v3360_v37 = vmul.f32 %v3607_v17, %v3351_v30 }
0x1474   :  { %v3369_v12 = vadd.f32 %v3608_v21, %v3360_v37 }
0x1476   :  { %4181 = vmatmul.mubr.msk.f32.gmra.mxu1 %vm347_vm2, %v3369_v12 }
0x152b   :  { %v3456_v43 = vpop.f32.mrf.mxu1 }
0x152c   :  { %v3457_v44 = vadd.f32 %v3609_v38, %v3456_v43 }
0x152d   :  { %v4176_v41 = vpop.f32.mrf.mxu1 }
0x152e   :  { %3470 = vst [vmem:[%s5753_s18] sm:$0xff] %v3457_v44 }
0x152f   :  { %v3461_v42 = vpop.f32.mrf.mxu1 }
0x1530   :  { %v3462_v15 = vadd.f32 %v3609_v38, %v3461_v42 }
0x1531   :  { %v4179_v46 = vpop.f32.mrf.mxu1 }
0x1532   :  { %3471 = vst [vmem:[%s5753_s18 + $0x8] sm:$0xff] %v3462_v15 }
0x1536   :  { %v3466_v0 = vpop.f32.mrf.mxu1 }
0x1537   :  { %v3467_v51 = vadd.f32 %v3609_v38, %v3466_v0 }
0x1538   :  { %v4182_v53 = vpop.f32.mrf.mxu1 }
0x1539   :  { %3472 = vst [vmem:[%s5753_s18 + $0x10] sm:$0xff] %v3467_v51 }
0x153a   :  { %3477 = vsyncpa [#allocation3], 1 }
0x153b   :  { %3478 = vsyncpa [#allocation5], 1 }
0x153c   :  { %3479 = vsyncpa [#allocation8], 1 }
0x153d   :  { %3480 = vsyncpa [#allocation11], 1 }
0x153e   :  { %3481 = vsyncpa [#allocation14], 1 }
0x153f   :  { %3482 = vsyncpa [#allocation17], 1 }
0x1540   :  { %3483 = vsyncpa [#allocation20], 1 }

</bundles_post_ra>
